<compile_context>
chip_gen: v7x
topology: tpu7x:2x2x1
jax: 0.10.0
libtpu: 0.0.40
codegen_flags: <defaults>
</compile_context>

<pallas_src>
import jax
import jax.numpy as jnp
from jax.experimental import pallas as pl
from jax.experimental.pallas import tpu as pltpu


PHYS_W = 32   # fixed per-image physical column width: 28 data cols + 2 zero-pad each side


# ------------------------------ fused kernel ------------------------------- #

def lenet5_fused_kernel(x_ref,
                        t1_ref, b1_ref, s1_ref,
                        t2_ref, b2_ref, s2_ref,
                        t3_ref, b3_ref,
                        wf1_ref, bf1_ref, wf2_ref, bf2_ref,
                        out_ref):
    """Whole LeNet5 forward on one VMEM-resident batch tile.

    Activation layout: A[c*H + h, b*32 + p], image data at p = w + 2, and the
    valid spatial grid at p = 2 + s*i with s = 1 -> 2 -> 4 as the net pools.
    conv(5x5)    : ONE MXU matmul  T_cat @ concat_kw(lane-shifted A) + bias.
    maxpool+relu : row-pair 0/1 selector matmuls (batch-independent) followed
                   by a lane-roll max; relu last (max is monotone).
    """
    f32, bf16 = jnp.float32, jnp.bfloat16

    def mm(a, b):
        return jnp.dot(a, b, preferred_element_type=f32)      # f32 accumulation

    def shift_cols(a, d):
        # result[:, j] = a[:, j + d].  For every VALID destination column the
        # source stays inside the same 32-column image block (zero padding is
        # baked into the grid), so wrap-around only ever lands on columns that
        # are never read downstream -> no masks needed.
        return a if d == 0 else jnp.roll(a, -d, axis=1)

    def conv(a, t_ref, b_ref, shifts):
        # Fold the 5 width taps into one matmul:
        #   (Cout*OH, 5*Cin*Hin) @ (5*Cin*Hin, N)
        a_stack = jnp.concatenate([shift_cols(a, d) for d in shifts], axis=0)
        return mm(t_ref[...], a_stack) + b_ref[...]            # f32 (Cout*OH, N)

    def pool_relu(c, s_ref, col_stride):
        c = c.astype(bf16)
        m = jnp.maximum(mm(s_ref[0], c), mm(s_ref[1], c))      # max over row pairs
        p = jnp.maximum(m, shift_cols(m, col_stride))          # max over column pairs
        return jnp.maximum(p, 0.0).astype(bf16)                # relu, bf16 for next MXU op

    x = x_ref[...]                                             # (Cin*28, N) bf16
    c1 = conv(x, t1_ref, b1_ref, shifts=(-2, -1, 0, 1, 2))     # (6*28,  N)  pad=2, stride grid 1
    a1 = pool_relu(c1, s1_ref, col_stride=1)                   # (6*14,  N)  grid stride -> 2
    c2 = conv(a1, t2_ref, b2_ref, shifts=(0, 2, 4, 6, 8))      # (16*10, N)
    a2 = pool_relu(c2, s2_ref, col_stride=2)                   # (16*5,  N)  grid stride -> 4
    c3 = conv(a2, t3_ref, b3_ref, shifts=(0, 4, 8, 12, 16))    # (120,   N)
    a3 = jnp.maximum(c3, 0.0).astype(bf16)
    a4 = jnp.maximum(mm(wf1_ref[...], a3) + bf1_ref[...], 0.0).astype(bf16)   # (84, N)
    out_ref[...] = mm(wf2_ref[...], a4) + bf2_ref[...]         # (classes, N) f32, lane-dense


# --------------------- one-time weight / constant prep --------------------- #

def prepare_lenet5(params):
    """Batch-independent kernel operands (built once, reused for any batch)."""
    f32, bf16 = jnp.float32, jnp.bfloat16

    def toeplitz_cat(w, h_in, pad):
        # torch OIHW (Cout,Cin,5,5) -> T_cat (Cout*OH, 5*Cin*h_in); columns ordered [kw][ci][h].
        cout, cin, k, _ = w.shape
        oh = h_in + 2 * pad - k + 1
        kh = jnp.arange(h_in)[None, :] - jnp.arange(oh)[:, None] + pad      # kh = h - oh + pad
        valid = (kh >= 0) & (kh < k)
        wt = w.astype(f32)[:, :, jnp.clip(kh, 0, k - 1), :]                 # (Cout,Cin,OH,h_in,K)
        wt = jnp.where(valid[None, None, :, :, None], wt, 0.0)
        wt = wt.transpose(0, 2, 4, 1, 3)                                    # (Cout,OH,K,Cin,h_in)
        return wt.reshape(cout * oh, k * cin * h_in).astype(bf16)

    def row_pool(c, oh):
        # 0/1 selectors picking conv rows (ch, 2*ph) / (ch, 2*ph+1); batch-independent, exact in bf16.
        ph = oh // 2
        r = jnp.arange(c * ph)
        src = (r // ph) * oh + 2 * (r % ph)
        cols = jnp.arange(c * oh)[None, :]
        return jnp.stack([(cols == src[:, None]).astype(f32),
                          (cols == (src + 1)[:, None]).astype(f32)]).astype(bf16)

    def bias_col(b, rep):
        return jnp.repeat(b.astype(f32), rep)[:, None]

    w1, w2, w3 = params["c1_w"], params["c2_w"], params["c3_w"]
    h0 = 28
    o1 = h0 + 2 * 2 - 4        # 28
    p1 = o1 // 2               # 14
    o2 = p1 - 4                # 10
    p2 = o2 // 2               # 5
    o3 = p2 - 4                # 1

    return {
        "t1": toeplitz_cat(w1, h0, 2), "b1": bias_col(params["c1_b"], o1),
        "s1": row_pool(w1.shape[0], o1),
        "t2": toeplitz_cat(w2, p1, 0), "b2": bias_col(params["c2_b"], o2),
        "s2": row_pool(w2.shape[0], o2),
        "t3": toeplitz_cat(w3, p2, 0), "b3": bias_col(params["c3_b"], o3),
        "wf1": params["fc1_w"].astype(bf16), "bf1": params["fc1_b"].astype(f32)[:, None],
        "wf2": params["fc2_w"].astype(bf16), "bf2": params["fc2_b"].astype(f32)[:, None],
    }


# --------------------------------- forward --------------------------------- #

def lenet5_forward(x, prep, batch_tile=8):
    """x: (B, Cin, 28, 28) NCHW float -> logits (B, classes). Single fused pallas_call."""
    B, cin, H, W = x.shape
    if B % batch_tile:
        batch_tile = B                       # fall back to a single tile
    n_cols_tile = batch_tile * PHYS_W        # lanes per grid step (256 for batch_tile=8)
    classes = prep["wf2"].shape[0]

    # Boundary relayout only: zero-pad width 28 -> 32 (conv1's W-padding baked in)
    # and go to A0[ci*H + h, b*32 + (w+2)] in bf16.
    xp = jnp.pad(x, ((0, 0), (0, 0), (0, 0), (2, 2)))
    x2 = jnp.transpose(xp, (1, 2, 0, 3)).reshape(cin * H, B * PHYS_W).astype(jnp.bfloat16)

    const_keys = ("t1", "b1", "s1", "t2", "b2", "s2", "t3", "b3",
                  "wf1", "bf1", "wf2", "bf2")
    consts = [prep[k] for k in const_keys]

    def const_spec(a):
        nd = a.ndim
        return pl.BlockSpec(a.shape, lambda i, _nd=nd: (0,) * _nd)   # resident across grid steps

    y = pl.pallas_call(
        lenet5_fused_kernel,
        grid=(B // batch_tile,),                               # 1-D grid over batch-column tiles
        in_specs=[pl.BlockSpec((cin * H, n_cols_tile), lambda i: (0, i))]
                 + [const_spec(a) for a in consts],
        out_specs=pl.BlockSpec((classes, n_cols_tile), lambda i: (0, i)),
        out_shape=jax.ShapeDtypeStruct((classes, B * PHYS_W), jnp.float32),
        compiler_params=pltpu.CompilerParams(
            dimension_semantics=("parallel",)),                # v7x: shard tiles across both TCs
    )(x2, *consts)

    # Valid logits live at physical column p=2 of each image's 32-column block.
    return y.reshape(classes, B, PHYS_W)[:, :, 2].T            # (B, classes)


# ------------------------------- parameters -------------------------------- #

def init_params(key, input_channels=1, classes=10):
    ks = jax.random.split(key, 10)

    def dense_init(k, shape, fan_in):
        return (jax.random.normal(k, shape, jnp.float32) /
                jnp.sqrt(jnp.float32(fan_in)))

    return {
        "c1_w": dense_init(ks[0], (6, input_channels, 5, 5), input_channels * 25),
        "c1_b": 0.01 * jax.random.normal(ks[1], (6,), jnp.float32),
        "c2_w": dense_init(ks[2], (16, 6, 5, 5), 6 * 25),
        "c2_b": 0.01 * jax.random.normal(ks[3], (16,), jnp.float32),
        "c3_w": dense_init(ks[4], (120, 16, 5, 5), 16 * 25),
        "c3_b": 0.01 * jax.random.normal(ks[5], (120,), jnp.float32),
        "fc1_w": dense_init(ks[6], (84, 120), 120),   # torch Linear layout: (out, in)
        "fc1_b": 0.01 * jax.random.normal(ks[7], (84,), jnp.float32),
        "fc2_w": dense_init(ks[8], (classes, 84), 84),
        "fc2_b": 0.01 * jax.random.normal(ks[9], (classes,), jnp.float32),
    }


# --------------------------- pure-JAX reference ----------------------------- #

def lenet5_reference(x, params):
    def conv(x, w, b, pad):
        y = jax.lax.conv_general_dilated(
            x, w, window_strides=(1, 1), padding=[(pad, pad), (pad, pad)],
            dimension_numbers=("NCHW", "OIHW", "NCHW"))
        return y + b.reshape(1, -1, 1, 1)

    def pool(x):
        return jax.lax.reduce_window(x, -jnp.inf, jax.lax.max,
                                     (1, 1, 2, 2), (1, 1, 2, 2), "VALID")

    y = conv(x, params["c1_w"], params["c1_b"], 2)
    y = jnp.maximum(pool(y), 0.0)
    y = conv(y, params["c2_w"], params["c2_b"], 0)
    y = jnp.maximum(pool(y), 0.0)
    y = jnp.maximum(conv(y, params["c3_w"], params["c3_b"], 0), 0.0)
    y = y.reshape(y.shape[0], -1)
    y = jnp.maximum(y @ params["fc1_w"].T + params["fc1_b"], 0.0)
    y = y @ params["fc2_w"].T + params["fc2_b"]
    return y


# ----------------------------------- main ----------------------------------- #

if __name__ == "__main__":
    # LeNet5 with fc1(in=120) implies 28x28 inputs (28 -> pool 14 -> 10 -> pool 5 -> 1x1).
    B = 16                                   # 2 batch tiles of 8 images -> 256 lanes per tile
    x = jax.random.normal(jax.random.PRNGKey(0), (B, 1, 28, 28), jnp.float32)
    params = init_params(jax.random.PRNGKey(1), input_channels=1, classes=10)

    prep = prepare_lenet5(params)            # one-time, batch-independent weight prep
    fwd = jax.jit(lenet5_forward)

    out = jax.block_until_ready(fwd(x, prep))
    assert out.shape == (B, 10), out.shape

    ref = jax.block_until_ready(lenet5_reference(x, params))
    max_diff = float(jnp.max(jnp.abs(out - ref)))
    # bf16 MXU operands (f32 accumulation) vs. the f32 reference.
    assert jnp.allclose(out, ref, atol=5e-2, rtol=5e-2), f"max abs diff {max_diff}"

    print("KERNEL_OK")
</pallas_src>

<mosaic_0001>
module attributes {stable_mosaic.version = 11 : i64} {
  func.func @lenet5_fused_kernel(%arg0: i32, %arg1: memref<28x256xbf16, #tpu.memory_space<vmem>>, %arg2: memref<168x140xbf16, #tpu.memory_space<vmem>>, %arg3: memref<168x1xf32, #tpu.memory_space<vmem>>, %arg4: memref<2x84x168xbf16, #tpu.memory_space<vmem>>, %arg5: memref<160x420xbf16, #tpu.memory_space<vmem>>, %arg6: memref<160x1xf32, #tpu.memory_space<vmem>>, %arg7: memref<2x80x160xbf16, #tpu.memory_space<vmem>>, %arg8: memref<120x400xbf16, #tpu.memory_space<vmem>>, %arg9: memref<120x1xf32, #tpu.memory_space<vmem>>, %arg10: memref<84x120xbf16, #tpu.memory_space<vmem>>, %arg11: memref<84x1xf32, #tpu.memory_space<vmem>>, %arg12: memref<10x84xbf16, #tpu.memory_space<vmem>>, %arg13: memref<10x1xf32, #tpu.memory_space<vmem>>, %arg14: memref<10x256xf32, #tpu.memory_space<vmem>>) attributes {dimension_semantics = [#tpu.dimension_semantics<parallel>], iteration_bounds = array<i64: 2>, scalar_prefetch = 0 : i64, scratch_operands = 0 : i64, tpu.core_type = #tpu.core_type<tc>, window_params = [{transform_indices = @transform_0, window_bounds = array<i64: 28, 256>}, {pipeline_mode = #tpu.pipeline_mode<synchronous>, transform_indices = @transform_1, window_bounds = array<i64: 168, 140>}, {pipeline_mode = #tpu.pipeline_mode<synchronous>, transform_indices = @transform_2, window_bounds = array<i64: 168, 1>}, {pipeline_mode = #tpu.pipeline_mode<synchronous>, transform_indices = @transform_3, window_bounds = array<i64: 2, 84, 168>}, {pipeline_mode = #tpu.pipeline_mode<synchronous>, transform_indices = @transform_4, window_bounds = array<i64: 160, 420>}, {pipeline_mode = #tpu.pipeline_mode<synchronous>, transform_indices = @transform_5, window_bounds = array<i64: 160, 1>}, {pipeline_mode = #tpu.pipeline_mode<synchronous>, transform_indices = @transform_6, window_bounds = array<i64: 2, 80, 160>}, {pipeline_mode = #tpu.pipeline_mode<synchronous>, transform_indices = @transform_7, window_bounds = array<i64: 120, 400>}, {pipeline_mode = #tpu.pipeline_mode<synchronous>, transform_indices = @transform_8, window_bounds = array<i64: 120, 1>}, {pipeline_mode = #tpu.pipeline_mode<synchronous>, transform_indices = @transform_9, window_bounds = array<i64: 84, 120>}, {pipeline_mode = #tpu.pipeline_mode<synchronous>, transform_indices = @transform_10, window_bounds = array<i64: 84, 1>}, {pipeline_mode = #tpu.pipeline_mode<synchronous>, transform_indices = @transform_11, window_bounds = array<i64: 10, 84>}, {pipeline_mode = #tpu.pipeline_mode<synchronous>, transform_indices = @transform_12, window_bounds = array<i64: 10, 1>}, {transform_indices = @transform_13, window_bounds = array<i64: 10, 256>}]} {
    %c0 = arith.constant 0 : index
    %c0_0 = arith.constant 0 : index
    %0 = vector.load %arg1[%c0, %c0_0] : memref<28x256xbf16, #tpu.memory_space<vmem>>, vector<28x256xbf16>
    %1 = vector.extract_strided_slice %0 {offsets = [0, 254], sizes = [28, 2], strides = [1, 1]} : vector<28x256xbf16> to vector<28x2xbf16>
    %2 = vector.extract_strided_slice %0 {offsets = [0, 0], sizes = [28, 254], strides = [1, 1]} : vector<28x256xbf16> to vector<28x254xbf16>
    %3 = tpu.concatenate %1, %2 in 1 : vector<28x2xbf16>, vector<28x254xbf16> -> vector<28x256xbf16>
    %4 = vector.extract_strided_slice %0 {offsets = [0, 255], sizes = [28, 1], strides = [1, 1]} : vector<28x256xbf16> to vector<28x1xbf16>
    %5 = vector.extract_strided_slice %0 {offsets = [0, 0], sizes = [28, 255], strides = [1, 1]} : vector<28x256xbf16> to vector<28x255xbf16>
    %6 = tpu.concatenate %4, %5 in 1 : vector<28x1xbf16>, vector<28x255xbf16> -> vector<28x256xbf16>
    %7 = vector.extract_strided_slice %0 {offsets = [0, 1], sizes = [28, 255], strides = [1, 1]} : vector<28x256xbf16> to vector<28x255xbf16>
    %8 = vector.extract_strided_slice %0 {offsets = [0, 0], sizes = [28, 1], strides = [1, 1]} : vector<28x256xbf16> to vector<28x1xbf16>
    %9 = tpu.concatenate %7, %8 in 1 : vector<28x255xbf16>, vector<28x1xbf16> -> vector<28x256xbf16>
    %10 = vector.extract_strided_slice %0 {offsets = [0, 2], sizes = [28, 254], strides = [1, 1]} : vector<28x256xbf16> to vector<28x254xbf16>
    %11 = vector.extract_strided_slice %0 {offsets = [0, 0], sizes = [28, 2], strides = [1, 1]} : vector<28x256xbf16> to vector<28x2xbf16>
    %12 = tpu.concatenate %10, %11 in 1 : vector<28x254xbf16>, vector<28x2xbf16> -> vector<28x256xbf16>
    %13 = tpu.concatenate %3, %6, %0, %9, %12 in 0 : vector<28x256xbf16>, vector<28x256xbf16>, vector<28x256xbf16>, vector<28x256xbf16>, vector<28x256xbf16> -> vector<140x256xbf16>
    %c0_1 = arith.constant 0 : index
    %c0_2 = arith.constant 0 : index
    %14 = vector.load %arg2[%c0_1, %c0_2] : memref<168x140xbf16, #tpu.memory_space<vmem>>, vector<168x140xbf16>
    %cst = arith.constant dense<0.000000e+00> : vector<168x256xf32>
    %15 = tpu.matmul %14, %13, %cst {dimension_numbers = #tpu.dot_dimension_numbers<[1], [0], [0], [1], [0, 0, 1, 1], [], []>} : vector<168x140xbf16>, vector<140x256xbf16>, vector<168x256xf32> -> vector<168x256xf32>
    %c0_3 = arith.constant 0 : index
    %c0_4 = arith.constant 0 : index
    %16 = vector.load %arg3[%c0_3, %c0_4] : memref<168x1xf32, #tpu.memory_space<vmem>>, vector<168x1xf32>
    %17 = vector.broadcast %16 : vector<168x1xf32> to vector<168x256xf32>
    %18 = arith.addf %15, %17 : vector<168x256xf32>
    %19 = arith.truncf %18 : vector<168x256xf32> to vector<168x256xbf16>
    %c0_5 = arith.constant 0 : index
    %c0_6 = arith.constant 0 : index
    %c0_7 = arith.constant 0 : index
    %20 = vector.load %arg4[%c0_5, %c0_6, %c0_7] : memref<2x84x168xbf16, #tpu.memory_space<vmem>>, vector<1x84x168xbf16>
    %21 = vector.shape_cast %20 : vector<1x84x168xbf16> to vector<84x168xbf16>
    %cst_8 = arith.constant dense<0.000000e+00> : vector<84x256xf32>
    %22 = tpu.matmul %21, %19, %cst_8 {dimension_numbers = #tpu.dot_dimension_numbers<[1], [0], [0], [1], [0, 0, 1, 1], [], []>} : vector<84x168xbf16>, vector<168x256xbf16>, vector<84x256xf32> -> vector<84x256xf32>
    %c1 = arith.constant 1 : index
    %c0_9 = arith.constant 0 : index
    %c0_10 = arith.constant 0 : index
    %23 = vector.load %arg4[%c1, %c0_9, %c0_10] : memref<2x84x168xbf16, #tpu.memory_space<vmem>>, vector<1x84x168xbf16>
    %24 = vector.shape_cast %23 : vector<1x84x168xbf16> to vector<84x168xbf16>
    %cst_11 = arith.constant dense<0.000000e+00> : vector<84x256xf32>
    %25 = tpu.matmul %24, %19, %cst_11 {dimension_numbers = #tpu.dot_dimension_numbers<[1], [0], [0], [1], [0, 0, 1, 1], [], []>} : vector<84x168xbf16>, vector<168x256xbf16>, vector<84x256xf32> -> vector<84x256xf32>
    %26 = arith.maximumf %22, %25 : vector<84x256xf32>
    %27 = vector.extract_strided_slice %26 {offsets = [0, 1], sizes = [84, 255], strides = [1, 1]} : vector<84x256xf32> to vector<84x255xf32>
    %28 = vector.extract_strided_slice %26 {offsets = [0, 0], sizes = [84, 1], strides = [1, 1]} : vector<84x256xf32> to vector<84x1xf32>
    %29 = tpu.concatenate %27, %28 in 1 : vector<84x255xf32>, vector<84x1xf32> -> vector<84x256xf32>
    %30 = arith.maximumf %26, %29 : vector<84x256xf32>
    %cst_12 = arith.constant 0.000000e+00 : f32
    %31 = vector.broadcast %cst_12 : f32 to vector<84x256xf32>
    %32 = arith.maximumf %30, %31 : vector<84x256xf32>
    %33 = arith.truncf %32 : vector<84x256xf32> to vector<84x256xbf16>
    %34 = vector.extract_strided_slice %33 {offsets = [0, 2], sizes = [84, 254], strides = [1, 1]} : vector<84x256xbf16> to vector<84x254xbf16>
    %35 = vector.extract_strided_slice %33 {offsets = [0, 0], sizes = [84, 2], strides = [1, 1]} : vector<84x256xbf16> to vector<84x2xbf16>
    %36 = tpu.concatenate %34, %35 in 1 : vector<84x254xbf16>, vector<84x2xbf16> -> vector<84x256xbf16>
    %37 = vector.extract_strided_slice %33 {offsets = [0, 4], sizes = [84, 252], strides = [1, 1]} : vector<84x256xbf16> to vector<84x252xbf16>
    %38 = vector.extract_strided_slice %33 {offsets = [0, 0], sizes = [84, 4], strides = [1, 1]} : vector<84x256xbf16> to vector<84x4xbf16>
    %39 = tpu.concatenate %37, %38 in 1 : vector<84x252xbf16>, vector<84x4xbf16> -> vector<84x256xbf16>
    %40 = vector.extract_strided_slice %33 {offsets = [0, 6], sizes = [84, 250], strides = [1, 1]} : vector<84x256xbf16> to vector<84x250xbf16>
    %41 = vector.extract_strided_slice %33 {offsets = [0, 0], sizes = [84, 6], strides = [1, 1]} : vector<84x256xbf16> to vector<84x6xbf16>
    %42 = tpu.concatenate %40, %41 in 1 : vector<84x250xbf16>, vector<84x6xbf16> -> vector<84x256xbf16>
    %43 = vector.extract_strided_slice %33 {offsets = [0, 8], sizes = [84, 248], strides = [1, 1]} : vector<84x256xbf16> to vector<84x248xbf16>
    %44 = vector.extract_strided_slice %33 {offsets = [0, 0], sizes = [84, 8], strides = [1, 1]} : vector<84x256xbf16> to vector<84x8xbf16>
    %45 = tpu.concatenate %43, %44 in 1 : vector<84x248xbf16>, vector<84x8xbf16> -> vector<84x256xbf16>
    %46 = tpu.concatenate %33, %36, %39, %42, %45 in 0 : vector<84x256xbf16>, vector<84x256xbf16>, vector<84x256xbf16>, vector<84x256xbf16>, vector<84x256xbf16> -> vector<420x256xbf16>
    %c0_13 = arith.constant 0 : index
    %c0_14 = arith.constant 0 : index
    %47 = vector.load %arg5[%c0_13, %c0_14] : memref<160x420xbf16, #tpu.memory_space<vmem>>, vector<160x420xbf16>
    %cst_15 = arith.constant dense<0.000000e+00> : vector<160x256xf32>
    %48 = tpu.matmul %47, %46, %cst_15 {dimension_numbers = #tpu.dot_dimension_numbers<[1], [0], [0], [1], [0, 0, 1, 1], [], []>} : vector<160x420xbf16>, vector<420x256xbf16>, vector<160x256xf32> -> vector<160x256xf32>
    %c0_16 = arith.constant 0 : index
    %c0_17 = arith.constant 0 : index
    %49 = vector.load %arg6[%c0_16, %c0_17] : memref<160x1xf32, #tpu.memory_space<vmem>>, vector<160x1xf32>
    %50 = vector.broadcast %49 : vector<160x1xf32> to vector<160x256xf32>
    %51 = arith.addf %48, %50 : vector<160x256xf32>
    %52 = arith.truncf %51 : vector<160x256xf32> to vector<160x256xbf16>
    %c0_18 = arith.constant 0 : index
    %c0_19 = arith.constant 0 : index
    %c0_20 = arith.constant 0 : index
    %53 = vector.load %arg7[%c0_18, %c0_19, %c0_20] : memref<2x80x160xbf16, #tpu.memory_space<vmem>>, vector<1x80x160xbf16>
    %54 = vector.shape_cast %53 : vector<1x80x160xbf16> to vector<80x160xbf16>
    %cst_21 = arith.constant dense<0.000000e+00> : vector<80x256xf32>
    %55 = tpu.matmul %54, %52, %cst_21 {dimension_numbers = #tpu.dot_dimension_numbers<[1], [0], [0], [1], [0, 0, 1, 1], [], []>} : vector<80x160xbf16>, vector<160x256xbf16>, vector<80x256xf32> -> vector<80x256xf32>
    %c1_22 = arith.constant 1 : index
    %c0_23 = arith.constant 0 : index
    %c0_24 = arith.constant 0 : index
    %56 = vector.load %arg7[%c1_22, %c0_23, %c0_24] : memref<2x80x160xbf16, #tpu.memory_space<vmem>>, vector<1x80x160xbf16>
    %57 = vector.shape_cast %56 : vector<1x80x160xbf16> to vector<80x160xbf16>
    %cst_25 = arith.constant dense<0.000000e+00> : vector<80x256xf32>
    %58 = tpu.matmul %57, %52, %cst_25 {dimension_numbers = #tpu.dot_dimension_numbers<[1], [0], [0], [1], [0, 0, 1, 1], [], []>} : vector<80x160xbf16>, vector<160x256xbf16>, vector<80x256xf32> -> vector<80x256xf32>
    %59 = arith.maximumf %55, %58 : vector<80x256xf32>
    %60 = vector.extract_strided_slice %59 {offsets = [0, 2], sizes = [80, 254], strides = [1, 1]} : vector<80x256xf32> to vector<80x254xf32>
    %61 = vector.extract_strided_slice %59 {offsets = [0, 0], sizes = [80, 2], strides = [1, 1]} : vector<80x256xf32> to vector<80x2xf32>
    %62 = tpu.concatenate %60, %61 in 1 : vector<80x254xf32>, vector<80x2xf32> -> vector<80x256xf32>
    %63 = arith.maximumf %59, %62 : vector<80x256xf32>
    %cst_26 = arith.constant 0.000000e+00 : f32
    %64 = vector.broadcast %cst_26 : f32 to vector<80x256xf32>
    %65 = arith.maximumf %63, %64 : vector<80x256xf32>
    %66 = arith.truncf %65 : vector<80x256xf32> to vector<80x256xbf16>
    %67 = vector.extract_strided_slice %66 {offsets = [0, 4], sizes = [80, 252], strides = [1, 1]} : vector<80x256xbf16> to vector<80x252xbf16>
    %68 = vector.extract_strided_slice %66 {offsets = [0, 0], sizes = [80, 4], strides = [1, 1]} : vector<80x256xbf16> to vector<80x4xbf16>
    %69 = tpu.concatenate %67, %68 in 1 : vector<80x252xbf16>, vector<80x4xbf16> -> vector<80x256xbf16>
    %70 = vector.extract_strided_slice %66 {offsets = [0, 8], sizes = [80, 248], strides = [1, 1]} : vector<80x256xbf16> to vector<80x248xbf16>
    %71 = vector.extract_strided_slice %66 {offsets = [0, 0], sizes = [80, 8], strides = [1, 1]} : vector<80x256xbf16> to vector<80x8xbf16>
    %72 = tpu.concatenate %70, %71 in 1 : vector<80x248xbf16>, vector<80x8xbf16> -> vector<80x256xbf16>
    %73 = vector.extract_strided_slice %66 {offsets = [0, 12], sizes = [80, 244], strides = [1, 1]} : vector<80x256xbf16> to vector<80x244xbf16>
    %74 = vector.extract_strided_slice %66 {offsets = [0, 0], sizes = [80, 12], strides = [1, 1]} : vector<80x256xbf16> to vector<80x12xbf16>
    %75 = tpu.concatenate %73, %74 in 1 : vector<80x244xbf16>, vector<80x12xbf16> -> vector<80x256xbf16>
    %76 = vector.extract_strided_slice %66 {offsets = [0, 16], sizes = [80, 240], strides = [1, 1]} : vector<80x256xbf16> to vector<80x240xbf16>
    %77 = vector.extract_strided_slice %66 {offsets = [0, 0], sizes = [80, 16], strides = [1, 1]} : vector<80x256xbf16> to vector<80x16xbf16>
    %78 = tpu.concatenate %76, %77 in 1 : vector<80x240xbf16>, vector<80x16xbf16> -> vector<80x256xbf16>
    %79 = tpu.concatenate %66, %69, %72, %75, %78 in 0 : vector<80x256xbf16>, vector<80x256xbf16>, vector<80x256xbf16>, vector<80x256xbf16>, vector<80x256xbf16> -> vector<400x256xbf16>
    %c0_27 = arith.constant 0 : index
    %c0_28 = arith.constant 0 : index
    %80 = vector.load %arg8[%c0_27, %c0_28] : memref<120x400xbf16, #tpu.memory_space<vmem>>, vector<120x400xbf16>
    %cst_29 = arith.constant dense<0.000000e+00> : vector<120x256xf32>
    %81 = tpu.matmul %80, %79, %cst_29 {dimension_numbers = #tpu.dot_dimension_numbers<[1], [0], [0], [1], [0, 0, 1, 1], [], []>} : vector<120x400xbf16>, vector<400x256xbf16>, vector<120x256xf32> -> vector<120x256xf32>
    %c0_30 = arith.constant 0 : index
    %c0_31 = arith.constant 0 : index
    %82 = vector.load %arg9[%c0_30, %c0_31] : memref<120x1xf32, #tpu.memory_space<vmem>>, vector<120x1xf32>
    %83 = vector.broadcast %82 : vector<120x1xf32> to vector<120x256xf32>
    %84 = arith.addf %81, %83 : vector<120x256xf32>
    %cst_32 = arith.constant 0.000000e+00 : f32
    %85 = vector.broadcast %cst_32 : f32 to vector<120x256xf32>
    %86 = arith.maximumf %84, %85 : vector<120x256xf32>
    %87 = arith.truncf %86 : vector<120x256xf32> to vector<120x256xbf16>
    %c0_33 = arith.constant 0 : index
    %c0_34 = arith.constant 0 : index
    %88 = vector.load %arg10[%c0_33, %c0_34] : memref<84x120xbf16, #tpu.memory_space<vmem>>, vector<84x120xbf16>
    %cst_35 = arith.constant dense<0.000000e+00> : vector<84x256xf32>
    %89 = tpu.matmul %88, %87, %cst_35 {dimension_numbers = #tpu.dot_dimension_numbers<[1], [0], [0], [1], [0, 0, 1, 1], [], []>} : vector<84x120xbf16>, vector<120x256xbf16>, vector<84x256xf32> -> vector<84x256xf32>
    %c0_36 = arith.constant 0 : index
    %c0_37 = arith.constant 0 : index
    %90 = vector.load %arg11[%c0_36, %c0_37] : memref<84x1xf32, #tpu.memory_space<vmem>>, vector<84x1xf32>
    %91 = vector.broadcast %90 : vector<84x1xf32> to vector<84x256xf32>
    %92 = arith.addf %89, %91 : vector<84x256xf32>
    %cst_38 = arith.constant 0.000000e+00 : f32
    %93 = vector.broadcast %cst_38 : f32 to vector<84x256xf32>
    %94 = arith.maximumf %92, %93 : vector<84x256xf32>
    %95 = arith.truncf %94 : vector<84x256xf32> to vector<84x256xbf16>
    %c0_39 = arith.constant 0 : index
    %c0_40 = arith.constant 0 : index
    %96 = vector.load %arg12[%c0_39, %c0_40] : memref<10x84xbf16, #tpu.memory_space<vmem>>, vector<10x84xbf16>
    %cst_41 = arith.constant dense<0.000000e+00> : vector<10x256xf32>
    %97 = tpu.matmul %96, %95, %cst_41 {dimension_numbers = #tpu.dot_dimension_numbers<[1], [0], [0], [1], [0, 0, 1, 1], [], []>} : vector<10x84xbf16>, vector<84x256xbf16>, vector<10x256xf32> -> vector<10x256xf32>
    %c0_42 = arith.constant 0 : index
    %c0_43 = arith.constant 0 : index
    %98 = vector.load %arg13[%c0_42, %c0_43] : memref<10x1xf32, #tpu.memory_space<vmem>>, vector<10x1xf32>
    %99 = vector.broadcast %98 : vector<10x1xf32> to vector<10x256xf32>
    %100 = arith.addf %97, %99 : vector<10x256xf32>
    %c0_44 = arith.constant 0 : index
    %c0_45 = arith.constant 0 : index
    %101 = vector.load %arg14[%c0_44, %c0_45] : memref<10x256xf32, #tpu.memory_space<vmem>>, vector<10x256xf32>
    tpu.vector_store %arg14[%c0_44, %c0_45], %100 {strides = array<i32>} : memref<10x256xf32, #tpu.memory_space<vmem>>, vector<10x256xf32>,
    return
  }
  func.func @transform_0(%arg0: i32) -> (i32, i32) {
    %c0_i32 = arith.constant 0 : i32
    %c0_i32_0 = arith.constant 0 : i32
    return %c0_i32, %arg0 : i32, i32
  }
  func.func @transform_1(%arg0: i32) -> (i32, i32) {
    %c0_i32 = arith.constant 0 : i32
    %c0_i32_0 = arith.constant 0 : i32
    %c0_i32_1 = arith.constant 0 : i32
    return %c0_i32, %c0_i32_0 : i32, i32
  }
  func.func @transform_2(%arg0: i32) -> (i32, i32) {
    %c0_i32 = arith.constant 0 : i32
    %c0_i32_0 = arith.constant 0 : i32
    %c0_i32_1 = arith.constant 0 : i32
    return %c0_i32, %c0_i32_0 : i32, i32
  }
  func.func @transform_3(%arg0: i32) -> (i32, i32, i32) {
    %c0_i32 = arith.constant 0 : i32
    %c0_i32_0 = arith.constant 0 : i32
    %c0_i32_1 = arith.constant 0 : i32
    %c0_i32_2 = arith.constant 0 : i32
    return %c0_i32, %c0_i32_0, %c0_i32_1 : i32, i32, i32
  }
  func.func @transform_4(%arg0: i32) -> (i32, i32) {
    %c0_i32 = arith.constant 0 : i32
    %c0_i32_0 = arith.constant 0 : i32
    %c0_i32_1 = arith.constant 0 : i32
    return %c0_i32, %c0_i32_0 : i32, i32
  }
  func.func @transform_5(%arg0: i32) -> (i32, i32) {
    %c0_i32 = arith.constant 0 : i32
    %c0_i32_0 = arith.constant 0 : i32
    %c0_i32_1 = arith.constant 0 : i32
    return %c0_i32, %c0_i32_0 : i32, i32
  }
  func.func @transform_6(%arg0: i32) -> (i32, i32, i32) {
    %c0_i32 = arith.constant 0 : i32
    %c0_i32_0 = arith.constant 0 : i32
    %c0_i32_1 = arith.constant 0 : i32
    %c0_i32_2 = arith.constant 0 : i32
    return %c0_i32, %c0_i32_0, %c0_i32_1 : i32, i32, i32
  }
  func.func @transform_7(%arg0: i32) -> (i32, i32) {
    %c0_i32 = arith.constant 0 : i32
    %c0_i32_0 = arith.constant 0 : i32
    %c0_i32_1 = arith.constant 0 : i32
    return %c0_i32, %c0_i32_0 : i32, i32
  }
  func.func @transform_8(%arg0: i32) -> (i32, i32) {
    %c0_i32 = arith.constant 0 : i32
    %c0_i32_0 = arith.constant 0 : i32
    %c0_i32_1 = arith.constant 0 : i32
    return %c0_i32, %c0_i32_0 : i32, i32
  }
  func.func @transform_9(%arg0: i32) -> (i32, i32) {
    %c0_i32 = arith.constant 0 : i32
    %c0_i32_0 = arith.constant 0 : i32
    %c0_i32_1 = arith.constant 0 : i32
    return %c0_i32, %c0_i32_0 : i32, i32
  }
  func.func @transform_10(%arg0: i32) -> (i32, i32) {
    %c0_i32 = arith.constant 0 : i32
    %c0_i32_0 = arith.constant 0 : i32
    %c0_i32_1 = arith.constant 0 : i32
    return %c0_i32, %c0_i32_0 : i32, i32
  }
  func.func @transform_11(%arg0: i32) -> (i32, i32) {
    %c0_i32 = arith.constant 0 : i32
    %c0_i32_0 = arith.constant 0 : i32
    %c0_i32_1 = arith.constant 0 : i32
    return %c0_i32, %c0_i32_0 : i32, i32
  }
  func.func @transform_12(%arg0: i32) -> (i32, i32) {
    %c0_i32 = arith.constant 0 : i32
    %c0_i32_0 = arith.constant 0 : i32
    %c0_i32_1 = arith.constant 0 : i32
    return %c0_i32, %c0_i32_0 : i32, i32
  }
  func.func @transform_13(%arg0: i32) -> (i32, i32) {
    %c0_i32 = arith.constant 0 : i32
    %c0_i32_0 = arith.constant 0 : i32
    return %c0_i32, %arg0 : i32, i32
  }
}

</mosaic_0001>

<bundles_post_ra>
// kernel: lenet5_forward.1
= control target key start
LH: loop header
LB: loop body
LE: loop exit
PB: predicated region body
PF: predicated region fallthrough
CT: control target
= control target key end

     0   :  { %s5201_s25 = smov 0   ;;  %s5203_s26 = smov 0   ;;  %s6699_s0 = inlined_call_operand.vmem [shape: bf16[28,512], index: 0, kind: input, shape index: {}]   ;;  %s6700_s1 = inlined_call_operand.vmem [shape: bf16[168,140], index: 1, kind: input, shape index: {}]   ;;  %s6701_s2 = inlined_call_operand.vmem [shape: f32[168,1], index: 2, kind: input, shape index: {}]   ;;  %s6702_s3 = inlined_call_operand.vmem [shape: bf16[2,84,168], index: 3, kind: input, shape index: {}]   ;;  %s6703_s4 = inlined_call_operand.vmem [shape: bf16[160,420], index: 4, kind: input, shape index: {}]   ;;  %s6704_s5 = inlined_call_operand.vmem [shape: f32[160,1], index: 5, kind: input, shape index: {}]   ;;  %s6705_s6 = inlined_call_operand.vmem [shape: bf16[2,80,160], index: 6, kind: input, shape index: {}]   ;;  %s6706_s7 = inlined_call_operand.vmem [shape: bf16[120,400], index: 7, kind: input, shape index: {}]   ;;  %s6707_s8 = inlined_call_operand.vmem [shape: f32[120,1], index: 8, kind: input, shape index: {}]   ;;  %s6708_s9 = inlined_call_operand.vmem [shape: bf16[84,120], index: 9, kind: input, shape index: {}]   ;;  %s6709_s10 = inlined_call_operand.vmem [shape: f32[84,1], index: 10, kind: input, shape index: {}]   ;;  %s6710_s11 = inlined_call_operand.vmem [shape: bf16[10,84], index: 11, kind: input, shape index: {}]   ;;  %s6711_s12 = inlined_call_operand.vmem [shape: f32[10,1], index: 12, kind: input, shape index: {}]   ;;  %s6712_s13 = inlined_call_operand.vmem [shape: f32[10,512], index: 13, kind: output, shape index: {}]  }
   0x1   :  { %s5205_s27 = smov 0  }
   0x2 LB: > { %s6713_s28 = sadd.s32 4294967295, %s5119_s27   ;;  %s5218_s29 = sadd.s32 1, %s5119_s27   ;;  %s5119_s27 = sphi %s5205_s27, %s6724_s27   ;;  %s5115_s26 = sphi %s5203_s26, %s6723_s26   ;;  %s5111_s25 = sphi %s5201_s25, %s6722_s25  }
   0x3   : > { %s27_s30 = ssub.s32 %s5119_s27, %s5218_s29  ;;  %s30_s14 = sadd.s32 1, %s5115_s26 }
   0x4   : > { %p28_p0 = scmp.eq.s32.totalorder %s27_s30, 0  ;;  %p37_p1 = scmp.ne.s32.totalorder %s5115_s26, %s5111_s25 }
   0x5   : > { %p38_p2 = scmp.eq.s32.totalorder %s5119_s27, 0  ;;  %p319_p3 = scmp.eq.s32.totalorder %s6713_s28, 1 }
   0x6   : > { %s5229_s15 = scalar_select %p28_p0, %s5115_s26, %s30_s14  }
   0x7   : > { %p39_p4 = por %p38_p2, %p37_p1  ;;  %p5231_p5 = por %p319_p3, %p37_p1 }
   0x8   : > { %p4341_p6 = scmp.ge.s32.totalorder %s5119_s27, 2 }
   0xa   : > { %377 = sbr.rel (%p4341_p6) target bundleno = 24 (0x18), region = 64 }
  0x11   : > { %380 = sbr.rel (!%p39_p4) target bundleno = 24 (0x18), region = 68  ;;  %s382_s17 = sand.u32 (%p39_p4), 1, %s5115_s26  }
  0x12   : > { %s4593_s18 = sshll.u32 (%p39_p4), %s5119_s27, 3  ;;  %s4342_s19 = sshll.u32 (%p39_p4), %s382_s17, 5 }
  0x13   : > { %s387_s22 = scalar_lea.vmem (%p39_p4), %s6699_s0, %s4593_s18  ;;  %s384_s23 = scalar_lea.vmem (%p39_p4), [#allocation2], %s4342_s19 }
  0x14   : > { %v421_v0 = vld [vmem:[%s387_s22] sm:$0xff] (%p39_p4)  ;;  %v423_v1 = vld [vmem:[%s387_s22 + $0x10] sm:$0xff] (%p39_p4) }
  0x15   : > { %v425_v2 = vld [vmem:[%s387_s22 + $0x20] sm:$0xff] (%p39_p4)  ;;  %422 = vst [vmem:[%s384_s23] sm:$0xff] (%p39_p4), %v421_v0  ;;  %424 = vst [vmem:[%s384_s23 + $0x8] sm:$0xff] (%p39_p4), %v423_v1  ;;  %v427_v3 = vld [vmem:[%s387_s22 + $0x30] sm:$0xff] (%p39_p4) }
  0x16   : > { %426 = vst [vmem:[%s384_s23 + $0x10] sm:$0xff] (%p39_p4), %v425_v2  ;;  %428 = vst [vmem:[%s384_s23 + $0x18] sm:$0xff] (%p39_p4), %v427_v3 }
  0x18 PF: > { %p4345_p7 = scmp.ge.s32.totalorder %s5119_s27, 1  ;;  %p433_p8 = scmp.lt.s32.totalorder %s5119_s27, 3 }
  0x1a   : > { %p434_p9 = pnand %p4345_p7, %p433_p8 }
  0x1b   : > { %s440_s24 = sand.u32 (!%p434_p9), 1, %s5111_s25   ;;  %s5121_s17 = smov (!%p434_p9), 1   ;;  %v4890_v14 = vld [vmem:[%s6700_s1 + $0x4] ss:$8 sps:$4 sm:$0xff] (!%p434_p9)   ;;  %vm880_vm0 = vcmask (!%p434_p9), 97280   ;;  %v5125_v17 = vmov (!%p434_p9), 0  }
  0x1c   : > { %437 = sbr.rel (%p434_p9) target bundleno = 2836 (0xb14), region = 106  ;;  %s5244_s30 = sshll.u32 (!%p434_p9), %s440_s24, 5  ;;  %4381 = vmatprep.mubr.msk.bf16.mxu0 (!%p434_p9), %vm880_vm0, %v4890_v14  ;;  %v658_v15 = vld [vmem:[%s6701_s2] sm:$0xff] (!%p434_p9)  ;;  %v659_v16 = vld [vmem:[%s6701_s2 + $0x8] sm:$0xff] (!%p434_p9)  ;;  %4771 = vset.pattern.permute.xlu0 (!%p434_p9), %v5125_v17  ;;  %v660_v20 = vld [vmem:[%s6701_s2 + $0x10] sm:$0xff] (!%p434_p9)  ;;  %vm533_vm1 = vcmask (!%p434_p9), 7168  }
  0x1d   : > { %s442_s14 = scalar_lea.vmem (!%p434_p9), [#allocation2], %s5244_s30  ;;  %s5122_s18 = smov (!%p434_p9), 2   ;;  %4772 = vset.pattern.permute.xlu1 (!%p434_p9), %v5125_v17  ;;  %v661_v21 = vld [vmem:[%s6701_s2 + $0x18] sm:$0xff] (!%p434_p9)  ;;  %vm513_vm2 = vcmask (!%p434_p9), 15360   ;;  %v662_v24 = vld [vmem:[%s6701_s2 + $0x20] sm:$0xff] (!%p434_p9)  ;;  %v663_v29 = vld [vmem:[%s6701_s2 + $0x28] sm:$0xff] (!%p434_p9) }
  0x1e   : > { %v5247_v4 = vld [vmem:[%s442_s14] sm:$0xff] (!%p434_p9)  ;;  %v5249_v5 = vld [vmem:[%s442_s14 + $0x8] sm:$0xff] (!%p434_p9)  ;;  %v5253_v7 = vld [vmem:[%s442_s14 + $0x10] sm:$0xff] (!%p434_p9)  ;;  %s5123_s25 = smov (!%p434_p9), 127   ;;  %s5124_s19 = smov (!%p434_p9), 126   ;;  %vm583_vm3 = vcmask (!%p434_p9), 1045504  }
  0x1f   : > { %v4348_v6 = vcombine.high (!%p434_p9), %v5247_v4, %v5249_v5  ;;  %v5255_v8 = vld [vmem:[%s442_s14 + $0x18] sm:$0x33] (!%p434_p9)  ;;  %v4350_v9 = vcombine.low (!%p434_p9), %v5247_v4, %v5249_v5  ;;  %v4355_v12 = vcombine.high (!%p434_p9), %v5249_v5, %v5253_v7  ;;  %v4354_v13 = vcombine.low (!%p434_p9), %v5249_v5, %v5253_v7  ;;  %v664_v34 = vld [vmem:[%s6701_s2 + $0x30] sm:$0xff] (!%p434_p9)  ;;  %v666_v42 = vld [vmem:[%s6701_s2 + $0x40] sm:$0xff] (!%p434_p9)  ;;  %s5127_s22 = smov (!%p434_p9), 122   ;;  %s6714_s23 = smov (!%p434_p9), 120  }
  0x20   : > { %v4351_v10 = vcombine.low (!%p434_p9), %v5253_v7, %v5255_v8  ;;  %v4349_v11 = vcombine.high (!%p434_p9), %v5253_v7, %v5255_v8  ;;  %v665_v37 = vld [vmem:[%s6701_s2 + $0x38] sm:$0xff] (!%p434_p9)  ;;  %v667_v45 = vld [vmem:[%s6701_s2 + $0x48] sm:$0xff] (!%p434_p9)  ;;  %v4353_v48 = vcombine.high (!%p434_p9), %v5247_v4, %v5247_v4  ;;  %vm551_vm4 = vcmask (!%p434_p9), 1039360   ;;  %v668_v53 = vld [vmem:[%s6701_s2 + $0x50] sm:$0xff] (!%p434_p9)  ;;  %s6720_s28 = smov (!%p434_p9), 120   ;;  %s5130_s21 = smov (!%p434_p9), 112  }
  0x21   : > { %525 = vrot.lane.b32.xlu1 (!%p434_p9), %v4348_v6, %s5121_s17  ;;  %499 = vrot.lane.b32.xlu0 (!%p434_p9), %v4348_v6, %s5122_s18  ;;  %vm619_vm5 = vcmask (!%p434_p9), 1043456   ;;  %v4352_v55 = vcombine.low (!%p434_p9), %v5247_v4, %v5247_v4  ;;  %v669_v56 = vld [vmem:[%s6701_s2 + $0x58] sm:$0xff] (!%p434_p9)  ;;  %v4357_v62 = vcombine.high (!%p434_p9), %v5255_v8, %v5255_v8  ;;  %v670_v63 = vld [vmem:[%s6701_s2 + $0x60] sm:$0xff] (!%p434_p9)  ;;  %vm602_vm6 = vcmask (!%p434_p9), 1041408   ;;  %s481_s20 = scalar_lea.vmem (!%p434_p9), [#allocation3], %s5244_s30 }
  0x22   : > { %v671_v1 = vld [vmem:[%s6701_s2 + $0x68] sm:$0xff] (!%p434_p9)  ;;  %v4356_v4 = vcombine.low (!%p434_p9), %v5255_v8, %v5255_v8  ;;  %vm569_vm7 = vcmask (!%p434_p9), 1031168   ;;  %vm1144_vm8 = vcmask (!%p434_p9), 326656   ;;  %vm1715_vm9 = vcmask (!%p434_p9), 1014784  }
  0x23   : > { %vm1765_vm10 = vcmask 998400   ;;  %vm1815_vm11 = vcmask 982016   ;;  %vm2336_vm12 = vcmask 293888   ;;  %vm2713_vm13 = vcmask 261120  }
  0x24   : > { %vm3276_vm14 = vcmask 949248   ;;  %vm3328_vm15 = vcmask 916480  }
  0x25   : > { %529 = vrot.lane.b32.xlu1 %v4350_v9, %s5121_s17  ;;  %509 = vrot.lane.b32.xlu0 %v4350_v9, %s5122_s18 }
  0x29   : > { %511 = vrot.lane.b32.xlu1 %v4351_v10, %s5122_s18  ;;  %501 = vrot.lane.b32.xlu0 %v4349_v11, %s5122_s18 }
  0x2d   : > { %531 = vrot.lane.b32.xlu1 %v4351_v10, %s5121_s17  ;;  %527 = vrot.lane.b32.xlu0 %v4349_v11, %s5121_s17 }
  0x31   : > { %545 = vrot.lane.b32.xlu1 %v4348_v6, %s5123_s25  ;;  %543 = vrot.lane.b32.xlu0 %v4350_v9, %s5123_s25 }
  0x35   : > { %549 = vrot.lane.b32.xlu1 %v4349_v11, %s5123_s25  ;;  %547 = vrot.lane.b32.xlu0 %v4351_v10, %s5123_s25 }
  0x39   : > { %563 = vrot.lane.b32.xlu1 %v4348_v6, %s5124_s19  ;;  %561 = vrot.lane.b32.xlu0 %v4350_v9, %s5124_s19  ;;  %v672_v9 = vld [vmem:[%s6701_s2 + $0x70] sm:$0xff] }
  0x3d   : > { %567 = vrot.lane.b32.xlu1 %v4349_v11, %s5124_s19  ;;  %565 = vrot.lane.b32.xlu0 %v4351_v10, %s5124_s19  ;;  %v673_v10 = vld [vmem:[%s6701_s2 + $0x78] sm:$0xff] }
  0x41   : > { %681 = vperm.xlu0 %4771, %v658_v15   ;;  %686 = vperm.xlu1 %4772, %v659_v16   ;;  %v674_v16 = vld [vmem:[%s6701_s2 + $0x80] sm:$0xff] }
  0x45   : > { %691 = vperm.xlu1 %4772, %v660_v20   ;;  %696 = vperm.xlu0 %4771, %v661_v21  }
  0x49   : > { %701 = vperm.xlu1 %4772, %v662_v24   ;;  %706 = vperm.xlu0 %4771, %v663_v29   ;;  %v4888_v29 = vld [vmem:[%s6700_s1] ss:$8 sps:$4 sm:$0xff]  }
  0x4d   : > { %711 = vperm.xlu1 %4772, %v664_v34   ;;  %716 = vperm.xlu0 %4771, %v665_v37   ;;  %v4897_v34 = vld [vmem:[%s6700_s1 + $0x34] ss:$8 sps:$4 sm:$0xff]   ;;  %v4902_v37 = vld [vmem:[%s6700_s1 + $0x40] ss:$8 sps:$4 sm:$0xff]  }
  0x51   : > { %721 = vperm.xlu1 %4772, %v666_v42   ;;  %726 = vperm.xlu0 %4771, %v667_v45   ;;  %v4909_v42 = vld [vmem:[%s6700_s1 + $0x74] ss:$8 sps:$4 sm:$0xff]   ;;  %v4914_v45 = vld [vmem:[%s6700_s1 + $0x80] ss:$8 sps:$4 sm:$0xff]  }
  0x55   : > { %731 = vperm.xlu1 %4772, %v668_v53   ;;  %736 = vperm.xlu0 %4771, %v669_v56  }
  0x59   : > { %741 = vperm.xlu1 %4772, %v670_v63   ;;  %746 = vperm.xlu0 %4771, %v671_v1  }
  0x5d   : > { %751 = vperm.xlu1 %4772, %v672_v9   ;;  %756 = vperm.xlu0 %4771, %v673_v10  }
  0x61   : > { %761 = vperm.xlu1 %4772, %v674_v16  }
  0x93   : > { %v526_v18 = vpop.permute.xlu1 %525  ;;  %v500_v19 = vpop.permute.xlu0 %499 }
  0x97   : > { %v530_v22 = vpop.permute.xlu1 %529  ;;  %v510_v23 = vpop.permute.xlu0 %509 }
  0x98   : > { %v534_v25 = vsel %vm533_vm1, %v530_v22, %v526_v18  ;;  %v539_v26 = vsel %vm533_vm1, %v526_v18, %v530_v22  ;;  %v514_v27 = vsel %vm513_vm2, %v510_v23, %v500_v19  ;;  %v520_v28 = vsel %vm513_vm2, %v500_v19, %v510_v23  ;;  %v675_v19 = vld [vmem:[%s6701_s2 + $0x88] sm:$0xff]  ;;  %v677_v23 = vld [vmem:[%s6701_s2 + $0x98] sm:$0xff] }
  0x99   : > { %919 = vmatprep.subr.bf16.mxu0 %v514_v27  ;;  %v584_v30 = vrot.slane %v539_v26, 2  ;;  %v585_v31 = vrot.slane %v534_v25, 2  ;;  %766 = vperm.xlu0 %4771, %v675_v19   ;;  %v678_v27 = vld [vmem:[%s6701_s2 + $0xa0] sm:$0xff] }
  0x9a   : > { %920 = vmatpush1.bf16.msra.mxu0 %v520_v28 }
  0x9b   : > { %v512_v32 = vpop.permute.xlu1 %511  ;;  %v502_v33 = vpop.permute.xlu0 %501 }
  0x9c   : > { %v515_v35 = vsel %vm513_vm2, %v512_v32, %v502_v33  ;;  %v524_v36 = vsel %vm513_vm2, %v502_v33, %v512_v32  ;;  %v4894_v32 = vld [vmem:[%s6700_s1 + $0x24] ss:$8 sps:$4 sm:$0xff]   ;;  %v4896_v33 = vld [vmem:[%s6700_s1 + $0x20] ss:$8 sps:$4 sm:$0xff]  }
  0x9d   : > { %v617_v38 = vsel %vm583_vm3, %v515_v35, %v585_v31  ;;  %v613_v39 = vsel %vm583_vm3, %v524_v36, %v584_v30  ;;  %776 = vperm.xlu0 %4771, %v677_v23   ;;  %v4899_v35 = vld [vmem:[%s6700_s1 + $0x30] ss:$8 sps:$4 sm:$0xff]   ;;  %v4900_v36 = vld [vmem:[%s6700_s1 + $0x44] ss:$8 sps:$4 sm:$0xff]  }
  0x9e   : > { %921 = vmatprep.subr.bf16.mxu0 %v617_v38  ;;  %v4903_v38 = vld [vmem:[%s6700_s1 + $0x54] ss:$8 sps:$4 sm:$0xff]  }
  0x9f   : > { %v532_v40 = vpop.permute.xlu1 %531  ;;  %922 = vmatpush1.bf16.msra.mxu0 %v613_v39  ;;  %v528_v41 = vpop.permute.xlu0 %527  ;;  %v4905_v39 = vld [vmem:[%s6700_s1 + $0x50] ss:$8 sps:$4 sm:$0xff]  }
  0xa0   : > { %v535_v43 = vsel %vm533_vm1, %v532_v40, %v528_v41  ;;  %v542_v44 = vsel %vm533_vm1, %v528_v41, %v532_v40  ;;  %v4906_v40 = vld [vmem:[%s6700_s1 + $0x64] ss:$8 sps:$4 sm:$0xff]   ;;  %v4908_v41 = vld [vmem:[%s6700_s1 + $0x60] ss:$8 sps:$4 sm:$0xff]   ;;  %vm4192_vm1 = vcmask 687104  }
  0xa1   : > { %v586_v46 = vrot.slane %v542_v44, 2  ;;  %v588_v47 = vrot.slane %v535_v43, 2  ;;  %v4911_v43 = vld [vmem:[%s6700_s1 + $0x70] ss:$8 sps:$4 sm:$0xff]   ;;  %v4912_v44 = vld [vmem:[%s6700_s1 + $0x84] ss:$8 sps:$4 sm:$0xff]  }
  0xa3   : > { %v589_v49 = vsel %vm583_vm3, %v585_v31, %v588_v47  ;;  %v587_v50 = vsel %vm583_vm3, %v584_v30, %v586_v46  ;;  %v546_v51 = vpop.permute.xlu1 %545  ;;  %v544_v52 = vpop.permute.xlu0 %543  ;;  %v626_v57 = vsel %vm619_vm5, %v588_v47, %v4353_v48  ;;  %v622_v0 = vsel %vm619_vm5, %v586_v46, %v4352_v55  ;;  %v4891_v30 = vld [vmem:[%s6700_s1 + $0x14] ss:$8 sps:$4 sm:$0xff]   ;;  %v4893_v31 = vld [vmem:[%s6700_s1 + $0x10] ss:$8 sps:$4 sm:$0xff]   ;;  %v657_v47 = vld [vmem:[%s6700_s1 + $0xa0] sm:$0xff] }
  0xa4   : > { %923 = vmatprep.subr.bf16.mxu0 %v589_v49  ;;  %v557_v54 = vsel %vm551_vm4, %v546_v51, %v544_v52  ;;  %v552_v58 = vsel %vm551_vm4, %v544_v52, %v546_v51  ;;  %v4915_v46 = vld [vmem:[%s6700_s1 + $0x94] ss:$8 sps:$4 sm:$0xff]   ;;  %v4917_v48 = vld [vmem:[%s6700_s1 + $0x90] ss:$8 sps:$4 sm:$0xff]   ;;  %v4379_v49 = vcombine.high %v657_v47, %v657_v47  ;;  %v4922_v51 = vld [vmem:[%s6702_s3 + $0x4] ss:$8 sps:$4 sm:$0xff]  }
  0xa5   : > { %924 = vmatpush1.bf16.msra.mxu0 %v587_v50  ;;  %v604_v59 = vrot.slane %v557_v54, 6  ;;  %v603_v2 = vrot.slane %v552_v58, 6  ;;  %v4378_v50 = vcombine.low %v657_v47, %v657_v47  ;;  %4405 = vmatprep.mubr.msk.bf16.mxu1 %vm1144_vm8, %v4922_v51 }
  0xa6   : > { %925 = vmatprep.subr.bf16.mxu0 %v626_v57 }
  0xa7   : > { %v550_v60 = vpop.permute.xlu1 %549  ;;  %v548_v61 = vpop.permute.xlu0 %547  ;;  %v635_v6 = vsel %vm602_vm6, %v4357_v62, %v604_v59  ;;  %v631_v8 = vsel %vm602_vm6, %v4356_v4, %v603_v2 }
  0xa8   : > { %v560_v3 = vsel %vm551_vm4, %v550_v60, %v548_v61  ;;  %v553_v11 = vsel %vm551_vm4, %v548_v61, %v550_v60 }
  0xa9   : > { %926 = vmatpush1.bf16.msra.mxu0 %v622_v0  ;;  %v607_v14 = vrot.slane %v560_v3, 6  ;;  %v605_v18 = vrot.slane %v553_v11, 6 }
  0xaa   : > { %927 = vmatprep.subr.bf16.mxu0 %v4355_v12 }
  0xab   : > { %v564_v12 = vpop.permute.xlu1 %563  ;;  %v562_v15 = vpop.permute.xlu0 %561  ;;  %v608_v5 = vsel %vm602_vm6, %v604_v59, %v607_v14  ;;  %v606_v20 = vsel %vm602_vm6, %v603_v2, %v605_v18 }
  0xac   : > { %v576_v7 = vsel %vm569_vm7, %v564_v12, %v562_v15  ;;  %v570_v24 = vsel %vm569_vm7, %v562_v15, %v564_v12 }
  0xad   : > { %928 = vmatpush1.bf16.msra.mxu0 %v4354_v13  ;;  %v676_v13 = vld [vmem:[%s6701_s2 + $0x90] sm:$0xff] }
  0xae   : > { %929 = vmatprep.subr.bf16.mxu0 %v635_v6  ;;  %771 = vperm.xlu1 %4772, %v676_v13  }
  0xaf   : > { %v568_v21 = vpop.permute.xlu1 %567  ;;  %v566_v22 = vpop.permute.xlu0 %565 }
  0xb0   : > { %v580_v25 = vsel %vm569_vm7, %v568_v21, %v566_v22  ;;  %v571_v26 = vsel %vm569_vm7, %v566_v22, %v568_v21 }
  0xb1   : > { %930 = vmatpush1.bf16.msra.mxu0 %v631_v8  ;;  %v915_v28 = vsel %vm583_vm3, %v571_v26, 0 }
  0xb2   : > { %931 = vmatprep.subr.bf16.mxu0 %v608_v5  ;;  %781 = vperm.xlu1 %4772, %v678_v27  }
  0xb5   : > { %932 = vmatpush1.bf16.msra.mxu0 %v606_v20 }
  0xb6   : > { %933 = vmatprep.subr.bf16.mxu0 %v576_v7 }
  0xb9   : > { %934 = vmatpush1.bf16.msra.mxu0 %v570_v24 }
  0xba   : > { %4380 = vmatprep.subr.msk.bf16.mxu0 %vm583_vm3, %v580_v25 }
  0xbd   : > { %936 = vmatpush1.bf16.msra.mxu0 %v915_v28 }
  0xc0   : > { %952 = vmatmul.mubr.bf16.vlgmr.msra.gmra.mrb[0].mxu0 %v4888_v29  ;;  %v682_v52 = vpop.permute.xlu0 %681  ;;  %v687_v54 = vpop.permute.xlu1 %686 }
  0xc1   : > { %4382 = vmatprep.mubr.msk.bf16.mxu0 %vm880_vm0, %v4891_v30 }
  0xc4   : > { %v697_v1 = vpop.permute.xlu0 %696  ;;  %v692_v3 = vpop.permute.xlu1 %691 }
  0xc8   : > { %962 = vmatmul.mubr.bf16.gmra.mrb[4].mxu0 %v4893_v31  ;;  %v702_v16 = vpop.permute.xlu1 %701  ;;  %v707_v19 = vpop.permute.xlu0 %706 }
  0xc9   : > { %4383 = vmatprep.mubr.msk.bf16.mxu0 %vm880_vm0, %v4894_v32 }
  0xcc   : > { %v712_v26 = vpop.permute.xlu1 %711  ;;  %v717_v28 = vpop.permute.xlu0 %716 }
  0xd0   : > { %972 = vmatmul.mubr.bf16.gmra.mrb[8].mxu0 %v4896_v33 }
  0xd1   : > { %4384 = vmatprep.mubr.msk.bf16.mxu0 %vm880_vm0, %v4897_v34 }
  0xd8   : > { %982 = vmatmul.mubr.bf16.gmra.mrb[12].mxu0 %v4899_v35 }
  0xd9   : > { %4385 = vmatprep.mubr.msk.bf16.mxu0 %vm880_vm0, %v4900_v36 }
  0xe0   : > { %992 = vmatmul.mubr.bf16.gmra.mrb[16].mxu0 %v4902_v37 }
  0xe1   : > { %4386 = vmatprep.mubr.msk.bf16.mxu0 %vm880_vm0, %v4903_v38  ;;  %v722_v38 = vpop.permute.xlu1 %721 }
  0xe8   : > { %1002 = vmatmul.mubr.bf16.gmra.mrb[20].mxu0 %v4905_v39 }
  0xe9   : > { %4387 = vmatprep.mubr.msk.bf16.mxu0 %vm880_vm0, %v4906_v40  ;;  %v727_v40 = vpop.permute.xlu0 %726 }
  0xf0   : > { %1012 = vmatmul.mubr.bf16.gmra.mrb[24].mxu0 %v4908_v41 }
  0xf1   : > { %4388 = vmatprep.mubr.msk.bf16.mxu0 %vm880_vm0, %v4909_v42 }
  0xf8   : > { %1022 = vmatmul.mubr.bf16.gmra.mrb[28].mxu0 %v4911_v43 }
  0xf9   : > { %4389 = vmatprep.mubr.msk.bf16.mxu0 %vm880_vm0, %v4912_v44 }
 0x100   : > { %1032 = vmatmul.mubr.bf16.gmra.mrb[32].mxu0 %v4914_v45 }
 0x101   : > { %4390 = vmatprep.mubr.msk.bf16.mxu0 %vm880_vm0, %v4915_v46 }
 0x108   : > { %1042 = vmatmul.mubr.bf16.gmra.mrb[36].mxu0 %v4917_v48 }
 0x109   : > { %4391 = vmatprep.mubr.msk.bf16.mxu0 %vm880_vm0, %v4379_v49  ;;  %vm3626_vm0 = vcmask 130048  }
 0x110   : > { %1052 = vmatmul.mubr.bf16.gmra.mrb[40].mxu0 %v4378_v50  ;;  %v732_v50 = vpop.permute.xlu1 %731 }
 0x193   : > { %v953_v53 = vpop.f32.mrb[0].mxu0 }
 0x194   : > { %v955_v55 = vpop.f32.mrb[1].mxu0  ;;  %v954_v59 = vadd.f32 %v953_v53, %v682_v52 }
 0x195   : > { %v957_v56 = vpop.f32.mrb[2].mxu0  ;;  %v956_v60 = vadd.f32 %v955_v55, %v682_v52  ;;  %v737_v52 = vpop.permute.xlu0 %736 }
 0x196   : > { %v958_v57 = vadd.f32 %v957_v56, %v687_v54  ;;  %v959_v58 = vpop.f32.mrb[3].mxu0 }
 0x197   : > { %v960_v61 = vadd.f32 %v959_v58, %v687_v54 }
 0x198   : > { %v5460_v62 = vpack.c.bf16 %v958_v57, %v954_v59 }
 0x199   : > { %v5462_v63 = vpack.c.bf16 %v960_v61, %v956_v60 }
 0x19b   : > { %v963_v0 = vpop.f32.mrb[4].mxu0  ;;  %1169 = vmatprep.subr.bf16.mxu1 %v5462_v63 }
 0x19c   : > { %v965_v2 = vpop.f32.mrb[5].mxu0  ;;  %1170 = vmatpush1.bf16.msra.mxu1 %v5460_v62  ;;  %v964_v6 = vadd.f32 %v963_v0, %v692_v3  ;;  %v742_v0 = vpop.permute.xlu1 %741 }
 0x19d   : > { %v967_v4 = vpop.f32.mrb[6].mxu0  ;;  %v966_v11 = vadd.f32 %v965_v2, %v692_v3  ;;  %v747_v2 = vpop.permute.xlu0 %746 }
 0x19e   : > { %v968_v9 = vadd.f32 %v967_v4, %v697_v1  ;;  %v969_v10 = vpop.f32.mrb[7].mxu0 }
 0x19f   : > { %v970_v14 = vadd.f32 %v969_v10, %v697_v1 }
 0x1a0   : > { %v5466_v8 = vpack.c.bf16 %v968_v9, %v964_v6 }
 0x1a1   : > { %v5468_v12 = vpack.c.bf16 %v970_v14, %v966_v11 }
 0x1a3   : > { %v973_v15 = vpop.f32.mrb[8].mxu0  ;;  %1171 = vmatprep.subr.bf16.mxu1 %v5468_v12 }
 0x1a4   : > { %v975_v18 = vpop.f32.mrb[9].mxu0  ;;  %1172 = vmatpush1.bf16.msra.mxu1 %v5466_v8  ;;  %v974_v7 = vadd.f32 %v973_v15, %v702_v16 }
 0x1a5   : > { %v977_v5 = vpop.f32.mrb[10].mxu0  ;;  %v976_v21 = vadd.f32 %v975_v18, %v702_v16  ;;  %v752_v18 = vpop.permute.xlu1 %751 }
 0x1a6   : > { %v978_v13 = vadd.f32 %v977_v5, %v707_v19  ;;  %v979_v20 = vpop.f32.mrb[11].mxu0  ;;  %v757_v5 = vpop.permute.xlu0 %756 }
 0x1a7   : > { %v980_v22 = vadd.f32 %v979_v20, %v707_v19 }
 0x1a8   : > { %v5472_v23 = vpack.c.bf16 %v978_v13, %v974_v7 }
 0x1a9   : > { %v5474_v24 = vpack.c.bf16 %v980_v22, %v976_v21 }
 0x1ab   : > { %v983_v25 = vpop.f32.mrb[12].mxu0  ;;  %1173 = vmatprep.subr.bf16.mxu1 %v5474_v24 }
 0x1ac   : > { %v985_v27 = vpop.f32.mrb[13].mxu0  ;;  %1174 = vmatpush1.bf16.msra.mxu1 %v5472_v23  ;;  %v984_v30 = vadd.f32 %v983_v25, %v712_v26 }
 0x1ad   : > { %v987_v29 = vpop.f32.mrb[14].mxu0  ;;  %v986_v33 = vadd.f32 %v985_v27, %v712_v26 }
 0x1ae   : > { %v988_v31 = vadd.f32 %v987_v29, %v717_v28  ;;  %v989_v32 = vpop.f32.mrb[15].mxu0  ;;  %v762_v29 = vpop.permute.xlu1 %761 }
 0x1af   : > { %v990_v34 = vadd.f32 %v989_v32, %v717_v28 }
 0x1b0   : > { %v5478_v35 = vpack.c.bf16 %v988_v31, %v984_v30  ;;  %v767_v31 = vpop.permute.xlu0 %766 }
 0x1b1   : > { %v5480_v36 = vpack.c.bf16 %v990_v34, %v986_v33 }
 0x1b3   : > { %v993_v37 = vpop.f32.mrb[16].mxu0  ;;  %1175 = vmatprep.subr.bf16.mxu1 %v5480_v36 }
 0x1b4   : > { %v995_v39 = vpop.f32.mrb[17].mxu0  ;;  %1176 = vmatpush1.bf16.msra.mxu1 %v5478_v35  ;;  %v994_v42 = vadd.f32 %v993_v37, %v722_v38 }
 0x1b5   : > { %v997_v41 = vpop.f32.mrb[18].mxu0  ;;  %v996_v45 = vadd.f32 %v995_v39, %v722_v38 }
 0x1b6   : > { %v998_v43 = vadd.f32 %v997_v41, %v727_v40  ;;  %v999_v44 = vpop.f32.mrb[19].mxu0 }
 0x1b7   : > { %v1000_v46 = vadd.f32 %v999_v44, %v727_v40 }
 0x1b8   : > { %v5484_v47 = vpack.c.bf16 %v998_v43, %v994_v42  ;;  %v772_v43 = vpop.permute.xlu1 %771 }
 0x1b9   : > { %v5486_v48 = vpack.c.bf16 %v1000_v46, %v996_v45  ;;  %v777_v45 = vpop.permute.xlu0 %776 }
 0x1bb   : > { %v1003_v49 = vpop.f32.mrb[20].mxu0  ;;  %1177 = vmatprep.subr.bf16.mxu1 %v5486_v48 }
 0x1bc   : > { %v1005_v51 = vpop.f32.mrb[21].mxu0  ;;  %1178 = vmatpush1.bf16.msra.mxu1 %v5484_v47  ;;  %v1004_v54 = vadd.f32 %v1003_v49, %v732_v50 }
 0x1bd   : > { %v1007_v53 = vpop.f32.mrb[22].mxu0  ;;  %v1006_v57 = vadd.f32 %v1005_v51, %v732_v50 }
 0x1be   : > { %v1008_v55 = vadd.f32 %v1007_v53, %v737_v52  ;;  %v1009_v56 = vpop.f32.mrb[23].mxu0 }
 0x1bf   : > { %v1010_v58 = vadd.f32 %v1009_v56, %v737_v52  ;;  %v782_v56 = vpop.permute.xlu1 %781 }
 0x1c0   : > { %v5490_v59 = vpack.c.bf16 %v1008_v55, %v1004_v54 }
 0x1c1   : > { %v5492_v60 = vpack.c.bf16 %v1010_v58, %v1006_v57 }
 0x1c3   : > { %v1013_v61 = vpop.f32.mrb[24].mxu0  ;;  %1179 = vmatprep.subr.bf16.mxu1 %v5492_v60 }
 0x1c4   : > { %v1015_v1 = vpop.f32.mrb[25].mxu0  ;;  %1180 = vmatpush1.bf16.msra.mxu1 %v5490_v59  ;;  %v1014_v4 = vadd.f32 %v1013_v61, %v742_v0 }
 0x1c5   : > { %v1017_v3 = vpop.f32.mrb[26].mxu0  ;;  %v1016_v10 = vadd.f32 %v1015_v1, %v742_v0 }
 0x1c6   : > { %v1018_v6 = vadd.f32 %v1017_v3, %v747_v2  ;;  %v1019_v9 = vpop.f32.mrb[27].mxu0 }
 0x1c7   : > { %v1020_v11 = vadd.f32 %v1019_v9, %v747_v2  ;;  %v4920_v9 = vld [vmem:[%s6702_s3] ss:$8 sps:$4 sm:$0xff]  }
 0x1c8   : > { %v5496_v14 = vpack.c.bf16 %v1018_v6, %v1014_v4 }
 0x1c9   : > { %v5498_v15 = vpack.c.bf16 %v1020_v11, %v1016_v10  ;;  %v4923_v10 = vld [vmem:[%s6702_s3 + $0x14] ss:$8 sps:$4 sm:$0xff]   ;;  %v4925_v11 = vld [vmem:[%s6702_s3 + $0x10] ss:$8 sps:$4 sm:$0xff]  }
 0x1cb   : > { %v1023_v16 = vpop.f32.mrb[28].mxu0  ;;  %1181 = vmatprep.subr.bf16.mxu1 %v5498_v15 }
 0x1cc   : > { %v1025_v19 = vpop.f32.mrb[29].mxu0  ;;  %1182 = vmatpush1.bf16.msra.mxu1 %v5496_v14  ;;  %v1024_v13 = vadd.f32 %v1023_v16, %v752_v18  ;;  %v4926_v16 = vld [vmem:[%s6702_s3 + $0x24] ss:$8 sps:$4 sm:$0xff]  }
 0x1cd   : > { %v1027_v7 = vpop.f32.mrb[30].mxu0  ;;  %v1026_v22 = vadd.f32 %v1025_v19, %v752_v18  ;;  %v4946_v18 = vld [vmem:[%s6702_s3 + $0x8c] ss:$8 sps:$4 sm:$0xff]   ;;  %v4948_v19 = vld [vmem:[%s6702_s3 + $0x88] ss:$8 sps:$4 sm:$0xff]  }
 0x1ce   : > { %v1028_v20 = vadd.f32 %v1027_v7, %v757_v5  ;;  %v1029_v21 = vpop.f32.mrb[31].mxu0  ;;  %v4421_v7 = vld [vmem:[%s6702_s3 + $0xa8] sm:$0x33] }
 0x1cf   : > { %v1030_v25 = vadd.f32 %v1029_v21, %v757_v5  ;;  %v4949_v5 = vld [vmem:[%s6702_s3 + $0x9c] ss:$8 sps:$4 sm:$0xff]   ;;  %v4432_v21 = vcombine.low %v4421_v7, %v4421_v7 }
 0x1d0   : > { %v5502_v26 = vpack.c.bf16 %v1028_v20, %v1024_v13  ;;  %v4951_v13 = vld [vmem:[%s6702_s3 + $0x98] ss:$8 sps:$4 sm:$0xff]   ;;  %v4433_v20 = vcombine.high %v4421_v7, %v4421_v7 }
 0x1d1   : > { %v5504_v27 = vpack.c.bf16 %v1030_v25, %v1026_v22 }
 0x1d3   : > { %v1033_v28 = vpop.f32.mrb[32].mxu0  ;;  %1183 = vmatprep.subr.bf16.mxu1 %v5504_v27 }
 0x1d4   : > { %v1035_v30 = vpop.f32.mrb[33].mxu0  ;;  %1184 = vmatpush1.bf16.msra.mxu1 %v5502_v26  ;;  %v1034_v33 = vadd.f32 %v1033_v28, %v762_v29 }
 0x1d5   : > { %v1037_v32 = vpop.f32.mrb[34].mxu0  ;;  %v1036_v38 = vadd.f32 %v1035_v30, %v762_v29 }
 0x1d6   : > { %v1038_v34 = vadd.f32 %v1037_v32, %v767_v31  ;;  %v1039_v37 = vpop.f32.mrb[35].mxu0 }
 0x1d7   : > { %v1040_v39 = vadd.f32 %v1039_v37, %v767_v31 }
 0x1d8   : > { %v5508_v40 = vpack.c.bf16 %v1038_v34, %v1034_v33 }
 0x1d9   : > { %v5510_v41 = vpack.c.bf16 %v1040_v39, %v1036_v38 }
 0x1db   : > { %v1043_v42 = vpop.f32.mrb[36].mxu0  ;;  %1185 = vmatprep.subr.bf16.mxu1 %v5510_v41 }
 0x1dc   : > { %v1045_v44 = vpop.f32.mrb[37].mxu0  ;;  %1186 = vmatpush1.bf16.msra.mxu1 %v5508_v40  ;;  %v1044_v49 = vadd.f32 %v1043_v42, %v772_v43 }
 0x1dd   : > { %v1047_v46 = vpop.f32.mrb[38].mxu0  ;;  %v1046_v52 = vadd.f32 %v1045_v44, %v772_v43 }
 0x1de   : > { %v1048_v50 = vadd.f32 %v1047_v46, %v777_v45  ;;  %v1049_v51 = vpop.f32.mrb[39].mxu0 }
 0x1df   : > { %v1050_v53 = vadd.f32 %v1049_v51, %v777_v45 }
 0x1e0   : > { %v1078_v54 = vpack.c.bf16 %v1048_v50, %v1044_v49 }
 0x1e1   : > { %v1079_v55 = vpack.c.bf16 %v1050_v53, %v1046_v52 }
 0x1e3   : > { %v1053_v57 = vpop.f32.mrb[40].mxu0  ;;  %1187 = vmatprep.subr.bf16.mxu1 %v1079_v55 }
 0x1e4   : > { %v1054_v58 = vadd.f32 %v1053_v57, %v782_v56  ;;  %v1055_v61 = vpop.f32.mrb[41].mxu0  ;;  %1188 = vmatpush1.bf16.msra.mxu1 %v1078_v54 }
 0x1e5   : > { %v1056_v0 = vadd.f32 %v1055_v61, %v782_v56  ;;  %v1057_v1 = vpop.f32.mrb[42].mxu0 }
 0x1e6   : > { %v1080_v2 = vpack.c.bf16 %v1054_v58, %v1054_v58  ;;  %v1058_v3 = vpop.f32.mrb[43].mxu0 }
 0x1e7   : > { %v1081_v4 = vpack.c.bf16 %v1056_v0, %v1056_v0 }
 0x1e8   : > { %v1164_v6 = vsel %vm619_vm5, %v1080_v2, 0 }
 0x1e9   : > { %4404 = vmatprep.subr.msk.bf16.mxu1 %vm619_vm5, %v1081_v4 }
 0x1ea   : > { %1190 = vmatpush1.bf16.msra.mxu1 %v1164_v6 }
 0x1eb   : > { %1341 = vmatprep.subr.bf16.mxu1 %v5462_v63  ;;  %v4929_v63 = vld [vmem:[%s6702_s3 + $0x34] ss:$8 sps:$4 sm:$0xff]  }
 0x1ed   : > { %1202 = vmatmul.mubr.bf16.vlgmr.msra.gmra.mrb[0].mxu1 %v4920_v9 }
 0x1ee   : > { %1342 = vmatpush1.bf16.msra.mxu1 %v5460_v62  ;;  %4406 = vmatprep.mubr.msk.bf16.mxu1 %vm1144_vm8, %v4923_v10  ;;  %v4928_v62 = vld [vmem:[%s6702_s3 + $0x20] ss:$8 sps:$4 sm:$0xff]  }
 0x1ef   : > { %1343 = vmatprep.subr.bf16.mxu1 %v5468_v12  ;;  %v4932_v12 = vld [vmem:[%s6702_s3 + $0x44] ss:$8 sps:$4 sm:$0xff]  }
 0x1f2   : > { %1344 = vmatpush1.bf16.msra.mxu1 %v5466_v8  ;;  %v4931_v8 = vld [vmem:[%s6702_s3 + $0x30] ss:$8 sps:$4 sm:$0xff]  }
 0x1f3   : > { %1345 = vmatprep.subr.bf16.mxu1 %v5474_v24  ;;  %v4934_v24 = vld [vmem:[%s6702_s3 + $0x40] ss:$8 sps:$4 sm:$0xff]  }
 0x1f5   : > { %1212 = vmatmul.mubr.bf16.gmra.mrb[4].mxu1 %v4925_v11 }
 0x1f6   : > { %1346 = vmatpush1.bf16.msra.mxu1 %v5472_v23  ;;  %4407 = vmatprep.mubr.msk.bf16.mxu1 %vm1144_vm8, %v4926_v16  ;;  %v1092_v23 = vld [vmem:[%s6702_s3 + $0x50] sm:$0x33] }
 0x1f7   : > { %1347 = vmatprep.subr.bf16.mxu1 %v5480_v36  ;;  %v4402_v36 = vcombine.low %v1092_v23, %v1092_v23 }
 0x1fa   : > { %1348 = vmatpush1.bf16.msra.mxu1 %v5478_v35  ;;  %v4403_v35 = vcombine.high %v1092_v23, %v1092_v23 }
 0x1fb   : > { %1349 = vmatprep.subr.bf16.mxu1 %v5486_v48  ;;  %v4937_v48 = vld [vmem:[%s6702_s3 + $0x58] ss:$8 sps:$4 sm:$0xff]  }
 0x1fd   : > { %1222 = vmatmul.mubr.bf16.gmra.mrb[8].mxu1 %v4928_v62 }
 0x1fe   : > { %1350 = vmatpush1.bf16.msra.mxu1 %v5484_v47  ;;  %4408 = vmatprep.mubr.msk.bf16.mxu1 %vm1144_vm8, %v4929_v63  ;;  %v4939_v47 = vld [vmem:[%s6702_s3 + $0x5c] ss:$8 sps:$4 sm:$0xff]  }
 0x1ff   : > { %1351 = vmatprep.subr.bf16.mxu1 %v5492_v60  ;;  %v4942_v60 = vld [vmem:[%s6702_s3 + $0x68] ss:$8 sps:$4 sm:$0xff]  }
 0x202   : > { %1352 = vmatpush1.bf16.msra.mxu1 %v5490_v59  ;;  %v4940_v59 = vld [vmem:[%s6702_s3 + $0x6c] ss:$8 sps:$4 sm:$0xff]  }
 0x203   : > { %1353 = vmatprep.subr.bf16.mxu1 %v5498_v15  ;;  %v4945_v15 = vld [vmem:[%s6702_s3 + $0x78] ss:$8 sps:$4 sm:$0xff]  }
 0x205   : > { %1232 = vmatmul.mubr.bf16.gmra.mrb[12].mxu1 %v4931_v8 }
 0x206   : > { %1354 = vmatpush1.bf16.msra.mxu1 %v5496_v14  ;;  %4409 = vmatprep.mubr.msk.bf16.mxu1 %vm1144_vm8, %v4932_v12  ;;  %v4943_v14 = vld [vmem:[%s6702_s3 + $0x7c] ss:$8 sps:$4 sm:$0xff]  }
 0x207   : > { %1355 = vmatprep.subr.bf16.mxu1 %v5504_v27 }
 0x20a   : > { %1356 = vmatpush1.bf16.msra.mxu1 %v5502_v26 }
 0x20b   : > { %1357 = vmatprep.subr.bf16.mxu1 %v5510_v41 }
 0x20d   : > { %1242 = vmatmul.mubr.bf16.gmra.mrb[16].mxu1 %v4934_v24 }
 0x20e   : > { %1358 = vmatpush1.bf16.msra.mxu1 %v5508_v40  ;;  %4410 = vmatprep.mubr.msk.bf16.mxu1 %vm1144_vm8, %v4403_v35 }
 0x20f   : > { %1359 = vmatprep.subr.bf16.mxu1 %v1079_v55 }
 0x212   : > { %1360 = vmatpush1.bf16.msra.mxu1 %v1078_v54 }
 0x213   : > { %4434 = vmatprep.subr.msk.bf16.mxu1 %vm619_vm5, %v1081_v4 }
 0x215   : > { %1252 = vmatmul.mubr.bf16.gmra.mrb[20].mxu1 %v4402_v36 }
 0x216   : > { %1362 = vmatpush1.bf16.msra.mxu1 %v1164_v6  ;;  %4435 = vmatprep.mubr.msk.bf16.mxu1 %vm1144_vm8, %v4939_v47 }
 0x21d   : > { %1374 = vmatmul.mubr.bf16.vlgmr.msra.gmra.mrb[24].mxu1 %v4937_v48 }
 0x21e   : > { %4436 = vmatprep.mubr.msk.bf16.mxu1 %vm1144_vm8, %v4940_v59 }
 0x225   : > { %1384 = vmatmul.mubr.bf16.gmra.mrb[28].mxu1 %v4942_v60 }
 0x226   : > { %4437 = vmatprep.mubr.msk.bf16.mxu1 %vm1144_vm8, %v4943_v14 }
 0x22d   : > { %1394 = vmatmul.mubr.bf16.gmra.mrb[32].mxu1 %v4945_v15 }
 0x22e   : > { %4438 = vmatprep.mubr.msk.bf16.mxu1 %vm1144_vm8, %v4946_v18 }
 0x235   : > { %1404 = vmatmul.mubr.bf16.gmra.mrb[36].mxu1 %v4948_v19 }
 0x236   : > { %4439 = vmatprep.mubr.msk.bf16.mxu1 %vm1144_vm8, %v4949_v5 }
 0x23d   : > { %1414 = vmatmul.mubr.bf16.gmra.mrb[40].mxu1 %v4951_v13 }
 0x23e   : > { %4440 = vmatprep.mubr.msk.bf16.mxu1 %vm1144_vm8, %v4433_v20 }
 0x245   : > { %1424 = vmatmul.mubr.bf16.gmra.mrb[44].mxu1 %v4432_v21 }
 0x2c0   : > { %v1203_v22 = vpop.f32.mrb[0].mxu1 }
 0x2c1   : > { %v1205_v25 = vpop.f32.mrb[1].mxu1 }
 0x2c2   : > { %v1207_v26 = vpop.f32.mrb[2].mxu1 }
 0x2c3   : > { %v1209_v27 = vpop.f32.mrb[3].mxu1 }
 0x2c8   : > { %v1213_v28 = vpop.f32.mrb[4].mxu1 }
 0x2c9   : > { %v1215_v29 = vpop.f32.mrb[5].mxu1 }
 0x2ca   : > { %v1217_v30 = vpop.f32.mrb[6].mxu1 }
 0x2cb   : > { %v1219_v31 = vpop.f32.mrb[7].mxu1 }
 0x2d0   : > { %v1223_v32 = vpop.f32.mrb[8].mxu1 }
 0x2d1   : > { %v1225_v33 = vpop.f32.mrb[9].mxu1 }
 0x2d2   : > { %v1227_v34 = vpop.f32.mrb[10].mxu1 }
 0x2d3   : > { %v1229_v37 = vpop.f32.mrb[11].mxu1 }
 0x2d8   : > { %v1233_v38 = vpop.f32.mrb[12].mxu1 }
 0x2d9   : > { %v1235_v39 = vpop.f32.mrb[13].mxu1 }
 0x2da   : > { %v1237_v40 = vpop.f32.mrb[14].mxu1 }
 0x2db   : > { %v1239_v41 = vpop.f32.mrb[15].mxu1 }
 0x2e0   : > { %v1243_v42 = vpop.f32.mrb[16].mxu1 }
 0x2e1   : > { %v1245_v43 = vpop.f32.mrb[17].mxu1 }
 0x2e2   : > { %v1247_v44 = vpop.f32.mrb[18].mxu1 }
 0x2e3   : > { %v1249_v45 = vpop.f32.mrb[19].mxu1 }
 0x2e8   : > { %v5609_v46 = vpop.f32.mrb[20].mxu1 }
 0x2e9   : > { %v5611_v49 = vpop.f32.mrb[21].mxu1 }
 0x2ea   : > { %v1257_v50 = vpop.f32.mrb[22].mxu1 }
 0x2eb   : > { %v1258_v51 = vpop.f32.mrb[23].mxu1 }
 0x2f0   : > { %v1375_v52 = vpop.f32.mrb[24].mxu1 }
 0x2f1   : > { %v5613_v53 = vmax.f32 %v1203_v22, %v1375_v52  ;;  %v1377_v54 = vpop.f32.mrb[25].mxu1 }
 0x2f2   : > { %v5615_v55 = vmax.f32 %v1205_v25, %v1377_v54  ;;  %v1379_v56 = vpop.f32.mrb[26].mxu1 }
 0x2f3   : > { %v5617_v57 = vmax.f32 %v1207_v26, %v1379_v56  ;;  %v1381_v58 = vpop.f32.mrb[27].mxu1 }
 0x2f4   : > { %v4773_v61 = vpack.i.bf16 %v5615_v55, %v5613_v53  ;;  %v5621_v0 = vmax.f32 %v1209_v27, %v1381_v58 }
 0x2f6   : > { %v4778_v1 = vpack.i.bf16 %v5621_v0, %v5617_v57  ;;  %4774 = vrot.lane.b32.xlu0 %v4773_v61, %s5123_s25 }
 0x2f8   : > { %4779 = vrot.lane.b32.xlu1 %v4778_v1, %s5123_s25  ;;  %v1385_v2 = vpop.f32.mrb[28].mxu1 }
 0x2f9   : > { %v5627_v3 = vmax.f32 %v1213_v28, %v1385_v2  ;;  %v1387_v4 = vpop.f32.mrb[29].mxu1 }
 0x2fa   : > { %v5629_v6 = vmax.f32 %v1215_v29, %v1387_v4  ;;  %v1389_v9 = vpop.f32.mrb[30].mxu1 }
 0x2fb   : > { %v5631_v10 = vmax.f32 %v1217_v30, %v1389_v9  ;;  %v1391_v11 = vpop.f32.mrb[31].mxu1 }
 0x2fc   : > { %v4783_v16 = vpack.i.bf16 %v5629_v6, %v5627_v3  ;;  %v5635_v62 = vmax.f32 %v1219_v31, %v1391_v11 }
 0x2fe   : > { %v4788_v63 = vpack.i.bf16 %v5635_v62, %v5631_v10  ;;  %4784 = vrot.lane.b32.xlu0 %v4783_v16, %s5123_s25 }
 0x300   : > { %4789 = vrot.lane.b32.xlu1 %v4788_v63, %s5123_s25  ;;  %v1395_v8 = vpop.f32.mrb[32].mxu1 }
 0x301   : > { %v5641_v12 = vmax.f32 %v1223_v32, %v1395_v8  ;;  %v1397_v23 = vpop.f32.mrb[33].mxu1 }
 0x302   : > { %v5643_v24 = vmax.f32 %v1225_v33, %v1397_v23  ;;  %v1399_v35 = vpop.f32.mrb[34].mxu1 }
 0x303   : > { %v5645_v36 = vmax.f32 %v1227_v34, %v1399_v35  ;;  %v1401_v47 = vpop.f32.mrb[35].mxu1 }
 0x304   : > { %v4793_v48 = vpack.i.bf16 %v5643_v24, %v5641_v12  ;;  %v5649_v59 = vmax.f32 %v1229_v37, %v1401_v47 }
 0x306   : > { %v4798_v60 = vpack.i.bf16 %v5649_v59, %v5645_v36  ;;  %4794 = vrot.lane.b32.xlu0 %v4793_v48, %s5123_s25 }
 0x308   : > { %4799 = vrot.lane.b32.xlu1 %v4798_v60, %s5123_s25  ;;  %v1405_v14 = vpop.f32.mrb[36].mxu1 }
 0x309   : > { %v5655_v15 = vmax.f32 %v1233_v38, %v1405_v14  ;;  %v1407_v18 = vpop.f32.mrb[37].mxu1 }
 0x30a   : > { %v5657_v19 = vmax.f32 %v1235_v39, %v1407_v18  ;;  %v1409_v5 = vpop.f32.mrb[38].mxu1 }
 0x30b   : > { %v5659_v7 = vmax.f32 %v1237_v40, %v1409_v5  ;;  %v1411_v13 = vpop.f32.mrb[39].mxu1 }
 0x30c   : > { %v4803_v20 = vpack.i.bf16 %v5657_v19, %v5655_v15  ;;  %v5663_v21 = vmax.f32 %v1239_v41, %v1411_v13 }
 0x30e   : > { %v4808_v22 = vpack.i.bf16 %v5663_v21, %v5659_v7  ;;  %4804 = vrot.lane.b32.xlu0 %v4803_v20, %s5123_s25 }
 0x310   : > { %4809 = vrot.lane.b32.xlu1 %v4808_v22, %s5123_s25  ;;  %v1415_v25 = vpop.f32.mrb[40].mxu1 }
 0x311   : > { %v5669_v26 = vmax.f32 %v1243_v42, %v1415_v25  ;;  %v1417_v27 = vpop.f32.mrb[41].mxu1 }
 0x312   : > { %v5671_v28 = vmax.f32 %v1245_v43, %v1417_v27  ;;  %v1419_v29 = vpop.f32.mrb[42].mxu1 }
 0x313   : > { %v5673_v30 = vmax.f32 %v1247_v44, %v1419_v29  ;;  %v1421_v31 = vpop.f32.mrb[43].mxu1 }
 0x314   : > { %v4813_v32 = vpack.i.bf16 %v5671_v28, %v5669_v26  ;;  %v5677_v33 = vmax.f32 %v1249_v45, %v1421_v31 }
 0x316   : > { %v4818_v34 = vpack.i.bf16 %v5677_v33, %v5673_v30  ;;  %4814 = vrot.lane.b32.xlu0 %v4813_v32, %s5123_s25 }
 0x318   : > { %4819 = vrot.lane.b32.xlu1 %v4818_v34, %s5123_s25  ;;  %v1425_v37 = vpop.f32.mrb[44].mxu1 }
 0x319   : > { %v5684_v38 = vmax.f32 %v5609_v46, %v1425_v37  ;;  %v1427_v39 = vpop.f32.mrb[45].mxu1 }
 0x31a   : > { %v5687_v40 = vmax.f32 %v5611_v49, %v1427_v39  ;;  %v1429_v41 = vpop.f32.mrb[46].mxu1 }
 0x31b   : > { %v1430_v42 = vpop.f32.mrb[47].mxu1 }
 0x31c   : > { %v4823_v43 = vpack.i.bf16 %v5687_v40, %v5684_v38 }
 0x31e   : > { %4824 = vrot.lane.b32.xlu0 %v4823_v43, %s5123_s25  ;;  %s6716_s25 = smov 124  }
 0x368   : > { %v4775_v44 = vpop.permute.xlu0 %4774 }
 0x369   : > { %v4777_v45 = vunpack.i.h.bf16 %v4775_v44  ;;  %v4776_v50 = vunpack.i.l.bf16 %v4775_v44 }
 0x36a   : > { %v4780_v51 = vpop.permute.xlu1 %4779 }
 0x36b   : > { %v1520_v52 = vsel %vm551_vm4, %v4776_v50, %v4777_v45  ;;  %v1564_v46 = vsel %vm551_vm4, %v4777_v45, %v4776_v50  ;;  %v4782_v54 = vunpack.i.h.bf16 %v4780_v51  ;;  %v4781_v56 = vunpack.i.l.bf16 %v4780_v51 }
 0x36c   : > { %v1575_v49 = vmax.f32 %v5613_v53, %v1520_v52  ;;  %v1576_v58 = vmax.f32 %v5615_v55, %v1564_v46 }
 0x36d   : > { %v1521_v61 = vsel %vm551_vm4, %v4781_v56, %v4782_v54  ;;  %v1565_v1 = vsel %vm551_vm4, %v4782_v54, %v4781_v56 }
 0x36e   : > { %v1577_v2 = vmax.f32 %v5617_v57, %v1521_v61  ;;  %v1578_v4 = vmax.f32 %v5621_v0, %v1565_v1  ;;  %v1597_v9 = vmax.f32 %v1575_v49, 0.0  ;;  %v1598_v11 = vmax.f32 %v1576_v58, 0.0 }
 0x370   : > { %v1599_v16 = vmax.f32 %v1577_v2, 0.0  ;;  %v1600_v63 = vmax.f32 %v1578_v4, 0.0  ;;  %v4785_v8 = vpop.permute.xlu0 %4784 }
 0x371   : > { %v4787_v23 = vunpack.i.h.bf16 %v4785_v8  ;;  %v4786_v35 = vunpack.i.l.bf16 %v4785_v8 }
 0x372   : > { %v5700_v47 = vpack.c.bf16 %v1599_v16, %v1597_v9  ;;  %v5702_v53 = vpack.c.bf16 %v1600_v63, %v1598_v11  ;;  %v4790_v55 = vpop.permute.xlu1 %4789 }
 0x373   : > { %v1522_v48 = vsel %vm551_vm4, %v4786_v35, %v4787_v23  ;;  %v1566_v60 = vsel %vm551_vm4, %v4787_v23, %v4786_v35  ;;  %v4792_v14 = vunpack.i.h.bf16 %v4790_v55  ;;  %v4791_v57 = vunpack.i.l.bf16 %v4790_v55 }
 0x374   : > { %v1579_v0 = vmax.f32 %v5627_v3, %v1522_v48  ;;  %v1580_v18 = vmax.f32 %v5629_v6, %v1566_v60  ;;  %2372 = vmatprep.subr.bf16.mxu0 %v5702_v53  ;;  %1643 = vrot.lane.b32.xlu1 %v5700_v47, %s5124_s19 }
 0x375   : > { %v1523_v5 = vsel %vm551_vm4, %v4791_v57, %v4792_v14  ;;  %v1567_v13 = vsel %vm551_vm4, %v4792_v14, %v4791_v57  ;;  %1645 = vrot.lane.b32.xlu0 %v5702_v53, %s5124_s19  ;;  %2373 = vmatpush1.bf16.msra.mxu0 %v5700_v47 }
 0x376   : > { %v1581_v20 = vmax.f32 %v5631_v10, %v1523_v5  ;;  %v1582_v3 = vmax.f32 %v5635_v62, %v1567_v13  ;;  %v1601_v22 = vmax.f32 %v1579_v0, 0.0  ;;  %v1602_v6 = vmax.f32 %v1580_v18, 0.0 }
 0x378   : > { %v1603_v25 = vmax.f32 %v1581_v20, 0.0  ;;  %v1604_v27 = vmax.f32 %v1582_v3, 0.0  ;;  %v4795_v29 = vpop.permute.xlu0 %4794  ;;  %1691 = vrot.lane.b32.xlu1 %v5700_v47, %s6716_s25 }
 0x379   : > { %v4797_v31 = vunpack.i.h.bf16 %v4795_v29  ;;  %v4796_v32 = vunpack.i.l.bf16 %v4795_v29  ;;  %1693 = vrot.lane.b32.xlu0 %v5702_v53, %s6716_s25 }
 0x37a   : > { %v5722_v34 = vpack.c.bf16 %v1603_v25, %v1601_v22  ;;  %v5724_v37 = vpack.c.bf16 %v1604_v27, %v1602_v6  ;;  %v4800_v10 = vpop.permute.xlu1 %4799 }
 0x37b   : > { %v1524_v62 = vsel %vm551_vm4, %v4796_v32, %v4797_v31  ;;  %v1568_v39 = vsel %vm551_vm4, %v4797_v31, %v4796_v32  ;;  %v4802_v41 = vunpack.i.h.bf16 %v4800_v10  ;;  %v4801_v42 = vunpack.i.l.bf16 %v4800_v10 }
 0x37c   : > { %v1583_v43 = vmax.f32 %v5641_v12, %v1524_v62  ;;  %v1584_v44 = vmax.f32 %v5643_v24, %v1568_v39  ;;  %2374 = vmatprep.subr.bf16.mxu0 %v5724_v37  ;;  %1647 = vrot.lane.b32.xlu1 %v5722_v34, %s5124_s19 }
 0x37d   : > { %v1525_v45 = vsel %vm551_vm4, %v4801_v42, %v4802_v41  ;;  %v1569_v50 = vsel %vm551_vm4, %v4802_v41, %v4801_v42  ;;  %1649 = vrot.lane.b32.xlu0 %v5724_v37, %s5124_s19  ;;  %2375 = vmatpush1.bf16.msra.mxu0 %v5722_v34 }
 0x37e   : > { %v1585_v51 = vmax.f32 %v5645_v36, %v1525_v45  ;;  %v1586_v12 = vmax.f32 %v5649_v59, %v1569_v50  ;;  %v1605_v52 = vmax.f32 %v1583_v43, 0.0  ;;  %v1606_v24 = vmax.f32 %v1584_v44, 0.0 }
 0x380   : > { %v1607_v46 = vmax.f32 %v1585_v51, 0.0  ;;  %v1608_v54 = vmax.f32 %v1586_v12, 0.0  ;;  %v4805_v56 = vpop.permute.xlu0 %4804 }
 0x381   : > { %v4807_v49 = vunpack.i.h.bf16 %v4805_v56  ;;  %v4806_v58 = vunpack.i.l.bf16 %v4805_v56 }
 0x382   : > { %v5740_v61 = vpack.c.bf16 %v1607_v46, %v1605_v52  ;;  %v5742_v1 = vpack.c.bf16 %v1608_v54, %v1606_v24  ;;  %v4810_v2 = vpop.permute.xlu1 %4809  ;;  %v2031_v24 = vld [vmem:[%s6704_s5 + $0x28] sm:$0xff]  ;;  %v2030_v46 = vld [vmem:[%s6704_s5 + $0x20] sm:$0xff] }
 0x383   : > { %v1526_v4 = vsel %vm551_vm4, %v4806_v58, %v4807_v49  ;;  %v1570_v9 = vsel %vm551_vm4, %v4807_v49, %v4806_v58  ;;  %v4812_v11 = vunpack.i.h.bf16 %v4810_v2  ;;  %v4811_v36 = vunpack.i.l.bf16 %v4810_v2 }
 0x384   : > { %v1587_v59 = vmax.f32 %v5655_v15, %v1526_v4  ;;  %v1588_v16 = vmax.f32 %v5657_v19, %v1570_v9  ;;  %2376 = vmatprep.subr.bf16.mxu0 %v5742_v1  ;;  %1651 = vrot.lane.b32.xlu1 %v5740_v61, %s5124_s19  ;;  %v2033_v9 = vld [vmem:[%s6704_s5 + $0x38] sm:$0xff] }
 0x385   : > { %v1527_v63 = vsel %vm551_vm4, %v4811_v36, %v4812_v11  ;;  %v1571_v8 = vsel %vm551_vm4, %v4812_v11, %v4811_v36  ;;  %1653 = vrot.lane.b32.xlu0 %v5742_v1, %s5124_s19  ;;  %2377 = vmatpush1.bf16.msra.mxu0 %v5740_v61  ;;  %v2032_v11 = vld [vmem:[%s6704_s5 + $0x30] sm:$0xff] }
 0x386   : > { %v1589_v23 = vmax.f32 %v5659_v7, %v1527_v63  ;;  %v1590_v15 = vmax.f32 %v5663_v21, %v1571_v8  ;;  %v1609_v35 = vmax.f32 %v1587_v59, 0.0  ;;  %v1610_v19 = vmax.f32 %v1588_v16, 0.0  ;;  %v2035_v16 = vld [vmem:[%s6704_s5 + $0x48] sm:$0xff]  ;;  %v2034_v63 = vld [vmem:[%s6704_s5 + $0x40] sm:$0xff] }
 0x388   : > { %v1611_v55 = vmax.f32 %v1589_v23, 0.0  ;;  %v1612_v48 = vmax.f32 %v1590_v15, 0.0  ;;  %v4815_v60 = vpop.permute.xlu0 %4814 }
 0x389   : > { %v4817_v14 = vunpack.i.h.bf16 %v4815_v60  ;;  %v4816_v57 = vunpack.i.l.bf16 %v4815_v60  ;;  %v2036_v60 = vld [vmem:[%s6704_s5 + $0x50] sm:$0xff] }
 0x38a   : > { %v5758_v0 = vpack.c.bf16 %v1611_v55, %v1609_v35  ;;  %v5760_v18 = vpack.c.bf16 %v1612_v48, %v1610_v19  ;;  %v4820_v5 = vpop.permute.xlu1 %4819  ;;  %v2037_v48 = vld [vmem:[%s6704_s5 + $0x58] sm:$0xff] }
 0x38b   : > { %v1528_v13 = vsel %vm551_vm4, %v4816_v57, %v4817_v14  ;;  %v1572_v20 = vsel %vm551_vm4, %v4817_v14, %v4816_v57  ;;  %v4822_v3 = vunpack.i.h.bf16 %v4820_v5  ;;  %v4821_v7 = vunpack.i.l.bf16 %v4820_v5 }
 0x38c   : > { %v1591_v21 = vmax.f32 %v5669_v26, %v1528_v13  ;;  %v1592_v22 = vmax.f32 %v5671_v28, %v1572_v20  ;;  %2378 = vmatprep.subr.bf16.mxu0 %v5760_v18  ;;  %1655 = vrot.lane.b32.xlu1 %v5758_v0, %s5124_s19 }
 0x38d   : > { %v1529_v6 = vsel %vm551_vm4, %v4821_v7, %v4822_v3  ;;  %v1573_v25 = vsel %vm551_vm4, %v4822_v3, %v4821_v7  ;;  %1657 = vrot.lane.b32.xlu0 %v5760_v18, %s5124_s19  ;;  %2379 = vmatpush1.bf16.msra.mxu0 %v5758_v0 }
 0x38e   : > { %v1593_v27 = vmax.f32 %v5673_v30, %v1529_v6  ;;  %v1594_v26 = vmax.f32 %v5677_v33, %v1573_v25  ;;  %v1613_v29 = vmax.f32 %v1591_v21, 0.0  ;;  %v1614_v28 = vmax.f32 %v1592_v22, 0.0  ;;  %v2041_v22 = vld [vmem:[%s6704_s5 + $0x78] sm:$0xff]  ;;  %v2040_v6 = vld [vmem:[%s6704_s5 + $0x70] sm:$0xff] }
 0x390   : > { %v1615_v31 = vmax.f32 %v1593_v27, 0.0  ;;  %v1616_v32 = vmax.f32 %v1594_v26, 0.0  ;;  %v4825_v10 = vpop.permute.xlu0 %4824  ;;  %v2043_v26 = vld [vmem:[%s6704_s5 + $0x88] sm:$0xff] }
 0x391   : > { %v4827_v62 = vunpack.i.h.bf16 %v4825_v10  ;;  %v4826_v39 = vunpack.i.l.bf16 %v4825_v10 }
 0x392   : > { %v1627_v41 = vpack.c.bf16 %v1615_v31, %v1613_v29  ;;  %v1628_v42 = vpack.c.bf16 %v1616_v32, %v1614_v28  ;;  %v2042_v29 = vld [vmem:[%s6704_s5 + $0x80] sm:$0xff] }
 0x393   : > { %v1530_v43 = vsel %vm551_vm4, %v4826_v39, %v4827_v62  ;;  %v1574_v44 = vsel %vm551_vm4, %v4827_v62, %v4826_v39 }
 0x394   : > { %v1595_v45 = vmax.f32 %v5684_v38, %v1530_v43  ;;  %v1596_v50 = vmax.f32 %v5687_v40, %v1574_v44  ;;  %2380 = vmatprep.subr.bf16.mxu0 %v1628_v42  ;;  %1659 = vrot.lane.b32.xlu1 %v1627_v41, %s5124_s19  ;;  %v4956_v38 = vld [vmem:[%s6703_s4 + $0x4] ss:$16 sps:$4 sm:$0xff]   ;;  %v2027_v40 = vld [vmem:[%s6704_s5 + $0x8] sm:$0xff] }
 0x395   : > { %1661 = vrot.lane.b32.xlu0 %v1628_v42, %s5124_s19  ;;  %2381 = vmatpush1.bf16.msra.mxu0 %v1627_v41 }
 0x396   : > { %v1617_v30 = vmax.f32 %v1595_v45, 0.0  ;;  %v1618_v33 = vmax.f32 %v1596_v50, 0.0  ;;  %2404 = vmatprep.mubr.bf16.mxu0 %v4956_v38 }
 0x398   : > { %v5782_v51 = vpack.c.bf16 %v1617_v30, %v1617_v30  ;;  %v1630_v12 = vpack.c.bf16 %v1618_v33, %v1618_v33 }
 0x39a   : > { %1665 = vrot.lane.b32.xlu0 %v1630_v12, %s5124_s19  ;;  %1663 = vrot.lane.b32.xlu1 %v5782_v51, %s5124_s19 }
 0x39e   : > { %1697 = vrot.lane.b32.xlu0 %v5724_v37, %s6716_s25  ;;  %1695 = vrot.lane.b32.xlu1 %v5722_v34, %s6716_s25 }
 0x3a2   : > { %1701 = vrot.lane.b32.xlu0 %v5742_v1, %s6716_s25  ;;  %1699 = vrot.lane.b32.xlu1 %v5740_v61, %s6716_s25 }
 0x3a6   : > { %1705 = vrot.lane.b32.xlu0 %v5760_v18, %s6716_s25  ;;  %1703 = vrot.lane.b32.xlu1 %v5758_v0, %s6716_s25 }
 0x3aa   : > { %1709 = vrot.lane.b32.xlu0 %v1628_v42, %s6716_s25  ;;  %1707 = vrot.lane.b32.xlu1 %v1627_v41, %s6716_s25 }
 0x3ae   : > { %1713 = vrot.lane.b32.xlu0 %v1630_v12, %s6716_s25  ;;  %1711 = vrot.lane.b32.xlu1 %v5782_v51, %s6716_s25  ;;  %s6721_s25 = sadd.s32 (%p5231_p5), 4294967295, %s5119_s27  }
 0x3b2   : > { %1743 = vrot.lane.b32.xlu0 %v5702_v53, %s5127_s22  ;;  %1741 = vrot.lane.b32.xlu1 %v5700_v47, %s5127_s22 }
 0x3b6   : > { %1747 = vrot.lane.b32.xlu0 %v5724_v37, %s5127_s22  ;;  %1745 = vrot.lane.b32.xlu1 %v5722_v34, %s5127_s22 }
 0x3ba   : > { %1751 = vrot.lane.b32.xlu0 %v5742_v1, %s5127_s22  ;;  %1749 = vrot.lane.b32.xlu1 %v5740_v61, %s5127_s22 }
 0x3be   : > { %1755 = vrot.lane.b32.xlu0 %v5760_v18, %s5127_s22  ;;  %1753 = vrot.lane.b32.xlu1 %v5758_v0, %s5127_s22 }
 0x3c2   : > { %1759 = vrot.lane.b32.xlu0 %v1628_v42, %s5127_s22  ;;  %1757 = vrot.lane.b32.xlu1 %v1627_v41, %s5127_s22 }
 0x3c6   : > { %1763 = vrot.lane.b32.xlu0 %v1630_v12, %s5127_s22  ;;  %1761 = vrot.lane.b32.xlu1 %v5782_v51, %s5127_s22 }
 0x3ca   : > { %1793 = vrot.lane.b32.xlu0 %v5702_v53, %s6714_s23  ;;  %1791 = vrot.lane.b32.xlu1 %v5700_v47, %s6714_s23  ;;  %v2026_v47 = vld [vmem:[%s6704_s5] sm:$0xff]  ;;  %v2029_v53 = vld [vmem:[%s6704_s5 + $0x18] sm:$0xff] }
 0x3ce   : > { %1797 = vrot.lane.b32.xlu0 %v5724_v37, %s6714_s23  ;;  %1795 = vrot.lane.b32.xlu1 %v5722_v34, %s6714_s23  ;;  %v2028_v34 = vld [vmem:[%s6704_s5 + $0x10] sm:$0xff] }
 0x3d2   : > { %1801 = vrot.lane.b32.xlu0 %v5742_v1, %s6714_s23  ;;  %1799 = vrot.lane.b32.xlu1 %v5740_v61, %s6714_s23 }
 0x3d6   : > { %1805 = vrot.lane.b32.xlu0 %v5760_v18, %s6714_s23  ;;  %1803 = vrot.lane.b32.xlu1 %v5758_v0, %s6714_s23  ;;  %v2039_v0 = vld [vmem:[%s6704_s5 + $0x68] sm:$0xff]  ;;  %v2038_v18 = vld [vmem:[%s6704_s5 + $0x60] sm:$0xff] }
 0x3da   : > { %1809 = vrot.lane.b32.xlu0 %v1628_v42, %s6714_s23  ;;  %1807 = vrot.lane.b32.xlu1 %v1627_v41, %s6714_s23  ;;  %v2045_v41 = vld [vmem:[%s6704_s5 + $0x98] sm:$0xff]  ;;  %v2044_v42 = vld [vmem:[%s6704_s5 + $0x90] sm:$0xff] }
 0x3de   : > { %1813 = vrot.lane.b32.xlu0 %v1630_v12, %s6714_s23  ;;  %1811 = vrot.lane.b32.xlu1 %v5782_v51, %s6714_s23  ;;  %s5129_s23 = smov 116  }
 0x3e2   : > { %2053 = vperm.xlu0 %4771, %v2027_v40   ;;  %2048 = vperm.xlu1 %4772, %v2026_v47  }
 0x3e6   : > { %v1644_v37 = vpop.permute.xlu1 %1643  ;;  %2063 = vperm.xlu0 %4771, %v2029_v53   ;;  %2058 = vperm.xlu1 %4772, %v2028_v34  }
 0x3e7   : > { %v1646_v52 = vpop.permute.xlu0 %1645 }
 0x3e8   : > { %v1667_v54 = vsel %vm569_vm7, %v1644_v37, %v1646_v52  ;;  %v1675_v56 = vsel %vm569_vm7, %v1646_v52, %v1644_v37 }
 0x3e9   : > { %v1857_v49 = vrot.slane %v1667_v54, 6  ;;  %v1858_v58 = vrot.slane %v1675_v56, 6 }
 0x3ea   : > { %v5857_v61 = vpop.permute.xlu1 %1691  ;;  %2073 = vperm.xlu0 %4771, %v2031_v24   ;;  %2068 = vperm.xlu1 %4772, %v2030_v46  }
 0x3eb   : > { %v5859_v1 = vpop.permute.xlu0 %1693  ;;  %v1968_v2 = vsel %vm602_vm6, %v1630_v12, %v1858_v58  ;;  %v1964_v4 = vsel %vm602_vm6, %v5782_v51, %v1857_v49 }
 0x3ec   : > { %2382 = vmatprep.subr.bf16.mxu0 %v1968_v2  ;;  %v1716_v38 = vsel %vm1715_vm9, %v5857_v61, %v5859_v1  ;;  %v1725_v40 = vsel %vm1715_vm9, %v5859_v1, %v5857_v61 }
 0x3ed   : > { %2383 = vmatpush1.bf16.msra.mxu0 %v1964_v4  ;;  %v1894_v46 = vrot.slane %v1716_v38, 4  ;;  %v1895_v54 = vrot.slane %v1725_v40, 4 }
 0x3ee   : > { %v1648_v36 = vpop.permute.xlu1 %1647  ;;  %2083 = vperm.xlu0 %4771, %v2033_v9   ;;  %2078 = vperm.xlu1 %4772, %v2032_v11  }
 0x3ef   : > { %v1650_v59 = vpop.permute.xlu0 %1649 }
 0x3f0   : > { %v1668_v8 = vsel %vm569_vm7, %v1648_v36, %v1650_v59  ;;  %v1678_v23 = vsel %vm569_vm7, %v1650_v59, %v1648_v36 }
 0x3f1   : > { %v1859_v15 = vrot.slane %v1668_v8, 6  ;;  %v1861_v35 = vrot.slane %v1678_v23, 6 }
 0x3f2   : > { %2093 = vperm.xlu0 %4771, %v2035_v16   ;;  %2088 = vperm.xlu1 %4772, %v2034_v63  }
 0x3f3   : > { %v1862_v19 = vsel %vm602_vm6, %v1858_v58, %v1861_v35  ;;  %v1860_v55 = vsel %vm602_vm6, %v1857_v49, %v1859_v15 }
 0x3f4   : > { %2384 = vmatprep.subr.bf16.mxu0 %v1862_v19 }
 0x3f5   : > { %2385 = vmatpush1.bf16.msra.mxu0 %v1860_v55 }
 0x3f6   : > { %v1652_v14 = vpop.permute.xlu1 %1651  ;;  %2103 = vperm.xlu0 %4771, %v2037_v48   ;;  %2098 = vperm.xlu1 %4772, %v2036_v60  }
 0x3f7   : > { %v1654_v57 = vpop.permute.xlu0 %1653 }
 0x3f8   : > { %v1669_v5 = vsel %vm569_vm7, %v1652_v14, %v1654_v57  ;;  %v1681_v13 = vsel %vm569_vm7, %v1654_v57, %v1652_v14 }
 0x3f9   : > { %v1863_v20 = vrot.slane %v1669_v5, 6  ;;  %v1865_v3 = vrot.slane %v1681_v13, 6 }
 0x3fa   : > { %2113 = vperm.xlu0 %4771, %v2039_v0   ;;  %2108 = vperm.xlu1 %4772, %v2038_v18  }
 0x3fb   : > { %v1866_v7 = vsel %vm602_vm6, %v1861_v35, %v1865_v3  ;;  %v1864_v21 = vsel %vm602_vm6, %v1859_v15, %v1863_v20 }
 0x3fc   : > { %2386 = vmatprep.subr.bf16.mxu0 %v1866_v7 }
 0x3fd   : > { %2387 = vmatpush1.bf16.msra.mxu0 %v1864_v21 }
 0x3fe   : > { %v1656_v25 = vpop.permute.xlu1 %1655  ;;  %2123 = vperm.xlu0 %4771, %v2041_v22   ;;  %2118 = vperm.xlu1 %4772, %v2040_v6  }
 0x3ff   : > { %v1658_v27 = vpop.permute.xlu0 %1657 }
 0x400   : > { %v1670_v28 = vsel %vm569_vm7, %v1656_v25, %v1658_v27  ;;  %v1684_v31 = vsel %vm569_vm7, %v1658_v27, %v1656_v25 }
 0x401   : > { %v1867_v32 = vrot.slane %v1670_v28, 6  ;;  %v1869_v10 = vrot.slane %v1684_v31, 6 }
 0x402   : > { %2133 = vperm.xlu0 %4771, %v2043_v26   ;;  %2128 = vperm.xlu1 %4772, %v2042_v29  }
 0x403   : > { %v1870_v62 = vsel %vm602_vm6, %v1865_v3, %v1869_v10  ;;  %v1868_v39 = vsel %vm602_vm6, %v1863_v20, %v1867_v32 }
 0x404   : > { %2388 = vmatprep.subr.bf16.mxu0 %v1870_v62 }
 0x405   : > { %2389 = vmatpush1.bf16.msra.mxu0 %v1868_v39 }
 0x406   : > { %v1660_v43 = vpop.permute.xlu1 %1659  ;;  %2143 = vperm.xlu0 %4771, %v2045_v41   ;;  %2138 = vperm.xlu1 %4772, %v2044_v42  }
 0x407   : > { %v1662_v44 = vpop.permute.xlu0 %1661 }
 0x408   : > { %v1671_v45 = vsel %vm569_vm7, %v1660_v43, %v1662_v44  ;;  %v1687_v50 = vsel %vm569_vm7, %v1662_v44, %v1660_v43 }
 0x409   : > { %v1871_v30 = vrot.slane %v1671_v45, 6  ;;  %v1873_v33 = vrot.slane %v1687_v50, 6 }
 0x40b   : > { %v1874_v51 = vsel %vm602_vm6, %v1869_v10, %v1873_v33  ;;  %v1872_v12 = vsel %vm602_vm6, %v1867_v32, %v1871_v30 }
 0x40c   : > { %2390 = vmatprep.subr.bf16.mxu0 %v1874_v51  ;;  %v1666_v47 = vpop.permute.xlu0 %1665  ;;  %v1664_v53 = vpop.permute.xlu1 %1663 }
 0x40d   : > { %v1672_v34 = vsel %vm569_vm7, %v1664_v53, %v1666_v47  ;;  %v1690_v37 = vsel %vm569_vm7, %v1666_v47, %v1664_v53  ;;  %2391 = vmatpush1.bf16.msra.mxu0 %v1872_v12  ;;  %v4954_v53 = vld [vmem:[%s6703_s4] ss:$16 sps:$4 sm:$0xff]  }
 0x40e   : > { %v1875_v52 = vrot.slane %v1672_v34, 6  ;;  %v1877_v24 = vrot.slane %v1690_v37, 6 }
 0x410   : > { %v1698_v56 = vpop.permute.xlu0 %1697  ;;  %v1696_v49 = vpop.permute.xlu1 %1695  ;;  %v1878_v58 = vsel %vm602_vm6, %v1873_v33, %v1877_v24  ;;  %v1876_v2 = vsel %vm602_vm6, %v1871_v30, %v1875_v52  ;;  %v4957_v52 = vld [vmem:[%s6703_s4 + $0x24] ss:$16 sps:$4 sm:$0xff]  }
 0x411   : > { %v1717_v61 = vsel %vm1715_vm9, %v1696_v49, %v1698_v56  ;;  %v1728_v1 = vsel %vm1715_vm9, %v1698_v56, %v1696_v49  ;;  %v1976_v4 = vsel %vm619_vm5, %v1878_v58, %v1895_v54  ;;  %v1972_v9 = vsel %vm619_vm5, %v1876_v2, %v1894_v46 }
 0x412   : > { %v1896_v11 = vrot.slane %v1717_v61, 4  ;;  %v1898_v36 = vrot.slane %v1728_v1, 4  ;;  %2392 = vmatprep.subr.bf16.mxu0 %v1976_v4 }
 0x413   : > { %2393 = vmatpush1.bf16.msra.mxu0 %v1972_v9 }
 0x414   : > { %v1702_v59 = vpop.permute.xlu0 %1701  ;;  %v1700_v16 = vpop.permute.xlu1 %1699  ;;  %v1899_v63 = vsel %vm619_vm5, %v1895_v54, %v1898_v36  ;;  %v1897_v19 = vsel %vm619_vm5, %v1894_v46, %v1896_v11 }
 0x415   : > { %v1718_v8 = vsel %vm1715_vm9, %v1700_v16, %v1702_v59  ;;  %v1731_v23 = vsel %vm1715_vm9, %v1702_v59, %v1700_v16  ;;  %2394 = vmatprep.subr.bf16.mxu0 %v1899_v63  ;;  %v4959_v16 = vld [vmem:[%s6703_s4 + $0x20] ss:$16 sps:$4 sm:$0xff]  }
 0x416   : > { %v1900_v15 = vrot.slane %v1718_v8, 4  ;;  %v1902_v35 = vrot.slane %v1731_v23, 4  ;;  %v4960_v23 = vld [vmem:[%s6703_s4 + $0x44] ss:$16 sps:$4 sm:$0xff]  }
 0x417   : > { %2395 = vmatpush1.bf16.msra.mxu0 %v1897_v19 }
 0x418   : > { %v1706_v55 = vpop.permute.xlu0 %1705  ;;  %v1704_v48 = vpop.permute.xlu1 %1703  ;;  %v1903_v60 = vsel %vm619_vm5, %v1898_v36, %v1902_v35  ;;  %v1901_v5 = vsel %vm619_vm5, %v1896_v11, %v1900_v15 }
 0x419   : > { %v1719_v14 = vsel %vm1715_vm9, %v1704_v48, %v1706_v55  ;;  %v1734_v57 = vsel %vm1715_vm9, %v1706_v55, %v1704_v48  ;;  %2396 = vmatprep.subr.bf16.mxu0 %v1903_v60 }
 0x41a   : > { %v1904_v0 = vrot.slane %v1719_v14, 4  ;;  %v1906_v18 = vrot.slane %v1734_v57, 4 }
 0x41b   : > { %2397 = vmatpush1.bf16.msra.mxu0 %v1901_v5 }
 0x41c   : > { %v1710_v13 = vpop.permute.xlu0 %1709  ;;  %v1708_v20 = vpop.permute.xlu1 %1707  ;;  %v1907_v3 = vsel %vm619_vm5, %v1902_v35, %v1906_v18  ;;  %v1905_v25 = vsel %vm619_vm5, %v1900_v15, %v1904_v0 }
 0x41d   : > { %v1720_v7 = vsel %vm1715_vm9, %v1708_v20, %v1710_v13  ;;  %v1737_v21 = vsel %vm1715_vm9, %v1710_v13, %v1708_v20  ;;  %2398 = vmatprep.subr.bf16.mxu0 %v1907_v3 }
 0x41e   : > { %v1908_v22 = vrot.slane %v1720_v7, 4  ;;  %v1910_v6 = vrot.slane %v1737_v21, 4  ;;  %v4962_v7 = vld [vmem:[%s6703_s4 + $0x40] ss:$16 sps:$4 sm:$0xff]  }
 0x41f   : > { %2399 = vmatpush1.bf16.msra.mxu0 %v1905_v25 }
 0x420   : > { %v1714_v27 = vpop.permute.xlu0 %1713  ;;  %v1712_v26 = vpop.permute.xlu1 %1711  ;;  %v1911_v29 = vsel %vm619_vm5, %v1906_v18, %v1910_v6  ;;  %v1909_v32 = vsel %vm619_vm5, %v1904_v0, %v1908_v22 }
 0x421   : > { %v1721_v28 = vsel %vm1715_vm9, %v1712_v26, %v1714_v27  ;;  %v1740_v31 = vsel %vm1715_vm9, %v1714_v27, %v1712_v26  ;;  %2400 = vmatprep.subr.bf16.mxu0 %v1911_v29 }
 0x422   : > { %v1912_v10 = vrot.slane %v1721_v28, 4  ;;  %v1914_v62 = vrot.slane %v1740_v31, 4 }
 0x423   : > { %2401 = vmatpush1.bf16.msra.mxu0 %v1909_v32 }
 0x424   : > { %v1744_v39 = vpop.permute.xlu0 %1743  ;;  %v1742_v41 = vpop.permute.xlu1 %1741  ;;  %v1915_v50 = vsel %vm619_vm5, %v1910_v6, %v1914_v62  ;;  %v1913_v30 = vsel %vm619_vm5, %v1908_v22, %v1912_v10  ;;  %v4963_v6 = vld [vmem:[%s6703_s4 + $0x64] ss:$16 sps:$4 sm:$0xff]  }
 0x425   : > { %v1766_v42 = vsel %vm1765_vm10, %v1742_v41, %v1744_v39  ;;  %v1775_v43 = vsel %vm1765_vm10, %v1744_v39, %v1742_v41  ;;  %v4965_v39 = vld [vmem:[%s6703_s4 + $0x60] ss:$16 sps:$4 sm:$0xff]   ;;  %v4966_v41 = vld [vmem:[%s6703_s4 + $0x84] ss:$16 sps:$4 sm:$0xff]  }
 0x426   : > { %v1930_v44 = vrot.slane %v1766_v42, 2  ;;  %v1931_v45 = vrot.slane %v1775_v43, 2 }
 0x428   : > { %v1748_v33 = vpop.permute.xlu0 %1747  ;;  %v1746_v51 = vpop.permute.xlu1 %1745  ;;  %v1984_v12 = vsel %vm583_vm3, %v1915_v50, %v1931_v45  ;;  %v1980_v38 = vsel %vm583_vm3, %v1913_v30, %v1930_v44 }
 0x429   : > { %v1767_v40 = vsel %vm1765_vm10, %v1746_v51, %v1748_v33  ;;  %v1778_v47 = vsel %vm1765_vm10, %v1748_v33, %v1746_v51  ;;  %2402 = vmatprep.subr.bf16.mxu0 %v1984_v12  ;;  %v4968_v12 = vld [vmem:[%s6703_s4 + $0x80] ss:$16 sps:$4 sm:$0xff]  }
 0x42a   : > { %v1932_v34 = vrot.slane %v1767_v40, 2  ;;  %v1934_v37 = vrot.slane %v1778_v47, 2  ;;  %2403 = vmatpush1.bf16.msra.mxu0 %v1980_v38  ;;  %v4969_v38 = vld [vmem:[%s6703_s4 + $0xa4] ss:$16 sps:$4 sm:$0xff]  }
 0x42c   : > { %v1752_v24 = vpop.permute.xlu0 %1751  ;;  %v1750_v46 = vpop.permute.xlu1 %1749  ;;  %v1935_v54 = vsel %vm583_vm3, %v1931_v45, %v1934_v37  ;;  %v1933_v56 = vsel %vm583_vm3, %v1930_v44, %v1932_v34 }
 0x42d   : > { %v1768_v49 = vsel %vm1765_vm10, %v1750_v46, %v1752_v24  ;;  %v1781_v58 = vsel %vm1765_vm10, %v1752_v24, %v1750_v46  ;;  %2405 = vmatmul.mubr.bf16.vlgmr.msra.gmra.mrb[44].mxu0 %v4954_v53  ;;  %2505 = vmatprep.subr.bf16.mxu0 %v1935_v54  ;;  %v4971_v54 = vld [vmem:[%s6703_s4 + $0xa0] ss:$16 sps:$4 sm:$0xff]  }
 0x42e   : > { %v1936_v2 = vrot.slane %v1768_v49, 2  ;;  %v1938_v61 = vrot.slane %v1781_v58, 2  ;;  %2506 = vmatpush1.bf16.msra.mxu0 %v1933_v56  ;;  %2414 = vmatprep.mubr.bf16.mxu0 %v4957_v52  ;;  %v4972_v49 = vld [vmem:[%s6703_s4 + $0xc4] ss:$16 sps:$4 sm:$0xff]  }
 0x430   : > { %v1756_v1 = vpop.permute.xlu0 %1755  ;;  %v1754_v4 = vpop.permute.xlu1 %1753  ;;  %v1939_v9 = vsel %vm583_vm3, %v1934_v37, %v1938_v61  ;;  %v1937_v11 = vsel %vm583_vm3, %v1932_v34, %v1936_v2 }
 0x431   : > { %v1769_v36 = vsel %vm1765_vm10, %v1754_v4, %v1756_v1  ;;  %v1784_v59 = vsel %vm1765_vm10, %v1756_v1, %v1754_v4  ;;  %2507 = vmatprep.subr.bf16.mxu0 %v1939_v9  ;;  %v4977_v1 = vld [vmem:[%s6703_s4 + $0xe0] ss:$16 sps:$4 sm:$0xff]   ;;  %v4978_v4 = vld [vmem:[%s6703_s4 + $0x104] ss:$16 sps:$4 sm:$0xff]  }
 0x432   : > { %v1940_v63 = vrot.slane %v1769_v36, 2  ;;  %v1942_v8 = vrot.slane %v1784_v59, 2  ;;  %2508 = vmatpush1.bf16.msra.mxu0 %v1937_v11  ;;  %v4980_v9 = vld [vmem:[%s6703_s4 + $0x100] ss:$16 sps:$4 sm:$0xff]   ;;  %v4981_v11 = vld [vmem:[%s6703_s4 + $0x124] ss:$16 sps:$4 sm:$0xff]  }
 0x433   : > { %v4983_v36 = vld [vmem:[%s6703_s4 + $0x120] ss:$16 sps:$4 sm:$0xff]   ;;  %v4986_v59 = vld [vmem:[%s6703_s4 + $0xc] ss:$16 sps:$4 sm:$0xff]  }
 0x434   : > { %v1760_v15 = vpop.permute.xlu0 %1759  ;;  %v1758_v35 = vpop.permute.xlu1 %1757  ;;  %v1943_v19 = vsel %vm583_vm3, %v1938_v61, %v1942_v8  ;;  %v1941_v55 = vsel %vm583_vm3, %v1936_v2, %v1940_v63  ;;  %v4974_v2 = vld [vmem:[%s6703_s4 + $0xc0] ss:$16 sps:$4 sm:$0xff]   ;;  %v4975_v61 = vld [vmem:[%s6703_s4 + $0xe4] ss:$16 sps:$4 sm:$0xff]  }
 0x435   : > { %v1770_v48 = vsel %vm1765_vm10, %v1758_v35, %v1760_v15  ;;  %v1787_v60 = vsel %vm1765_vm10, %v1760_v15, %v1758_v35  ;;  %2415 = vmatmul.mubr.bf16.gmra.mrb[48].mxu0 %v4959_v16  ;;  %2509 = vmatprep.subr.bf16.mxu0 %v1943_v19  ;;  %v4984_v16 = vld [vmem:[%s6703_s4 + $0x8] ss:$16 sps:$4 sm:$0xff]   ;;  %v4993_v35 = vld [vmem:[%s6703_s4 + $0x6c] ss:$16 sps:$4 sm:$0xff]  }
 0x436   : > { %v1944_v14 = vrot.slane %v1770_v48, 2  ;;  %v1946_v57 = vrot.slane %v1787_v60, 2  ;;  %2510 = vmatpush1.bf16.msra.mxu0 %v1941_v55  ;;  %2424 = vmatprep.mubr.bf16.mxu0 %v4960_v23  ;;  %v4990_v23 = vld [vmem:[%s6703_s4 + $0x4c] ss:$16 sps:$4 sm:$0xff]   ;;  %v4992_v15 = vld [vmem:[%s6703_s4 + $0x48] ss:$16 sps:$4 sm:$0xff]  }
 0x437   : > { %v4995_v19 = vld [vmem:[%s6703_s4 + $0x68] ss:$16 sps:$4 sm:$0xff]   ;;  %v4996_v55 = vld [vmem:[%s6703_s4 + $0x8c] ss:$16 sps:$4 sm:$0xff]  }
 0x438   : > { %v1764_v0 = vpop.permute.xlu0 %1763  ;;  %v1762_v18 = vpop.permute.xlu1 %1761  ;;  %v1947_v5 = vsel %vm583_vm3, %v1942_v8, %v1946_v57  ;;  %v1945_v13 = vsel %vm583_vm3, %v1940_v63, %v1944_v14  ;;  %v4987_v63 = vld [vmem:[%s6703_s4 + $0x2c] ss:$16 sps:$4 sm:$0xff]   ;;  %v4989_v8 = vld [vmem:[%s6703_s4 + $0x28] ss:$16 sps:$4 sm:$0xff]  }
 0x439   : > { %v1771_v20 = vsel %vm1765_vm10, %v1762_v18, %v1764_v0  ;;  %v1790_v3 = vsel %vm1765_vm10, %v1764_v0, %v1762_v18  ;;  %2511 = vmatprep.subr.bf16.mxu0 %v1947_v5  ;;  %v4998_v48 = vld [vmem:[%s6703_s4 + $0x88] ss:$16 sps:$4 sm:$0xff]   ;;  %v4999_v60 = vld [vmem:[%s6703_s4 + $0xac] ss:$16 sps:$4 sm:$0xff]  }
 0x43a   : > { %v1948_v21 = vrot.slane %v1771_v20, 2  ;;  %v1950_v22 = vrot.slane %v1790_v3, 2  ;;  %2512 = vmatpush1.bf16.msra.mxu0 %v1945_v13  ;;  %v5004_v0 = vld [vmem:[%s6703_s4 + $0xc8] ss:$16 sps:$4 sm:$0xff]   ;;  %v5005_v18 = vld [vmem:[%s6703_s4 + $0xec] ss:$16 sps:$4 sm:$0xff]  }
 0x43b   : > { %v5007_v5 = vld [vmem:[%s6703_s4 + $0xe8] ss:$16 sps:$4 sm:$0xff]   ;;  %v5008_v13 = vld [vmem:[%s6703_s4 + $0x10c] ss:$16 sps:$4 sm:$0xff]  }
 0x43c   : > { %v1794_v25 = vpop.permute.xlu0 %1793  ;;  %v1792_v27 = vpop.permute.xlu1 %1791  ;;  %v1951_v26 = vsel %vm583_vm3, %v1946_v57, %v1950_v22  ;;  %v1949_v29 = vsel %vm583_vm3, %v1944_v14, %v1948_v21  ;;  %v5001_v14 = vld [vmem:[%s6703_s4 + $0xa8] ss:$16 sps:$4 sm:$0xff]   ;;  %v5002_v57 = vld [vmem:[%s6703_s4 + $0xcc] ss:$16 sps:$4 sm:$0xff]  }
 0x43d   : > { %2425 = vmatmul.mubr.bf16.gmra.mrb[52].mxu0 %v4962_v7  ;;  %2513 = vmatprep.subr.bf16.mxu0 %v1951_v26  ;;  %v1830_v28 = vsel %vm1815_vm11, %v1794_v25, %v1792_v27  ;;  %v1816_v10 = vsel %vm1815_vm11, %v1792_v27, %v1794_v25  ;;  %v5010_v20 = vld [vmem:[%s6703_s4 + $0x108] ss:$16 sps:$4 sm:$0xff]   ;;  %v5011_v3 = vld [vmem:[%s6703_s4 + $0x12c] ss:$16 sps:$4 sm:$0xff]  }
 0x43e   : > { %2514 = vmatpush1.bf16.msra.mxu0 %v1949_v29  ;;  %2434 = vmatprep.mubr.bf16.mxu0 %v4963_v6  ;;  %v5013_v7 = vld [vmem:[%s6703_s4 + $0x128] ss:$16 sps:$4 sm:$0xff]   ;;  %v5016_v21 = vld [vmem:[%s6705_s6 + $0x4] ss:$8 sps:$4 sm:$0xff]  }
 0x43f   : > { %2515 = vmatprep.subr.bf16.mxu0 %v1830_v28  ;;  %4502 = vmatprep.mubr.msk.bf16.mxu1 %vm2713_vm13, %v5016_v21 }
 0x440   : > { %v1798_v31 = vpop.permute.xlu0 %1797  ;;  %v1796_v32 = vpop.permute.xlu1 %1795 }
 0x441   : > { %v1834_v62 = vsel %vm1815_vm11, %v1798_v31, %v1796_v32  ;;  %v1817_v44 = vsel %vm1815_vm11, %v1796_v32, %v1798_v31 }
 0x442   : > { %2516 = vmatpush1.bf16.msra.mxu0 %v1816_v10 }
 0x443   : > { %2517 = vmatprep.subr.bf16.mxu0 %v1834_v62 }
 0x444   : > { %v1802_v42 = vpop.permute.xlu0 %1801  ;;  %v1800_v43 = vpop.permute.xlu1 %1799 }
 0x445   : > { %2435 = vmatmul.mubr.bf16.gmra.mrb[56].mxu0 %v4965_v39  ;;  %v1838_v45 = vsel %vm1815_vm11, %v1802_v42, %v1800_v43  ;;  %v1818_v33 = vsel %vm1815_vm11, %v1800_v43, %v1802_v42 }
 0x446   : > { %2518 = vmatpush1.bf16.msra.mxu0 %v1817_v44  ;;  %2444 = vmatprep.mubr.bf16.mxu0 %v4966_v41 }
 0x447   : > { %2519 = vmatprep.subr.bf16.mxu0 %v1838_v45 }
 0x448   : > { %v1806_v50 = vpop.permute.xlu0 %1805  ;;  %v1804_v30 = vpop.permute.xlu1 %1803 }
 0x449   : > { %v1842_v51 = vsel %vm1815_vm11, %v1806_v50, %v1804_v30  ;;  %v1819_v53 = vsel %vm1815_vm11, %v1804_v30, %v1806_v50 }
 0x44a   : > { %2520 = vmatpush1.bf16.msra.mxu0 %v1818_v33 }
 0x44b   : > { %2521 = vmatprep.subr.bf16.mxu0 %v1842_v51 }
 0x44c   : > { %v1810_v40 = vpop.permute.xlu0 %1809  ;;  %v1808_v47 = vpop.permute.xlu1 %1807 }
 0x44d   : > { %2445 = vmatmul.mubr.bf16.gmra.mrb[60].mxu0 %v4968_v12  ;;  %v1846_v34 = vsel %vm1815_vm11, %v1810_v40, %v1808_v47  ;;  %v1820_v24 = vsel %vm1815_vm11, %v1808_v47, %v1810_v40 }
 0x44e   : > { %2522 = vmatpush1.bf16.msra.mxu0 %v1819_v53  ;;  %2454 = vmatprep.mubr.bf16.mxu0 %v4969_v38 }
 0x44f   : > { %2523 = vmatprep.subr.bf16.mxu0 %v1846_v34 }
 0x450   : > { %v1814_v37 = vpop.permute.xlu0 %1813  ;;  %v1812_v52 = vpop.permute.xlu1 %1811 }
 0x451   : > { %v1850_v46 = vsel %vm1815_vm11, %v1814_v37, %v1812_v52  ;;  %v1821_v56 = vsel %vm1815_vm11, %v1812_v52, %v1814_v37 }
 0x452   : > { %2524 = vmatpush1.bf16.msra.mxu0 %v1820_v24  ;;  %v2368_v58 = vsel %vm602_vm6, %v1821_v56, 0 }
 0x453   : > { %4481 = vmatprep.subr.msk.bf16.mxu0 %vm602_vm6, %v1850_v46 }
 0x455   : > { %2455 = vmatmul.mubr.bf16.gmra.mrb[64].mxu0 %v4971_v54 }
 0x456   : > { %2526 = vmatpush1.bf16.msra.mxu0 %v2368_v58  ;;  %2464 = vmatprep.mubr.bf16.mxu0 %v4972_v49 }
 0x45d   : > { %2465 = vmatmul.mubr.bf16.gmra.mrb[68].mxu0 %v4974_v2 }
 0x45e   : > { %2474 = vmatprep.mubr.bf16.mxu0 %v4975_v61 }
 0x461   : > { %v2054_v6 = vpop.permute.xlu0 %2053  ;;  %v2049_v27 = vpop.permute.xlu1 %2048 }
 0x465   : > { %2475 = vmatmul.mubr.bf16.gmra.mrb[72].mxu0 %v4977_v1  ;;  %v2064_v42 = vpop.permute.xlu0 %2063  ;;  %v2059_v44 = vpop.permute.xlu1 %2058 }
 0x466   : > { %2484 = vmatprep.mubr.bf16.mxu0 %v4978_v4 }
 0x469   : > { %v2074_v53 = vpop.permute.xlu0 %2073  ;;  %v2069_v37 = vpop.permute.xlu1 %2068 }
 0x46d   : > { %2485 = vmatmul.mubr.bf16.gmra.mrb[76].mxu0 %v4980_v9  ;;  %v2084_v1 = vpop.permute.xlu0 %2083  ;;  %v2079_v9 = vpop.permute.xlu1 %2078 }
 0x46e   : > { %2494 = vmatprep.mubr.bf16.mxu0 %v4981_v11 }
 0x475   : > { %2495 = vmatmul.mubr.bf16.gmra.mrb[80].mxu0 %v4983_v36 }
 0x476   : > { %4482 = vmatprep.mubr.msk.bf16.mxu0 %vm2336_vm12, %v4986_v59 }
 0x47d   : > { %2538 = vmatmul.mubr.bf16.vlgmr.msra.gmra.mrb[44].mxu0 %v4984_v16 }
 0x47e   : > { %4483 = vmatprep.mubr.msk.bf16.mxu0 %vm2336_vm12, %v4987_v63 }
 0x485   : > { %2548 = vmatmul.mubr.bf16.gmra.mrb[48].mxu0 %v4989_v8 }
 0x486   : > { %4484 = vmatprep.mubr.msk.bf16.mxu0 %vm2336_vm12, %v4990_v23 }
 0x48d   : > { %2558 = vmatmul.mubr.bf16.gmra.mrb[52].mxu0 %v4992_v15 }
 0x48e   : > { %4485 = vmatprep.mubr.msk.bf16.mxu0 %vm2336_vm12, %v4993_v35 }
 0x495   : > { %2568 = vmatmul.mubr.bf16.gmra.mrb[56].mxu0 %v4995_v19  ;;  %v2094_v19 = vpop.permute.xlu0 %2093 }
 0x496   : > { %4486 = vmatprep.mubr.msk.bf16.mxu0 %vm2336_vm12, %v4996_v55 }
 0x49d   : > { %2578 = vmatmul.mubr.bf16.gmra.mrb[60].mxu0 %v4998_v48  ;;  %v2089_v48 = vpop.permute.xlu1 %2088 }
 0x49e   : > { %4487 = vmatprep.mubr.msk.bf16.mxu0 %vm2336_vm12, %v4999_v60 }
 0x4a5   : > { %2588 = vmatmul.mubr.bf16.gmra.mrb[64].mxu0 %v5001_v14 }
 0x4a6   : > { %4488 = vmatprep.mubr.msk.bf16.mxu0 %vm2336_vm12, %v5002_v57 }
 0x4ad   : > { %2598 = vmatmul.mubr.bf16.gmra.mrb[68].mxu0 %v5004_v0 }
 0x4ae   : > { %4489 = vmatprep.mubr.msk.bf16.mxu0 %vm2336_vm12, %v5005_v18 }
 0x4b5   : > { %2608 = vmatmul.mubr.bf16.gmra.mrb[72].mxu0 %v5007_v5 }
 0x4b6   : > { %4490 = vmatprep.mubr.msk.bf16.mxu0 %vm2336_vm12, %v5008_v13 }
 0x4bd   : > { %2618 = vmatmul.mubr.bf16.gmra.mrb[76].mxu0 %v5010_v20 }
 0x4be   : > { %4491 = vmatprep.mubr.msk.bf16.mxu0 %vm2336_vm12, %v5011_v3 }
 0x4c5   : > { %2628 = vmatmul.mubr.bf16.gmra.mrb[80].mxu0 %v5013_v7  ;;  %v2104_v7 = vpop.permute.xlu0 %2103 }
 0x4c6   : > { %4080 = vmatprep.mubr.bf16.mxu0 %v5125_v17 }
 0x550   : > { %v2539_v22 = vpop.f32.mrb[44].mxu0 }
 0x551   : > { %v2541_v25 = vpop.f32.mrb[45].mxu0  ;;  %v4595_v29 = vadd.f32 %v2539_v22, %v2049_v27  ;;  %v2099_v22 = vpop.permute.xlu1 %2098 }
 0x552   : > { %v2543_v26 = vpop.f32.mrb[46].mxu0  ;;  %v4596_v32 = vadd.f32 %v2541_v25, %v2049_v27 }
 0x553   : > { %v4597_v28 = vadd.f32 %v2543_v26, %v2054_v6  ;;  %v2545_v31 = vpop.f32.mrb[47].mxu0 }
 0x554   : > { %v4598_v10 = vadd.f32 %v2545_v31, %v2054_v6 }
 0x555   : > { %v6124_v62 = vpack.c.bf16 %v4597_v28, %v4595_v29 }
 0x556   : > { %v6126_v39 = vpack.c.bf16 %v4598_v10, %v4596_v32 }
 0x558   : > { %v2549_v41 = vpop.f32.mrb[48].mxu0  ;;  %2729 = vmatprep.subr.bf16.mxu1 %v6126_v39 }
 0x559   : > { %v2551_v43 = vpop.f32.mrb[49].mxu0  ;;  %2730 = vmatpush1.bf16.msra.mxu1 %v6124_v62  ;;  %v4599_v50 = vadd.f32 %v2549_v41, %v2059_v44  ;;  %v2114_v41 = vpop.permute.xlu0 %2113 }
 0x55a   : > { %v2553_v45 = vpop.f32.mrb[50].mxu0  ;;  %v4600_v51 = vadd.f32 %v2551_v43, %v2059_v44  ;;  %v2109_v43 = vpop.permute.xlu1 %2108 }
 0x55b   : > { %v4601_v30 = vadd.f32 %v2553_v45, %v2064_v42  ;;  %v2555_v33 = vpop.f32.mrb[51].mxu0 }
 0x55c   : > { %v4602_v12 = vadd.f32 %v2555_v33, %v2064_v42 }
 0x55d   : > { %v6130_v38 = vpack.c.bf16 %v4601_v30, %v4599_v50 }
 0x55e   : > { %v6132_v40 = vpack.c.bf16 %v4602_v12, %v4600_v51 }
 0x560   : > { %v2559_v47 = vpop.f32.mrb[52].mxu0  ;;  %2731 = vmatprep.subr.bf16.mxu1 %v6132_v40 }
 0x561   : > { %v2561_v34 = vpop.f32.mrb[53].mxu0  ;;  %2732 = vmatpush1.bf16.msra.mxu1 %v6130_v38  ;;  %v4603_v24 = vadd.f32 %v2559_v47, %v2069_v37 }
 0x562   : > { %v2563_v52 = vpop.f32.mrb[54].mxu0  ;;  %v4604_v56 = vadd.f32 %v2561_v34, %v2069_v37  ;;  %v2124_v34 = vpop.permute.xlu0 %2123 }
 0x563   : > { %v4605_v46 = vadd.f32 %v2563_v52, %v2074_v53  ;;  %v2565_v54 = vpop.f32.mrb[55].mxu0  ;;  %v2119_v52 = vpop.permute.xlu1 %2118 }
 0x564   : > { %v4606_v49 = vadd.f32 %v2565_v54, %v2074_v53 }
 0x565   : > { %v6136_v58 = vpack.c.bf16 %v4605_v46, %v4603_v24 }
 0x566   : > { %v6138_v2 = vpack.c.bf16 %v4606_v49, %v4604_v56 }
 0x568   : > { %v2569_v61 = vpop.f32.mrb[56].mxu0  ;;  %2733 = vmatprep.subr.bf16.mxu1 %v6138_v2 }
 0x569   : > { %v2571_v4 = vpop.f32.mrb[57].mxu0  ;;  %2734 = vmatpush1.bf16.msra.mxu1 %v6136_v58  ;;  %v4607_v36 = vadd.f32 %v2569_v61, %v2079_v9 }
 0x56a   : > { %v2573_v11 = vpop.f32.mrb[58].mxu0  ;;  %v4608_v63 = vadd.f32 %v2571_v4, %v2079_v9 }
 0x56b   : > { %v4609_v59 = vadd.f32 %v2573_v11, %v2084_v1  ;;  %v2575_v16 = vpop.f32.mrb[59].mxu0  ;;  %v2134_v11 = vpop.permute.xlu0 %2133 }
 0x56c   : > { %v4610_v8 = vadd.f32 %v2575_v16, %v2084_v1 }
 0x56d   : > { %v6142_v23 = vpack.c.bf16 %v4609_v59, %v4607_v36  ;;  %v2129_v59 = vpop.permute.xlu1 %2128 }
 0x56e   : > { %v6144_v15 = vpack.c.bf16 %v4610_v8, %v4608_v63 }
 0x570   : > { %v2579_v35 = vpop.f32.mrb[60].mxu0  ;;  %2735 = vmatprep.subr.bf16.mxu1 %v6144_v15 }
 0x571   : > { %v2581_v55 = vpop.f32.mrb[61].mxu0  ;;  %2736 = vmatpush1.bf16.msra.mxu1 %v6142_v23  ;;  %v4611_v14 = vadd.f32 %v2579_v35, %v2089_v48 }
 0x572   : > { %v2583_v60 = vpop.f32.mrb[62].mxu0  ;;  %v4612_v18 = vadd.f32 %v2581_v55, %v2089_v48 }
 0x573   : > { %v4613_v57 = vadd.f32 %v2583_v60, %v2094_v19  ;;  %v2585_v0 = vpop.f32.mrb[63].mxu0 }
 0x574   : > { %v4614_v5 = vadd.f32 %v2585_v0, %v2094_v19 }
 0x575   : > { %v6148_v13 = vpack.c.bf16 %v4613_v57, %v4611_v14  ;;  %v2144_v57 = vpop.permute.xlu0 %2143 }
 0x576   : > { %v6150_v20 = vpack.c.bf16 %v4614_v5, %v4612_v18  ;;  %v2139_v18 = vpop.permute.xlu1 %2138 }
 0x578   : > { %v2589_v3 = vpop.f32.mrb[64].mxu0  ;;  %2737 = vmatprep.subr.bf16.mxu1 %v6150_v20 }
 0x579   : > { %v2591_v21 = vpop.f32.mrb[65].mxu0  ;;  %2738 = vmatpush1.bf16.msra.mxu1 %v6148_v13  ;;  %v4615_v25 = vadd.f32 %v2589_v3, %v2099_v22 }
 0x57a   : > { %v2593_v6 = vpop.f32.mrb[66].mxu0  ;;  %v4616_v29 = vadd.f32 %v2591_v21, %v2099_v22 }
 0x57b   : > { %v4617_v27 = vadd.f32 %v2593_v6, %v2104_v7  ;;  %v2595_v26 = vpop.f32.mrb[67].mxu0 }
 0x57c   : > { %v4618_v28 = vadd.f32 %v2595_v26, %v2104_v7  ;;  %v5014_v26 = vld [vmem:[%s6705_s6] ss:$8 sps:$4 sm:$0xff]  }
 0x57d   : > { %v6154_v31 = vpack.c.bf16 %v4617_v27, %v4615_v25 }
 0x57e   : > { %v6156_v32 = vpack.c.bf16 %v4618_v28, %v4616_v29  ;;  %v5017_v29 = vld [vmem:[%s6705_s6 + $0x14] ss:$8 sps:$4 sm:$0xff]   ;;  %v5019_v28 = vld [vmem:[%s6705_s6 + $0x10] ss:$8 sps:$4 sm:$0xff]  }
 0x580   : > { %v2599_v10 = vpop.f32.mrb[68].mxu0  ;;  %2739 = vmatprep.subr.bf16.mxu1 %v6156_v32 }
 0x581   : > { %v2601_v42 = vpop.f32.mrb[69].mxu0  ;;  %2740 = vmatpush1.bf16.msra.mxu1 %v6154_v31  ;;  %v4619_v45 = vadd.f32 %v2599_v10, %v2109_v43  ;;  %v5020_v10 = vld [vmem:[%s6705_s6 + $0x24] ss:$8 sps:$4 sm:$0xff]  }
 0x582   : > { %v2603_v44 = vpop.f32.mrb[70].mxu0  ;;  %v4620_v33 = vadd.f32 %v2601_v42, %v2109_v43  ;;  %v5041_v42 = vld [vmem:[%s6705_s6 + $0x94] ss:$8 sps:$4 sm:$0xff]   ;;  %v5043_v43 = vld [vmem:[%s6705_s6 + $0x90] ss:$8 sps:$4 sm:$0xff]  }
 0x583   : > { %v4621_v50 = vadd.f32 %v2603_v44, %v2114_v41  ;;  %v2605_v30 = vpop.f32.mrb[71].mxu0 }
 0x584   : > { %v4622_v51 = vadd.f32 %v2605_v30, %v2114_v41  ;;  %v5040_v41 = vld [vmem:[%s6705_s6 + $0x80] ss:$8 sps:$4 sm:$0xff]  }
 0x585   : > { %v6160_v12 = vpack.c.bf16 %v4621_v50, %v4619_v45 }
 0x586   : > { %v6162_v47 = vpack.c.bf16 %v4622_v51, %v4620_v33 }
 0x588   : > { %v2609_v53 = vpop.f32.mrb[72].mxu0  ;;  %2741 = vmatprep.subr.bf16.mxu1 %v6162_v47 }
 0x589   : > { %v2611_v37 = vpop.f32.mrb[73].mxu0  ;;  %2742 = vmatpush1.bf16.msra.mxu1 %v6160_v12  ;;  %v4623_v46 = vadd.f32 %v2609_v53, %v2119_v52 }
 0x58a   : > { %v2613_v24 = vpop.f32.mrb[74].mxu0  ;;  %v4624_v49 = vadd.f32 %v2611_v37, %v2119_v52 }
 0x58b   : > { %v4625_v54 = vadd.f32 %v2613_v24, %v2124_v34  ;;  %v2615_v56 = vpop.f32.mrb[75].mxu0 }
 0x58c   : > { %v4626_v61 = vadd.f32 %v2615_v56, %v2124_v34 }
 0x58d   : > { %v6166_v1 = vpack.c.bf16 %v4625_v54, %v4623_v46 }
 0x58e   : > { %v2653_v4 = vpack.c.bf16 %v4626_v61, %v4624_v49 }
 0x590   : > { %v2619_v9 = vpop.f32.mrb[76].mxu0  ;;  %2743 = vmatprep.subr.bf16.mxu1 %v2653_v4 }
 0x591   : > { %v2621_v36 = vpop.f32.mrb[77].mxu0  ;;  %2744 = vmatpush1.bf16.msra.mxu1 %v6166_v1  ;;  %v4627_v63 = vadd.f32 %v2619_v9, %v2129_v59 }
 0x592   : > { %v2623_v16 = vpop.f32.mrb[78].mxu0  ;;  %v4628_v19 = vadd.f32 %v2621_v36, %v2129_v59 }
 0x593   : > { %v4629_v8 = vadd.f32 %v2623_v16, %v2134_v11  ;;  %v2625_v35 = vpop.f32.mrb[79].mxu0 }
 0x594   : > { %v4630_v55 = vadd.f32 %v2625_v35, %v2134_v11 }
 0x595   : > { %v2654_v48 = vpack.c.bf16 %v4629_v8, %v4627_v63 }
 0x596   : > { %v2655_v60 = vpack.c.bf16 %v4630_v55, %v4628_v19 }
 0x598   : > { %v2629_v14 = vpop.f32.mrb[80].mxu0  ;;  %2745 = vmatprep.subr.bf16.mxu1 %v2655_v60 }
 0x599   : > { %v2631_v0 = vpop.f32.mrb[81].mxu0  ;;  %2746 = vmatpush1.bf16.msra.mxu1 %v2654_v48  ;;  %v4631_v3 = vadd.f32 %v2629_v14, %v2139_v18 }
 0x59a   : > { %v2633_v5 = vpop.f32.mrb[82].mxu0  ;;  %v4632_v22 = vadd.f32 %v2631_v0, %v2139_v18 }
 0x59b   : > { %v4633_v7 = vadd.f32 %v2633_v5, %v2144_v57  ;;  %v2635_v21 = vpop.f32.mrb[83].mxu0 }
 0x59c   : > { %v4634_v6 = vadd.f32 %v2635_v21, %v2144_v57 }
 0x59d   : > { %v2656_v25 = vpack.c.bf16 %v4633_v7, %v4631_v3 }
 0x59e   : > { %v2657_v27 = vpack.c.bf16 %v4634_v6, %v4632_v22 }
 0x5a0   : > { %2747 = vmatprep.subr.bf16.mxu1 %v2657_v27 }
 0x5a1   : > { %2748 = vmatpush1.bf16.msra.mxu1 %v2656_v25 }
 0x5a2   : > { %2883 = vmatprep.subr.bf16.mxu1 %v6126_v39  ;;  %v5023_v39 = vld [vmem:[%s6705_s6 + $0x34] ss:$8 sps:$4 sm:$0xff]  }
 0x5a4   : > { %2762 = vmatmul.mubr.bf16.vlgmr.msra.gmra.mrb[48].mxu1 %v5014_v26 }
 0x5a5   : > { %2884 = vmatpush1.bf16.msra.mxu1 %v6124_v62  ;;  %4503 = vmatprep.mubr.msk.bf16.mxu1 %vm2713_vm13, %v5017_v29  ;;  %v5022_v62 = vld [vmem:[%s6705_s6 + $0x20] ss:$8 sps:$4 sm:$0xff]  }
 0x5a6   : > { %2885 = vmatprep.subr.bf16.mxu1 %v6132_v40  ;;  %v5026_v40 = vld [vmem:[%s6705_s6 + $0x44] ss:$8 sps:$4 sm:$0xff]  }
 0x5a9   : > { %2886 = vmatpush1.bf16.msra.mxu1 %v6130_v38  ;;  %v5025_v38 = vld [vmem:[%s6705_s6 + $0x30] ss:$8 sps:$4 sm:$0xff]  }
 0x5aa   : > { %2887 = vmatprep.subr.bf16.mxu1 %v6138_v2  ;;  %v5031_v2 = vld [vmem:[%s6705_s6 + $0x54] ss:$8 sps:$4 sm:$0xff]  }
 0x5ac   : > { %2772 = vmatmul.mubr.bf16.gmra.mrb[52].mxu1 %v5019_v28 }
 0x5ad   : > { %2888 = vmatpush1.bf16.msra.mxu1 %v6136_v58  ;;  %4504 = vmatprep.mubr.msk.bf16.mxu1 %vm2713_vm13, %v5020_v10  ;;  %v5028_v58 = vld [vmem:[%s6705_s6 + $0x40] ss:$8 sps:$4 sm:$0xff]  }
 0x5ae   : > { %2889 = vmatprep.subr.bf16.mxu1 %v6144_v15  ;;  %v5032_v15 = vld [vmem:[%s6705_s6 + $0x64] ss:$8 sps:$4 sm:$0xff]  }
 0x5b1   : > { %2890 = vmatpush1.bf16.msra.mxu1 %v6142_v23  ;;  %v5029_v23 = vld [vmem:[%s6705_s6 + $0x50] ss:$8 sps:$4 sm:$0xff]  }
 0x5b2   : > { %2891 = vmatprep.subr.bf16.mxu1 %v6150_v20  ;;  %v5035_v20 = vld [vmem:[%s6705_s6 + $0x74] ss:$8 sps:$4 sm:$0xff]  }
 0x5b4   : > { %2782 = vmatmul.mubr.bf16.gmra.mrb[56].mxu1 %v5022_v62 }
 0x5b5   : > { %2892 = vmatpush1.bf16.msra.mxu1 %v6148_v13  ;;  %4505 = vmatprep.mubr.msk.bf16.mxu1 %vm2713_vm13, %v5023_v39  ;;  %v5034_v13 = vld [vmem:[%s6705_s6 + $0x60] ss:$8 sps:$4 sm:$0xff]  }
 0x5b6   : > { %2893 = vmatprep.subr.bf16.mxu1 %v6156_v32  ;;  %v5038_v32 = vld [vmem:[%s6705_s6 + $0x84] ss:$8 sps:$4 sm:$0xff]  }
 0x5b9   : > { %2894 = vmatpush1.bf16.msra.mxu1 %v6154_v31  ;;  %v5037_v31 = vld [vmem:[%s6705_s6 + $0x70] ss:$8 sps:$4 sm:$0xff]  }
 0x5ba   : > { %2895 = vmatprep.subr.bf16.mxu1 %v6162_v47 }
 0x5bc   : > { %2792 = vmatmul.mubr.bf16.gmra.mrb[60].mxu1 %v5025_v38 }
 0x5bd   : > { %2896 = vmatpush1.bf16.msra.mxu1 %v6160_v12  ;;  %4506 = vmatprep.mubr.msk.bf16.mxu1 %vm2713_vm13, %v5026_v40 }
 0x5be   : > { %2897 = vmatprep.subr.bf16.mxu1 %v2653_v4 }
 0x5c1   : > { %2898 = vmatpush1.bf16.msra.mxu1 %v6166_v1 }
 0x5c2   : > { %2899 = vmatprep.subr.bf16.mxu1 %v2655_v60 }
 0x5c4   : > { %2802 = vmatmul.mubr.bf16.gmra.mrb[64].mxu1 %v5028_v58 }
 0x5c5   : > { %2900 = vmatpush1.bf16.msra.mxu1 %v2654_v48  ;;  %4527 = vmatprep.mubr.msk.bf16.mxu1 %vm2713_vm13, %v5031_v2 }
 0x5c6   : > { %2901 = vmatprep.subr.bf16.mxu1 %v2657_v27 }
 0x5c9   : > { %2902 = vmatpush1.bf16.msra.mxu1 %v2656_v25 }
 0x5cc   : > { %2916 = vmatmul.mubr.bf16.vlgmr.msra.gmra.mrb[68].mxu1 %v5029_v23 }
 0x5cd   : > { %4528 = vmatprep.mubr.msk.bf16.mxu1 %vm2713_vm13, %v5032_v15 }
 0x5d4   : > { %2926 = vmatmul.mubr.bf16.gmra.mrb[72].mxu1 %v5034_v13 }
 0x5d5   : > { %4529 = vmatprep.mubr.msk.bf16.mxu1 %vm2713_vm13, %v5035_v20 }
 0x5dc   : > { %2936 = vmatmul.mubr.bf16.gmra.mrb[76].mxu1 %v5037_v31 }
 0x5dd   : > { %4530 = vmatprep.mubr.msk.bf16.mxu1 %vm2713_vm13, %v5038_v32 }
 0x5e4   : > { %2946 = vmatmul.mubr.bf16.gmra.mrb[80].mxu1 %v5040_v41 }
 0x5e5   : > { %4531 = vmatprep.mubr.msk.bf16.mxu1 %vm2713_vm13, %v5041_v42 }
 0x5ec   : > { %2956 = vmatmul.mubr.bf16.gmra.mrb[84].mxu1 %v5043_v43 }
 0x677   : > { %v2763_v44 = vpop.f32.mrb[48].mxu1 }
 0x678   : > { %v2765_v45 = vpop.f32.mrb[49].mxu1 }
 0x679   : > { %v2767_v50 = vpop.f32.mrb[50].mxu1 }
 0x67a   : > { %v2769_v30 = vpop.f32.mrb[51].mxu1 }
 0x67f   : > { %v2773_v33 = vpop.f32.mrb[52].mxu1 }
 0x680   : > { %v2775_v51 = vpop.f32.mrb[53].mxu1 }
 0x681   : > { %v2777_v12 = vpop.f32.mrb[54].mxu1 }
 0x682   : > { %v2779_v47 = vpop.f32.mrb[55].mxu1 }
 0x687   : > { %v2783_v53 = vpop.f32.mrb[56].mxu1 }
 0x688   : > { %v2785_v34 = vpop.f32.mrb[57].mxu1 }
 0x689   : > { %v2787_v37 = vpop.f32.mrb[58].mxu1 }
 0x68a   : > { %v2789_v52 = vpop.f32.mrb[59].mxu1 }
 0x68f   : > { %v2793_v24 = vpop.f32.mrb[60].mxu1 }
 0x690   : > { %v2795_v46 = vpop.f32.mrb[61].mxu1 }
 0x691   : > { %v2797_v54 = vpop.f32.mrb[62].mxu1 }
 0x692   : > { %v2799_v56 = vpop.f32.mrb[63].mxu1 }
 0x697   : > { %v2803_v49 = vpop.f32.mrb[64].mxu1 }
 0x698   : > { %v2805_v61 = vpop.f32.mrb[65].mxu1 }
 0x699   : > { %v2807_v1 = vpop.f32.mrb[66].mxu1 }
 0x69a   : > { %v2809_v4 = vpop.f32.mrb[67].mxu1 }
 0x69f   : > { %v2917_v9 = vpop.f32.mrb[68].mxu1 }
 0x6a0   : > { %v6250_v11 = vmax.f32 %v2763_v44, %v2917_v9  ;;  %v2919_v36 = vpop.f32.mrb[69].mxu1 }
 0x6a1   : > { %v6252_v59 = vmax.f32 %v2765_v45, %v2919_v36  ;;  %v2921_v16 = vpop.f32.mrb[70].mxu1 }
 0x6a2   : > { %v6254_v63 = vmax.f32 %v2767_v50, %v2921_v16  ;;  %v2923_v8 = vpop.f32.mrb[71].mxu1 }
 0x6a3   : > { %v4828_v35 = vpack.i.bf16 %v6252_v59, %v6250_v11  ;;  %v6258_v19 = vmax.f32 %v2769_v30, %v2923_v8 }
 0x6a5   : > { %v4833_v55 = vpack.i.bf16 %v6258_v19, %v6254_v63  ;;  %4829 = vrot.lane.b32.xlu1 %v4828_v35, %s5124_s19 }
 0x6a7   : > { %4834 = vrot.lane.b32.xlu0 %v4833_v55, %s5124_s19  ;;  %v2927_v48 = vpop.f32.mrb[72].mxu1 }
 0x6a8   : > { %v6264_v60 = vmax.f32 %v2773_v33, %v2927_v48  ;;  %v2929_v14 = vpop.f32.mrb[73].mxu1 }
 0x6a9   : > { %v6266_v57 = vmax.f32 %v2775_v51, %v2929_v14  ;;  %v2931_v0 = vpop.f32.mrb[74].mxu1 }
 0x6aa   : > { %v6268_v18 = vmax.f32 %v2777_v12, %v2931_v0  ;;  %v2933_v5 = vpop.f32.mrb[75].mxu1 }
 0x6ab   : > { %v4838_v3 = vpack.i.bf16 %v6266_v57, %v6264_v60  ;;  %v6272_v7 = vmax.f32 %v2779_v47, %v2933_v5 }
 0x6ad   : > { %v4843_v21 = vpack.i.bf16 %v6272_v7, %v6268_v18  ;;  %4839 = vrot.lane.b32.xlu1 %v4838_v3, %s5124_s19 }
 0x6af   : > { %4844 = vrot.lane.b32.xlu0 %v4843_v21, %s5124_s19  ;;  %v2937_v22 = vpop.f32.mrb[76].mxu1 }
 0x6b0   : > { %v6278_v6 = vmax.f32 %v2783_v53, %v2937_v22  ;;  %v2939_v25 = vpop.f32.mrb[77].mxu1 }
 0x6b1   : > { %v6280_v27 = vmax.f32 %v2785_v34, %v2939_v25  ;;  %v2941_v26 = vpop.f32.mrb[78].mxu1 }
 0x6b2   : > { %v6282_v29 = vmax.f32 %v2787_v37, %v2941_v26  ;;  %v2943_v28 = vpop.f32.mrb[79].mxu1 }
 0x6b3   : > { %v4848_v10 = vpack.i.bf16 %v6280_v27, %v6278_v6  ;;  %v6286_v62 = vmax.f32 %v2789_v52, %v2943_v28 }
 0x6b5   : > { %v4853_v39 = vpack.i.bf16 %v6286_v62, %v6282_v29  ;;  %4849 = vrot.lane.b32.xlu1 %v4848_v10, %s5124_s19 }
 0x6b7   : > { %4854 = vrot.lane.b32.xlu0 %v4853_v39, %s5124_s19  ;;  %v2947_v38 = vpop.f32.mrb[80].mxu1 }
 0x6b8   : > { %v6292_v40 = vmax.f32 %v2793_v24, %v2947_v38  ;;  %v2949_v58 = vpop.f32.mrb[81].mxu1 }
 0x6b9   : > { %v6294_v2 = vmax.f32 %v2795_v46, %v2949_v58  ;;  %v2951_v23 = vpop.f32.mrb[82].mxu1 }
 0x6ba   : > { %v6296_v15 = vmax.f32 %v2797_v54, %v2951_v23  ;;  %v2953_v13 = vpop.f32.mrb[83].mxu1 }
 0x6bb   : > { %v4858_v20 = vpack.i.bf16 %v6294_v2, %v6292_v40  ;;  %v6300_v31 = vmax.f32 %v2799_v56, %v2953_v13 }
 0x6bd   : > { %v4863_v32 = vpack.i.bf16 %v6300_v31, %v6296_v15  ;;  %4859 = vrot.lane.b32.xlu1 %v4858_v20, %s5124_s19 }
 0x6bf   : > { %4864 = vrot.lane.b32.xlu0 %v4863_v32, %s5124_s19  ;;  %v2957_v41 = vpop.f32.mrb[84].mxu1 }
 0x6c0   : > { %v6306_v42 = vmax.f32 %v2803_v49, %v2957_v41  ;;  %v2959_v43 = vpop.f32.mrb[85].mxu1 }
 0x6c1   : > { %v6308_v44 = vmax.f32 %v2805_v61, %v2959_v43  ;;  %v2961_v45 = vpop.f32.mrb[86].mxu1 }
 0x6c2   : > { %v6310_v50 = vmax.f32 %v2807_v1, %v2961_v45  ;;  %v2963_v30 = vpop.f32.mrb[87].mxu1 }
 0x6c3   : > { %v4868_v33 = vpack.i.bf16 %v6308_v44, %v6306_v42  ;;  %v6314_v51 = vmax.f32 %v2809_v4, %v2963_v30 }
 0x6c5   : > { %v4873_v12 = vpack.i.bf16 %v6314_v51, %v6310_v50  ;;  %4869 = vrot.lane.b32.xlu1 %v4868_v33, %s5124_s19 }
 0x6c7   : > { %4874 = vrot.lane.b32.xlu0 %v4873_v12, %s5124_s19  ;;  %s6719_s19 = smov 124  }
 0x717   : > { %v4830_v47 = vpop.permute.xlu1 %4829 }
 0x718   : > { %v4832_v53 = vunpack.i.h.bf16 %v4830_v47  ;;  %v4831_v34 = vunpack.i.l.bf16 %v4830_v47 }
 0x719   : > { %v4835_v37 = vpop.permute.xlu0 %4834 }
 0x71a   : > { %v3046_v52 = vsel %vm569_vm7, %v4831_v34, %v4832_v53  ;;  %v3086_v24 = vsel %vm569_vm7, %v4832_v53, %v4831_v34  ;;  %v4837_v46 = vunpack.i.h.bf16 %v4835_v37  ;;  %v4836_v54 = vunpack.i.l.bf16 %v4835_v37 }
 0x71b   : > { %v3096_v56 = vmax.f32 %v6250_v11, %v3046_v52  ;;  %v3097_v49 = vmax.f32 %v6252_v59, %v3086_v24 }
 0x71c   : > { %v3047_v61 = vsel %vm569_vm7, %v4836_v54, %v4837_v46  ;;  %v3087_v1 = vsel %vm569_vm7, %v4837_v46, %v4836_v54 }
 0x71d   : > { %v3098_v4 = vmax.f32 %v6254_v63, %v3047_v61  ;;  %v3099_v9 = vmax.f32 %v6258_v19, %v3087_v1  ;;  %v3116_v36 = vmax.f32 %v3096_v56, 0.0  ;;  %v3117_v16 = vmax.f32 %v3097_v49, 0.0 }
 0x71f   : > { %v3118_v8 = vmax.f32 %v3098_v4, 0.0  ;;  %v3119_v35 = vmax.f32 %v3099_v9, 0.0  ;;  %v4840_v55 = vpop.permute.xlu1 %4839 }
 0x720   : > { %v4842_v48 = vunpack.i.h.bf16 %v4840_v55  ;;  %v4841_v14 = vunpack.i.l.bf16 %v4840_v55 }
 0x721   : > { %v6328_v0 = vpack.c.bf16 %v3118_v8, %v3116_v36  ;;  %v6330_v11 = vpack.c.bf16 %v3119_v35, %v3117_v16  ;;  %v4845_v59 = vpop.permute.xlu0 %4844 }
 0x722   : > { %v3048_v5 = vsel %vm569_vm7, %v4841_v14, %v4842_v48  ;;  %v3088_v3 = vsel %vm569_vm7, %v4842_v48, %v4841_v14  ;;  %v4847_v21 = vunpack.i.h.bf16 %v4845_v59  ;;  %v4846_v63 = vunpack.i.l.bf16 %v4845_v59 }
 0x723   : > { %v3100_v19 = vmax.f32 %v6264_v60, %v3048_v5  ;;  %v3101_v22 = vmax.f32 %v6266_v57, %v3088_v3  ;;  %3651 = vmatprep.subr.bf16.mxu1 %v6330_v11  ;;  %3156 = vrot.lane.b32.xlu1 %v6328_v0, %s6719_s19 }
 0x724   : > { %v3049_v25 = vsel %vm569_vm7, %v4846_v63, %v4847_v21  ;;  %v3089_v26 = vsel %vm569_vm7, %v4847_v21, %v4846_v63  ;;  %3158 = vrot.lane.b32.xlu0 %v6330_v11, %s6719_s19  ;;  %3652 = vmatpush1.bf16.msra.mxu1 %v6328_v0 }
 0x725   : > { %v3102_v28 = vmax.f32 %v6268_v18, %v3049_v25  ;;  %v3103_v60 = vmax.f32 %v6272_v7, %v3089_v26  ;;  %v3120_v10 = vmax.f32 %v3100_v19, 0.0  ;;  %v3121_v57 = vmax.f32 %v3101_v22, 0.0 }
 0x727   : > { %v3122_v39 = vmax.f32 %v3102_v28, 0.0  ;;  %v3123_v38 = vmax.f32 %v3103_v60, 0.0  ;;  %v4850_v58 = vpop.permute.xlu1 %4849 }
 0x728   : > { %v4852_v23 = vunpack.i.h.bf16 %v4850_v58  ;;  %v4851_v13 = vunpack.i.l.bf16 %v4850_v58 }
 0x729   : > { %v6346_v20 = vpack.c.bf16 %v3122_v39, %v3120_v10  ;;  %v6348_v32 = vpack.c.bf16 %v3123_v38, %v3121_v57  ;;  %v4855_v41 = vpop.permute.xlu0 %4854 }
 0x72a   : > { %v3050_v43 = vsel %vm569_vm7, %v4851_v13, %v4852_v23  ;;  %v3090_v45 = vsel %vm569_vm7, %v4852_v23, %v4851_v13  ;;  %v4857_v30 = vunpack.i.h.bf16 %v4855_v41  ;;  %v4856_v18 = vunpack.i.l.bf16 %v4855_v41  ;;  %v3394_v41 = vld [vmem:[%s6707_s8 + $0x20] sm:$0xff] }
 0x72b   : > { %v3104_v7 = vmax.f32 %v6278_v6, %v3050_v43  ;;  %v3105_v33 = vmax.f32 %v6280_v27, %v3090_v45  ;;  %3653 = vmatprep.subr.bf16.mxu1 %v6348_v32  ;;  %3160 = vrot.lane.b32.xlu1 %v6346_v20, %s6719_s19  ;;  %v3397_v43 = vld [vmem:[%s6707_s8 + $0x38] sm:$0xff]  ;;  %v3396_v45 = vld [vmem:[%s6707_s8 + $0x30] sm:$0xff] }
 0x72c   : > { %v3051_v12 = vsel %vm569_vm7, %v4856_v18, %v4857_v30  ;;  %v3091_v47 = vsel %vm569_vm7, %v4857_v30, %v4856_v18  ;;  %3162 = vrot.lane.b32.xlu0 %v6348_v32, %s6719_s19  ;;  %3654 = vmatpush1.bf16.msra.mxu1 %v6346_v20  ;;  %v3399_v30 = vld [vmem:[%s6707_s8 + $0x48] sm:$0xff]  ;;  %v3398_v18 = vld [vmem:[%s6707_s8 + $0x40] sm:$0xff] }
 0x72d   : > { %v3106_v53 = vmax.f32 %v6282_v29, %v3051_v12  ;;  %v3107_v6 = vmax.f32 %v6286_v62, %v3091_v47  ;;  %v3124_v34 = vmax.f32 %v3104_v7, 0.0  ;;  %v3125_v27 = vmax.f32 %v3105_v33, 0.0  ;;  %v3401_v7 = vld [vmem:[%s6707_s8 + $0x58] sm:$0xff]  ;;  %v3400_v12 = vld [vmem:[%s6707_s8 + $0x50] sm:$0xff] }
 0x72f   : > { %v3126_v37 = vmax.f32 %v3106_v53, 0.0  ;;  %v3127_v52 = vmax.f32 %v3107_v6, 0.0  ;;  %v4860_v24 = vpop.permute.xlu1 %4859 }
 0x730   : > { %v4862_v46 = vunpack.i.h.bf16 %v4860_v24  ;;  %v4861_v54 = vunpack.i.l.bf16 %v4860_v24  ;;  %v3404_v24 = vld [vmem:[%s6707_s8 + $0x70] sm:$0xff] }
 0x731   : > { %v6364_v56 = vpack.c.bf16 %v3126_v37, %v3124_v34  ;;  %v6366_v49 = vpack.c.bf16 %v3127_v52, %v3125_v27  ;;  %v4865_v61 = vpop.permute.xlu0 %4864  ;;  %v3403_v34 = vld [vmem:[%s6707_s8 + $0x68] sm:$0xff]  ;;  %v3402_v27 = vld [vmem:[%s6707_s8 + $0x60] sm:$0xff] }
 0x732   : > { %v3052_v1 = vsel %vm569_vm7, %v4861_v54, %v4862_v46  ;;  %v3092_v4 = vsel %vm569_vm7, %v4862_v46, %v4861_v54  ;;  %v4867_v9 = vunpack.i.h.bf16 %v4865_v61  ;;  %v4866_v29 = vunpack.i.l.bf16 %v4865_v61  ;;  %v3930_v37 = vld [vmem:[%s6709_s10] sm:$0xff]  ;;  %v3931_v61 = vld [vmem:[%s6709_s10 + $0x8] sm:$0xff] }
 0x733   : > { %v3108_v62 = vmax.f32 %v6292_v40, %v3052_v1  ;;  %v3109_v36 = vmax.f32 %v6294_v2, %v3092_v4  ;;  %3655 = vmatprep.subr.bf16.mxu1 %v6366_v49  ;;  %3164 = vrot.lane.b32.xlu1 %v6364_v56, %s6719_s19  ;;  %v3934_v1 = vld [vmem:[%s6709_s10 + $0x20] sm:$0xff] }
 0x734   : > { %v3053_v16 = vsel %vm569_vm7, %v4866_v29, %v4867_v9  ;;  %v3093_v8 = vsel %vm569_vm7, %v4867_v9, %v4866_v29  ;;  %3166 = vrot.lane.b32.xlu0 %v6366_v49, %s6719_s19  ;;  %3656 = vmatpush1.bf16.msra.mxu1 %v6364_v56  ;;  %v3933_v9 = vld [vmem:[%s6709_s10 + $0x18] sm:$0xff] }
 0x735   : > { %v3110_v35 = vmax.f32 %v6296_v15, %v3053_v16  ;;  %v3111_v40 = vmax.f32 %v6300_v31, %v3093_v8  ;;  %v3128_v55 = vmax.f32 %v3108_v62, 0.0  ;;  %v3129_v2 = vmax.f32 %v3109_v36, 0.0  ;;  %v3936_v16 = vld [vmem:[%s6709_s10 + $0x30] sm:$0xff]  ;;  %v3935_v8 = vld [vmem:[%s6709_s10 + $0x28] sm:$0xff] }
 0x737   : > { %v3130_v48 = vmax.f32 %v3110_v35, 0.0  ;;  %v3131_v14 = vmax.f32 %v3111_v40, 0.0  ;;  %v4870_v59 = vpop.permute.xlu1 %4869  ;;  %v3938_v35 = vld [vmem:[%s6709_s10 + $0x40] sm:$0xff] }
 0x738   : > { %v4872_v5 = vunpack.i.h.bf16 %v4870_v59  ;;  %v4871_v3 = vunpack.i.l.bf16 %v4870_v59  ;;  %v3940_v59 = vld [vmem:[%s6709_s10 + $0x50] sm:$0xf] }
 0x739   : > { %v3142_v21 = vpack.c.bf16 %v3130_v48, %v3128_v55  ;;  %v3143_v63 = vpack.c.bf16 %v3131_v14, %v3129_v2  ;;  %v4875_v19 = vpop.permute.xlu0 %4874  ;;  %v3937_v55 = vld [vmem:[%s6709_s10 + $0x38] sm:$0xff] }
 0x73a   : > { %v3054_v22 = vsel %vm569_vm7, %v4871_v3, %v4872_v5  ;;  %v3094_v25 = vsel %vm569_vm7, %v4872_v5, %v4871_v3  ;;  %v4877_v26 = vunpack.i.h.bf16 %v4875_v19  ;;  %v4876_v28 = vunpack.i.l.bf16 %v4875_v19  ;;  %v3939_v5 = vld [vmem:[%s6709_s10 + $0x48] sm:$0xff] }
 0x73b   : > { %v3112_v15 = vmax.f32 %v6306_v42, %v3054_v22  ;;  %v3113_v31 = vmax.f32 %v6308_v44, %v3094_v25  ;;  %3657 = vmatprep.subr.bf16.mxu1 %v3143_v63  ;;  %3168 = vrot.lane.b32.xlu1 %v3142_v21, %s6719_s19  ;;  %v4176_v3 = vld [vmem:[%s6711_s12 + $0x8] sm:$0x3] }
 0x73c   : > { %v3055_v60 = vsel %vm569_vm7, %v4876_v28, %v4877_v26  ;;  %v3095_v10 = vsel %vm569_vm7, %v4877_v26, %v4876_v28  ;;  %3170 = vrot.lane.b32.xlu0 %v3143_v63, %s6719_s19  ;;  %3658 = vmatpush1.bf16.msra.mxu1 %v3142_v21 }
 0x73d   : > { %v3114_v57 = vmax.f32 %v6310_v50, %v3055_v60  ;;  %v3115_v39 = vmax.f32 %v6314_v51, %v3095_v10  ;;  %v3132_v38 = vmax.f32 %v3112_v15, 0.0  ;;  %v3133_v58 = vmax.f32 %v3113_v31, 0.0  ;;  %v5046_v50 = vld [vmem:[%s6706_s7 + $0x4] ss:$16 sps:$4 sm:$0xff]   ;;  %v3391_v51 = vld [vmem:[%s6707_s8 + $0x8] sm:$0xff] }
 0x73e   : > { %3683 = vmatprep.mubr.bf16.mxu1 %v5046_v50 }
 0x73f   : > { %v3134_v23 = vmax.f32 %v3114_v57, 0.0  ;;  %v3135_v42 = vmax.f32 %v3115_v39, 0.0 }
 0x741   : > { %v3144_v13 = vpack.c.bf16 %v3134_v23, %v3132_v38  ;;  %v3145_v44 = vpack.c.bf16 %v3135_v42, %v3133_v58 }
 0x743   : > { %3174 = vrot.lane.b32.xlu0 %v3145_v44, %s6719_s19  ;;  %3659 = vmatprep.subr.bf16.mxu1 %v3145_v44 }
 0x744   : > { %3172 = vrot.lane.b32.xlu1 %v3144_v13, %s6719_s19  ;;  %3660 = vmatpush1.bf16.msra.mxu1 %v3144_v13 }
 0x747   : > { %3208 = vrot.lane.b32.xlu0 %v6330_v11, %s6720_s28 }
 0x748   : > { %3206 = vrot.lane.b32.xlu1 %v6328_v0, %s6720_s28 }
 0x74b   : > { %3212 = vrot.lane.b32.xlu0 %v6348_v32, %s6720_s28 }
 0x74c   : > { %3210 = vrot.lane.b32.xlu1 %v6346_v20, %s6720_s28 }
 0x74f   : > { %3216 = vrot.lane.b32.xlu0 %v6366_v49, %s6720_s28 }
 0x750   : > { %3214 = vrot.lane.b32.xlu1 %v6364_v56, %s6720_s28 }
 0x753   : > { %3220 = vrot.lane.b32.xlu0 %v3143_v63, %s6720_s28 }
 0x754   : > { %3218 = vrot.lane.b32.xlu1 %v3142_v21, %s6720_s28 }
 0x757   : > { %3224 = vrot.lane.b32.xlu0 %v3145_v44, %s6720_s28 }
 0x758   : > { %3222 = vrot.lane.b32.xlu1 %v3144_v13, %s6720_s28 }
 0x75b   : > { %3258 = vrot.lane.b32.xlu0 %v6330_v11, %s5129_s23 }
 0x75c   : > { %3256 = vrot.lane.b32.xlu1 %v6328_v0, %s5129_s23 }
 0x75f   : > { %3262 = vrot.lane.b32.xlu0 %v6348_v32, %s5129_s23 }
 0x760   : > { %3260 = vrot.lane.b32.xlu1 %v6346_v20, %s5129_s23 }
 0x763   : > { %3266 = vrot.lane.b32.xlu0 %v6366_v49, %s5129_s23 }
 0x764   : > { %3264 = vrot.lane.b32.xlu1 %v6364_v56, %s5129_s23 }
 0x767   : > { %3270 = vrot.lane.b32.xlu0 %v3143_v63, %s5129_s23 }
 0x768   : > { %3268 = vrot.lane.b32.xlu1 %v3142_v21, %s5129_s23 }
 0x76b   : > { %3274 = vrot.lane.b32.xlu0 %v3145_v44, %s5129_s23 }
 0x76c   : > { %3272 = vrot.lane.b32.xlu1 %v3144_v13, %s5129_s23  ;;  %s4594_s23 = sshll.u32 (%p5231_p5), %s6721_s25, 4 }
 0x76d   : > { %s4258_s30 = scalar_lea.vmem (%p5231_p5), %s6712_s13, %s4594_s23 }
 0x76f   : > { %3310 = vrot.lane.b32.xlu0 %v6330_v11, %s5130_s21  ;;  %v3393_v11 = vld [vmem:[%s6707_s8 + $0x18] sm:$0xff] }
 0x770   : > { %3308 = vrot.lane.b32.xlu1 %v6328_v0, %s5130_s21  ;;  %v3390_v0 = vld [vmem:[%s6707_s8] sm:$0xff] }
 0x773   : > { %3314 = vrot.lane.b32.xlu0 %v6348_v32, %s5130_s21  ;;  %v3395_v32 = vld [vmem:[%s6707_s8 + $0x28] sm:$0xff] }
 0x774   : > { %3312 = vrot.lane.b32.xlu1 %v6346_v20, %s5130_s21  ;;  %v3392_v20 = vld [vmem:[%s6707_s8 + $0x10] sm:$0xff] }
 0x777   : > { %3318 = vrot.lane.b32.xlu0 %v6366_v49, %s5130_s21  ;;  %v3932_v49 = vld [vmem:[%s6709_s10 + $0x10] sm:$0xff] }
 0x778   : > { %3316 = vrot.lane.b32.xlu1 %v6364_v56, %s5130_s21 }
 0x77b   : > { %3322 = vrot.lane.b32.xlu0 %v3143_v63, %s5130_s21  ;;  %v4175_v63 = vld [vmem:[%s6711_s12] sm:$0xff] }
 0x77c   : > { %3320 = vrot.lane.b32.xlu1 %v3142_v21, %s5130_s21 }
 0x77f   : > { %3326 = vrot.lane.b32.xlu0 %v3145_v44, %s5130_s21 }
 0x780   : > { %3324 = vrot.lane.b32.xlu1 %v3144_v13, %s5130_s21 }
 0x783   : > { %3412 = vperm.xlu0 %4771, %v3391_v51  }
 0x784   : > { %3407 = vperm.xlu1 %4772, %v3390_v0  }
 0x787   : > { %3422 = vperm.xlu0 %4771, %v3393_v11  }
 0x788   : > { %3417 = vperm.xlu1 %4772, %v3392_v20  }
 0x78b   : > { %3432 = vperm.xlu0 %4771, %v3395_v32  }
 0x78c   : > { %3427 = vperm.xlu1 %4772, %v3394_v41  }
 0x78f   : > { %3442 = vperm.xlu0 %4771, %v3397_v43  }
 0x790   : > { %3437 = vperm.xlu1 %4772, %v3396_v45  }
 0x793   : > { %3452 = vperm.xlu0 %4771, %v3399_v30  }
 0x794   : > { %3447 = vperm.xlu1 %4772, %v3398_v18   ;;  %v5044_v18 = vld [vmem:[%s6706_s7] ss:$16 sps:$4 sm:$0xff]  }
 0x795   : > { %v3157_v33 = vpop.permute.xlu1 %3156 }
 0x796   : > { %v3159_v47 = vpop.permute.xlu0 %3158 }
 0x797   : > { %v3176_v53 = vsel %vm1715_vm9, %v3157_v33, %v3159_v47  ;;  %3462 = vperm.xlu0 %4771, %v3401_v7   ;;  %v3188_v6 = vsel %vm1715_vm9, %v3159_v47, %v3157_v33  ;;  %v5047_v33 = vld [vmem:[%s6706_s7 + $0x24] ss:$16 sps:$4 sm:$0xff]  }
 0x798   : > { %3457 = vperm.xlu1 %4772, %v3400_v12   ;;  %3661 = vmatprep.subr.bf16.mxu1 %v3188_v6 }
 0x799   : > { %3662 = vmatpush1.bf16.msra.mxu1 %v3176_v53 }
 0x79b   : > { %3472 = vperm.xlu0 %4771, %v3403_v34  }
 0x79c   : > { %3467 = vperm.xlu1 %4772, %v3402_v27  }
 0x79d   : > { %v3161_v52 = vpop.permute.xlu1 %3160 }
 0x79e   : > { %v3163_v46 = vpop.permute.xlu0 %3162 }
 0x79f   : > { %v3177_v54 = vsel %vm1715_vm9, %v3161_v52, %v3163_v46  ;;  %3943 = vperm.xlu0 %4771, %v3930_v37   ;;  %v3192_v56 = vsel %vm1715_vm9, %v3163_v46, %v3161_v52  ;;  %v5049_v52 = vld [vmem:[%s6706_s7 + $0x20] ss:$16 sps:$4 sm:$0xff]   ;;  %v5050_v46 = vld [vmem:[%s6706_s7 + $0x44] ss:$16 sps:$4 sm:$0xff]  }
 0x7a0   : > { %3477 = vperm.xlu1 %4772, %v3404_v24   ;;  %3663 = vmatprep.subr.bf16.mxu1 %v3192_v56 }
 0x7a1   : > { %3664 = vmatpush1.bf16.msra.mxu1 %v3177_v54 }
 0x7a3   : > { %3953 = vperm.xlu0 %4771, %v3932_v49  }
 0x7a4   : > { %3948 = vperm.xlu1 %4772, %v3931_v61  }
 0x7a5   : > { %v3165_v4 = vpop.permute.xlu1 %3164 }
 0x7a6   : > { %v3167_v29 = vpop.permute.xlu0 %3166 }
 0x7a7   : > { %v3178_v62 = vsel %vm1715_vm9, %v3165_v4, %v3167_v29  ;;  %3963 = vperm.xlu0 %4771, %v3934_v1   ;;  %v3196_v36 = vsel %vm1715_vm9, %v3167_v29, %v3165_v4  ;;  %v5052_v29 = vld [vmem:[%s6706_s7 + $0x40] ss:$16 sps:$4 sm:$0xff]  }
 0x7a8   : > { %3958 = vperm.xlu1 %4772, %v3933_v9   ;;  %3665 = vmatprep.subr.bf16.mxu1 %v3196_v36  ;;  %v5053_v36 = vld [vmem:[%s6706_s7 + $0x64] ss:$16 sps:$4 sm:$0xff]  }
 0x7a9   : > { %3666 = vmatpush1.bf16.msra.mxu1 %v3178_v62 }
 0x7ab   : > { %3973 = vperm.xlu0 %4771, %v3936_v16  }
 0x7ac   : > { %3968 = vperm.xlu1 %4772, %v3935_v8  }
 0x7ad   : > { %v3169_v40 = vpop.permute.xlu1 %3168 }
 0x7ae   : > { %v3171_v2 = vpop.permute.xlu0 %3170 }
 0x7af   : > { %v3179_v48 = vsel %vm1715_vm9, %v3169_v40, %v3171_v2  ;;  %3983 = vperm.xlu0 %4771, %v3938_v35   ;;  %v3200_v14 = vsel %vm1715_vm9, %v3171_v2, %v3169_v40 }
 0x7b0   : > { %3978 = vperm.xlu1 %4772, %v3937_v55   ;;  %3667 = vmatprep.subr.bf16.mxu1 %v3200_v14  ;;  %v5055_v14 = vld [vmem:[%s6706_s7 + $0x60] ss:$16 sps:$4 sm:$0xff]  }
 0x7b1   : > { %3668 = vmatpush1.bf16.msra.mxu1 %v3179_v48 }
 0x7b3   : > { %3993 = vperm.xlu0 %4771, %v3940_v59  }
 0x7b4   : > { %3988 = vperm.xlu1 %4772, %v3939_v5   ;;  %v5056_v5 = vld [vmem:[%s6706_s7 + $0x84] ss:$16 sps:$4 sm:$0xff]  }
 0x7b5   : > { %v3175_v21 = vpop.permute.xlu0 %3174 }
 0x7b6   : > { %v3173_v19 = vpop.permute.xlu1 %3172 }
 0x7b7   : > { %v3180_v22 = vsel %vm1715_vm9, %v3173_v19, %v3175_v21  ;;  %4184 = vperm.xlu0 %4771, %v4176_v3   ;;  %v3204_v25 = vsel %vm1715_vm9, %v3175_v21, %v3173_v19 }
 0x7b8   : > { %4179 = vperm.xlu1 %4772, %v4175_v63   ;;  %3669 = vmatprep.subr.bf16.mxu1 %v3204_v25 }
 0x7b9   : > { %3670 = vmatpush1.bf16.msra.mxu1 %v3180_v22  ;;  %v3209_v26 = vpop.permute.xlu0 %3208 }
 0x7ba   : > { %v3207_v28 = vpop.permute.xlu1 %3206 }
 0x7bb   : > { %v3226_v15 = vsel %vm1815_vm11, %v3207_v28, %v3209_v26  ;;  %v3238_v31 = vsel %vm1815_vm11, %v3209_v26, %v3207_v28  ;;  %v5058_v28 = vld [vmem:[%s6706_s7 + $0x80] ss:$16 sps:$4 sm:$0xff]  }
 0x7bc   : > { %3671 = vmatprep.subr.bf16.mxu1 %v3238_v31  ;;  %v5059_v31 = vld [vmem:[%s6706_s7 + $0xa4] ss:$16 sps:$4 sm:$0xff]  }
 0x7bd   : > { %3672 = vmatpush1.bf16.msra.mxu1 %v3226_v15  ;;  %v3213_v60 = vpop.permute.xlu0 %3212 }
 0x7be   : > { %v3211_v10 = vpop.permute.xlu1 %3210 }
 0x7bf   : > { %v3227_v57 = vsel %vm1815_vm11, %v3211_v10, %v3213_v60  ;;  %v3242_v39 = vsel %vm1815_vm11, %v3213_v60, %v3211_v10 }
 0x7c0   : > { %3673 = vmatprep.subr.bf16.mxu1 %v3242_v39  ;;  %v5061_v39 = vld [vmem:[%s6706_s7 + $0xa0] ss:$16 sps:$4 sm:$0xff]  }
 0x7c1   : > { %3674 = vmatpush1.bf16.msra.mxu1 %v3227_v57  ;;  %v3217_v38 = vpop.permute.xlu0 %3216 }
 0x7c2   : > { %v3215_v58 = vpop.permute.xlu1 %3214 }
 0x7c3   : > { %v3228_v23 = vsel %vm1815_vm11, %v3215_v58, %v3217_v38  ;;  %v3246_v42 = vsel %vm1815_vm11, %v3217_v38, %v3215_v58  ;;  %v5062_v38 = vld [vmem:[%s6706_s7 + $0xc4] ss:$16 sps:$4 sm:$0xff]  }
 0x7c4   : > { %3675 = vmatprep.subr.bf16.mxu1 %v3246_v42  ;;  %v3388_v58 = vld [vmem:[%s6706_s7 + $0xe0] sm:$0xff] }
 0x7c5   : > { %3676 = vmatpush1.bf16.msra.mxu1 %v3228_v23  ;;  %v3221_v13 = vpop.permute.xlu0 %3220  ;;  %v5064_v23 = vld [vmem:[%s6706_s7 + $0xc0] ss:$16 sps:$4 sm:$0xff]   ;;  %v4561_v42 = vcombine.high %v3388_v58, %v3388_v58 }
 0x7c6   : > { %v3219_v44 = vpop.permute.xlu1 %3218 }
 0x7c7   : > { %v3229_v50 = vsel %vm1815_vm11, %v3219_v44, %v3221_v13  ;;  %v3250_v51 = vsel %vm1815_vm11, %v3221_v13, %v3219_v44  ;;  %v4560_v13 = vcombine.low %v3388_v58, %v3388_v58  ;;  %v5069_v44 = vld [vmem:[%s6706_s7 + $0xc] ss:$16 sps:$4 sm:$0xff]  }
 0x7c8   : > { %3677 = vmatprep.subr.bf16.mxu1 %v3250_v51  ;;  %v5070_v51 = vld [vmem:[%s6706_s7 + $0x2c] ss:$16 sps:$4 sm:$0xff]  }
 0x7c9   : > { %3678 = vmatpush1.bf16.msra.mxu1 %v3229_v50  ;;  %v3225_v0 = vpop.permute.xlu0 %3224  ;;  %v5067_v50 = vld [vmem:[%s6706_s7 + $0x8] ss:$16 sps:$4 sm:$0xff]  }
 0x7ca   : > { %v3223_v11 = vpop.permute.xlu1 %3222 }
 0x7cb   : > { %v3230_v20 = vsel %vm1815_vm11, %v3223_v11, %v3225_v0  ;;  %v3254_v32 = vsel %vm1815_vm11, %v3225_v0, %v3223_v11  ;;  %v5072_v0 = vld [vmem:[%s6706_s7 + $0x28] ss:$16 sps:$4 sm:$0xff]   ;;  %v5073_v11 = vld [vmem:[%s6706_s7 + $0x4c] ss:$16 sps:$4 sm:$0xff]  }
 0x7cc   : > { %3679 = vmatprep.subr.bf16.mxu1 %v3254_v32  ;;  %v5076_v32 = vld [vmem:[%s6706_s7 + $0x6c] ss:$16 sps:$4 sm:$0xff]  }
 0x7cd   : > { %3680 = vmatpush1.bf16.msra.mxu1 %v3230_v20  ;;  %v3259_v41 = vpop.permute.xlu0 %3258  ;;  %v5075_v20 = vld [vmem:[%s6706_s7 + $0x48] ss:$16 sps:$4 sm:$0xff]  }
 0x7ce   : > { %v3257_v43 = vpop.permute.xlu1 %3256 }
 0x7cf   : > { %v3277_v45 = vsel %vm3276_vm14, %v3257_v43, %v3259_v41  ;;  %v3290_v30 = vsel %vm3276_vm14, %v3259_v41, %v3257_v43  ;;  %v5078_v41 = vld [vmem:[%s6706_s7 + $0x68] ss:$16 sps:$4 sm:$0xff]   ;;  %v5079_v43 = vld [vmem:[%s6706_s7 + $0x8c] ss:$16 sps:$4 sm:$0xff]  }
 0x7d0   : > { %3681 = vmatprep.subr.bf16.mxu1 %v3290_v30  ;;  %v5082_v30 = vld [vmem:[%s6706_s7 + $0xac] ss:$16 sps:$4 sm:$0xff]  }
 0x7d1   : > { %3682 = vmatpush1.bf16.msra.mxu1 %v3277_v45  ;;  %v3263_v7 = vpop.permute.xlu0 %3262  ;;  %v5081_v45 = vld [vmem:[%s6706_s7 + $0x88] ss:$16 sps:$4 sm:$0xff]  }
 0x7d2   : > { %v3261_v12 = vpop.permute.xlu1 %3260 }
 0x7d3   : > { %v3278_v47 = vsel %vm3276_vm14, %v3261_v12, %v3263_v7  ;;  %v3294_v53 = vsel %vm3276_vm14, %v3263_v7, %v3261_v12  ;;  %v5085_v7 = vld [vmem:[%s6706_s7 + $0xcc] ss:$16 sps:$4 sm:$0xff]   ;;  %v5087_v12 = vld [vmem:[%s6706_s7 + $0xc8] ss:$16 sps:$4 sm:$0xff]  }
 0x7d4   : > { %3684 = vmatmul.mubr.bf16.vlgmr.msra.gmra.mrb[88].mxu1 %v5044_v18  ;;  %3762 = vmatprep.subr.bf16.mxu1 %v3294_v53  ;;  %v5084_v18 = vld [vmem:[%s6706_s7 + $0xa8] ss:$16 sps:$4 sm:$0xff]  }
 0x7d5   : > { %3763 = vmatpush1.bf16.msra.mxu1 %v3278_v47  ;;  %v3267_v6 = vpop.permute.xlu0 %3266  ;;  %3693 = vmatprep.mubr.bf16.mxu1 %v5047_v33  ;;  %v3389_v33 = vld [vmem:[%s6706_s7 + $0xe8] sm:$0xff] }
 0x7d6   : > { %v3265_v34 = vpop.permute.xlu1 %3264  ;;  %v4563_v47 = vcombine.high %v3389_v33, %v3389_v33  ;;  %v4562_v53 = vcombine.low %v3389_v33, %v3389_v33 }
 0x7d7   : > { %v3279_v27 = vsel %vm3276_vm14, %v3265_v34, %v3267_v6  ;;  %v3298_v37 = vsel %vm3276_vm14, %v3267_v6, %v3265_v34 }
 0x7d8   : > { %3764 = vmatprep.subr.bf16.mxu1 %v3298_v37 }
 0x7d9   : > { %3765 = vmatpush1.bf16.msra.mxu1 %v3279_v27  ;;  %v3271_v24 = vpop.permute.xlu0 %3270 }
 0x7da   : > { %v3269_v54 = vpop.permute.xlu1 %3268 }
 0x7db   : > { %v3280_v56 = vsel %vm3276_vm14, %v3269_v54, %v3271_v24  ;;  %v3302_v49 = vsel %vm3276_vm14, %v3271_v24, %v3269_v54 }
 0x7dc   : > { %3694 = vmatmul.mubr.bf16.gmra.mrb[92].mxu1 %v5049_v52  ;;  %3766 = vmatprep.subr.bf16.mxu1 %v3302_v49 }
 0x7dd   : > { %3767 = vmatpush1.bf16.msra.mxu1 %v3280_v56  ;;  %v3275_v61 = vpop.permute.xlu0 %3274  ;;  %3703 = vmatprep.mubr.bf16.mxu1 %v5050_v46 }
 0x7de   : > { %v3273_v1 = vpop.permute.xlu1 %3272 }
 0x7df   : > { %v3281_v4 = vsel %vm3276_vm14, %v3273_v1, %v3275_v61  ;;  %v3306_v9 = vsel %vm3276_vm14, %v3275_v61, %v3273_v1 }
 0x7e0   : > { %3768 = vmatprep.subr.bf16.mxu1 %v3306_v9 }
 0x7e1   : > { %3769 = vmatpush1.bf16.msra.mxu1 %v3281_v4  ;;  %v3311_v62 = vpop.permute.xlu0 %3310 }
 0x7e2   : > { %v3309_v16 = vpop.permute.xlu1 %3308 }
 0x7e3   : > { %v3329_v8 = vsel %vm3328_vm15, %v3309_v16, %v3311_v62  ;;  %v3342_v35 = vsel %vm3328_vm15, %v3311_v62, %v3309_v16 }
 0x7e4   : > { %3704 = vmatmul.mubr.bf16.gmra.mrb[96].mxu1 %v5052_v29  ;;  %3770 = vmatprep.subr.bf16.mxu1 %v3342_v35 }
 0x7e5   : > { %3771 = vmatpush1.bf16.msra.mxu1 %v3329_v8  ;;  %v3315_v40 = vpop.permute.xlu0 %3314  ;;  %3713 = vmatprep.mubr.bf16.mxu1 %v5053_v36 }
 0x7e6   : > { %v3313_v55 = vpop.permute.xlu1 %3312 }
 0x7e7   : > { %v3330_v2 = vsel %vm3328_vm15, %v3313_v55, %v3315_v40  ;;  %v3346_v48 = vsel %vm3328_vm15, %v3315_v40, %v3313_v55 }
 0x7e8   : > { %3772 = vmatprep.subr.bf16.mxu1 %v3346_v48 }
 0x7e9   : > { %3773 = vmatpush1.bf16.msra.mxu1 %v3330_v2  ;;  %v3319_v59 = vpop.permute.xlu0 %3318 }
 0x7ea   : > { %v3317_v3 = vpop.permute.xlu1 %3316 }
 0x7eb   : > { %v3331_v21 = vsel %vm3328_vm15, %v3317_v3, %v3319_v59  ;;  %v3350_v63 = vsel %vm3328_vm15, %v3319_v59, %v3317_v3 }
 0x7ec   : > { %3714 = vmatmul.mubr.bf16.gmra.mrb[100].mxu1 %v5055_v14  ;;  %3774 = vmatprep.subr.bf16.mxu1 %v3350_v63 }
 0x7ed   : > { %3775 = vmatpush1.bf16.msra.mxu1 %v3331_v21  ;;  %v3323_v19 = vpop.permute.xlu0 %3322  ;;  %3723 = vmatprep.mubr.bf16.mxu1 %v5056_v5 }
 0x7ee   : > { %v3321_v22 = vpop.permute.xlu1 %3320 }
 0x7ef   : > { %v3332_v25 = vsel %vm3328_vm15, %v3321_v22, %v3323_v19  ;;  %v3354_v26 = vsel %vm3328_vm15, %v3323_v19, %v3321_v22 }
 0x7f0   : > { %3776 = vmatprep.subr.bf16.mxu1 %v3354_v26 }
 0x7f1   : > { %3777 = vmatpush1.bf16.msra.mxu1 %v3332_v25  ;;  %v3327_v15 = vpop.permute.xlu0 %3326 }
 0x7f2   : > { %v3325_v60 = vpop.permute.xlu1 %3324 }
 0x7f3   : > { %v3333_v10 = vsel %vm3328_vm15, %v3325_v60, %v3327_v15  ;;  %v3358_v57 = vsel %vm3328_vm15, %v3327_v15, %v3325_v60 }
 0x7f4   : > { %3724 = vmatmul.mubr.bf16.gmra.mrb[104].mxu1 %v5058_v28  ;;  %3778 = vmatprep.subr.bf16.mxu1 %v3358_v57 }
 0x7f5   : > { %3779 = vmatpush1.bf16.msra.mxu1 %v3333_v10  ;;  %3733 = vmatprep.mubr.bf16.mxu1 %v5059_v31 }
 0x7fc   : > { %3734 = vmatmul.mubr.bf16.gmra.mrb[108].mxu1 %v5061_v39 }
 0x7fd   : > { %3743 = vmatprep.mubr.bf16.mxu1 %v5062_v38 }
 0x802   : > { %v3413_v52 = vpop.permute.xlu0 %3412 }
 0x803   : > { %v3408_v6 = vpop.permute.xlu1 %3407 }
 0x804   : > { %3744 = vmatmul.mubr.bf16.gmra.mrb[112].mxu1 %v5064_v23 }
 0x805   : > { %3753 = vmatprep.mubr.bf16.mxu1 %v4561_v42 }
 0x806   : > { %v3423_v40 = vpop.permute.xlu0 %3422 }
 0x807   : > { %v3418_v62 = vpop.permute.xlu1 %3417 }
 0x80a   : > { %v3433_v31 = vpop.permute.xlu0 %3432 }
 0x80b   : > { %v3428_v22 = vpop.permute.xlu1 %3427 }
 0x80c   : > { %3754 = vmatmul.mubr.bf16.gmra.mrb[116].mxu1 %v4560_v13 }
 0x80d   : > { %4564 = vmatprep.mubr.msk.bf16.mxu1 %vm3626_vm0, %v5069_v44 }
 0x814   : > { %3795 = vmatmul.mubr.bf16.vlgmr.msra.gmra.mrb[88].mxu1 %v5067_v50  ;;  %v3438_v50 = vpop.permute.xlu1 %3437 }
 0x815   : > { %4565 = vmatprep.mubr.msk.bf16.mxu1 %vm3626_vm0, %v5070_v51 }
 0x81c   : > { %3805 = vmatmul.mubr.bf16.gmra.mrb[92].mxu1 %v5072_v0 }
 0x81d   : > { %4566 = vmatprep.mubr.msk.bf16.mxu1 %vm3626_vm0, %v5073_v11 }
 0x824   : > { %3815 = vmatmul.mubr.bf16.gmra.mrb[96].mxu1 %v5075_v20 }
 0x825   : > { %4567 = vmatprep.mubr.msk.bf16.mxu1 %vm3626_vm0, %v5076_v32  ;;  %v3443_v32 = vpop.permute.xlu0 %3442 }
 0x82c   : > { %3825 = vmatmul.mubr.bf16.gmra.mrb[100].mxu1 %v5078_v41 }
 0x82d   : > { %4568 = vmatprep.mubr.msk.bf16.mxu1 %vm3626_vm0, %v5079_v43 }
 0x834   : > { %3835 = vmatmul.mubr.bf16.gmra.mrb[104].mxu1 %v5081_v45 }
 0x835   : > { %4569 = vmatprep.mubr.msk.bf16.mxu1 %vm3626_vm0, %v5082_v30 }
 0x83c   : > { %3845 = vmatmul.mubr.bf16.gmra.mrb[108].mxu1 %v5084_v18 }
 0x83d   : > { %4570 = vmatprep.mubr.msk.bf16.mxu1 %vm3626_vm0, %v5085_v7 }
 0x844   : > { %3855 = vmatmul.mubr.bf16.gmra.mrb[112].mxu1 %v5087_v12 }
 0x845   : > { %4571 = vmatprep.mubr.msk.bf16.mxu1 %vm3626_vm0, %v4563_v47 }
 0x84c   : > { %3865 = vmatmul.mubr.bf16.gmra.mrb[116].mxu1 %v4562_v53 }
 0x8e7   : > { %v3796_v34 = vpop.f32.mrb[88].mxu1 }
 0x8e8   : > { %v4635_v27 = vadd.f32 %v3796_v34, %v3408_v6  ;;  %v3798_v37 = vpop.f32.mrb[89].mxu1 }
 0x8e9   : > { %v4636_v24 = vadd.f32 %v3798_v37, %v3408_v6  ;;  %v3800_v46 = vpop.f32.mrb[90].mxu1  ;;  %v3448_v6 = vpop.permute.xlu1 %3447 }
 0x8ea   : > { %v4637_v54 = vadd.f32 %v3800_v46, %v3413_v52  ;;  %v3802_v56 = vpop.f32.mrb[91].mxu1  ;;  %v3873_v61 = vmax.f32 %v4635_v27, 0.0 }
 0x8eb   : > { %v4638_v49 = vadd.f32 %v3802_v56, %v3413_v52  ;;  %v3874_v4 = vmax.f32 %v4636_v24, 0.0  ;;  %v3453_v24 = vpop.permute.xlu0 %3452 }
 0x8ec   : > { %v3875_v1 = vmax.f32 %v4637_v54, 0.0 }
 0x8ed   : > { %v3876_v9 = vmax.f32 %v4638_v49, 0.0 }
 0x8ee   : > { %v3903_v29 = vpack.c.bf16 %v3875_v1, %v3873_v61 }
 0x8ef   : > { %v3904_v36 = vpack.c.bf16 %v3876_v9, %v3874_v4  ;;  %v3806_v16 = vpop.f32.mrb[92].mxu1 }
 0x8f0   : > { %v4639_v8 = vadd.f32 %v3806_v16, %v3418_v62  ;;  %v3808_v35 = vpop.f32.mrb[93].mxu1 }
 0x8f1   : > { %v4640_v55 = vadd.f32 %v3808_v35, %v3418_v62  ;;  %v3810_v2 = vpop.f32.mrb[94].mxu1  ;;  %4048 = vmatprep.subr.bf16.mxu0 %v3904_v36  ;;  %v3458_v36 = vpop.permute.xlu1 %3457 }
 0x8f2   : > { %v4641_v48 = vadd.f32 %v3810_v2, %v3423_v40  ;;  %v3812_v14 = vpop.f32.mrb[95].mxu1  ;;  %4049 = vmatpush1.bf16.msra.mxu0 %v3903_v29  ;;  %v3877_v5 = vmax.f32 %v4639_v8, 0.0 }
 0x8f3   : > { %v4642_v59 = vadd.f32 %v3812_v14, %v3423_v40  ;;  %v3878_v21 = vmax.f32 %v4640_v55, 0.0  ;;  %v3463_v55 = vpop.permute.xlu0 %3462 }
 0x8f4   : > { %v3879_v3 = vmax.f32 %v4641_v48, 0.0 }
 0x8f5   : > { %v3880_v63 = vmax.f32 %v4642_v59, 0.0 }
 0x8f6   : > { %v3905_v19 = vpack.c.bf16 %v3879_v3, %v3877_v5 }
 0x8f7   : > { %v3906_v25 = vpack.c.bf16 %v3880_v63, %v3878_v21  ;;  %v3816_v26 = vpop.f32.mrb[96].mxu1 }
 0x8f8   : > { %v4643_v28 = vadd.f32 %v3816_v26, %v3428_v22  ;;  %v3818_v15 = vpop.f32.mrb[97].mxu1 }
 0x8f9   : > { %v4644_v60 = vadd.f32 %v3818_v15, %v3428_v22  ;;  %v3820_v10 = vpop.f32.mrb[98].mxu1  ;;  %4050 = vmatprep.subr.bf16.mxu0 %v3906_v25  ;;  %v3468_v25 = vpop.permute.xlu1 %3467 }
 0x8fa   : > { %v4645_v57 = vadd.f32 %v3820_v10, %v3433_v31  ;;  %v3822_v39 = vpop.f32.mrb[99].mxu1  ;;  %4051 = vmatpush1.bf16.msra.mxu0 %v3905_v19  ;;  %v3881_v58 = vmax.f32 %v4643_v28, 0.0 }
 0x8fb   : > { %v4646_v38 = vadd.f32 %v3822_v39, %v3433_v31  ;;  %v3882_v42 = vmax.f32 %v4644_v60, 0.0  ;;  %v3473_v60 = vpop.permute.xlu0 %3472 }
 0x8fc   : > { %v3883_v23 = vmax.f32 %v4645_v57, 0.0 }
 0x8fd   : > { %v3884_v13 = vmax.f32 %v4646_v38, 0.0 }
 0x8fe   : > { %v3907_v44 = vpack.c.bf16 %v3883_v23, %v3881_v58 }
 0x8ff   : > { %v3908_v51 = vpack.c.bf16 %v3884_v13, %v3882_v42  ;;  %v3826_v0 = vpop.f32.mrb[100].mxu1 }
 0x900   : > { %v4647_v11 = vadd.f32 %v3826_v0, %v3438_v50  ;;  %v3828_v20 = vpop.f32.mrb[101].mxu1 }
 0x901   : > { %v4648_v41 = vadd.f32 %v3828_v20, %v3438_v50  ;;  %v3830_v43 = vpop.f32.mrb[102].mxu1  ;;  %4052 = vmatprep.subr.bf16.mxu0 %v3908_v51  ;;  %v3478_v51 = vpop.permute.xlu1 %3477 }
 0x902   : > { %v4649_v45 = vadd.f32 %v3830_v43, %v3443_v32  ;;  %v3832_v30 = vpop.f32.mrb[103].mxu1  ;;  %4053 = vmatpush1.bf16.msra.mxu0 %v3907_v44  ;;  %v3885_v7 = vmax.f32 %v4647_v11, 0.0 }
 0x903   : > { %v4650_v18 = vadd.f32 %v3832_v30, %v3443_v32  ;;  %v3886_v12 = vmax.f32 %v4648_v41, 0.0 }
 0x904   : > { %v3887_v33 = vmax.f32 %v4649_v45, 0.0 }
 0x905   : > { %v3888_v47 = vmax.f32 %v4650_v18, 0.0 }
 0x906   : > { %v3909_v53 = vpack.c.bf16 %v3887_v33, %v3885_v7 }
 0x907   : > { %v3910_v34 = vpack.c.bf16 %v3888_v47, %v3886_v12  ;;  %v3836_v27 = vpop.f32.mrb[104].mxu1  ;;  %v5090_v47 = vld [vmem:[%s6708_s9] sm:$0xff]  }
 0x908   : > { %v4651_v37 = vadd.f32 %v3836_v27, %v3448_v6  ;;  %v3838_v52 = vpop.f32.mrb[105].mxu1  ;;  %v5094_v27 = vld [vmem:[%s6708_s9 + $0x20] sm:$0xff]  }
 0x909   : > { %v4652_v46 = vadd.f32 %v3838_v52, %v3448_v6  ;;  %v3840_v54 = vpop.f32.mrb[106].mxu1  ;;  %4054 = vmatprep.subr.bf16.mxu0 %v3910_v34  ;;  %v5092_v6 = vld [vmem:[%s6708_s9 + $0x10] sm:$0xff]   ;;  %v5093_v34 = vld [vmem:[%s6708_s9 + $0x18] sm:$0xff]   ;;  %v3944_v52 = vpop.permute.xlu0 %3943 }
 0x90a   : > { %v4653_v56 = vadd.f32 %v3840_v54, %v3453_v24  ;;  %v3842_v49 = vpop.f32.mrb[107].mxu1  ;;  %4055 = vmatpush1.bf16.msra.mxu0 %v3909_v53  ;;  %v3889_v1 = vmax.f32 %v4651_v37, 0.0  ;;  %v5091_v53 = vld [vmem:[%s6708_s9 + $0x8] sm:$0xff]  }
 0x90b   : > { %v4654_v61 = vadd.f32 %v3842_v49, %v3453_v24  ;;  %v3890_v9 = vmax.f32 %v4652_v46, 0.0  ;;  %v5095_v37 = vld [vmem:[%s6708_s9 + $0x28] ss:$0 sps:$4 sm:$0x33]  }
 0x90c   : > { %v3891_v4 = vmax.f32 %v4653_v56, 0.0  ;;  %v3949_v56 = vpop.permute.xlu1 %3948 }
 0x90d   : > { %v3892_v29 = vmax.f32 %v4654_v61, 0.0 }
 0x90e   : > { %v3911_v62 = vpack.c.bf16 %v3891_v4, %v3889_v1 }
 0x90f   : > { %v3912_v16 = vpack.c.bf16 %v3892_v29, %v3890_v9  ;;  %v3846_v8 = vpop.f32.mrb[108].mxu1 }
 0x910   : > { %v4655_v35 = vadd.f32 %v3846_v8, %v3458_v36  ;;  %v3848_v40 = vpop.f32.mrb[109].mxu1 }
 0x911   : > { %v4656_v2 = vadd.f32 %v3848_v40, %v3458_v36  ;;  %v3850_v48 = vpop.f32.mrb[110].mxu1  ;;  %4056 = vmatprep.subr.bf16.mxu0 %v3912_v16 }
 0x912   : > { %v4657_v14 = vadd.f32 %v3850_v48, %v3463_v55  ;;  %v3852_v59 = vpop.f32.mrb[111].mxu1  ;;  %4057 = vmatpush1.bf16.msra.mxu0 %v3911_v62  ;;  %v3893_v3 = vmax.f32 %v4655_v35, 0.0  ;;  %v3954_v35 = vpop.permute.xlu0 %3953 }
 0x913   : > { %v4658_v5 = vadd.f32 %v3852_v59, %v3463_v55  ;;  %v3894_v63 = vmax.f32 %v4656_v2, 0.0  ;;  %v3959_v48 = vpop.permute.xlu1 %3958 }
 0x914   : > { %v3895_v21 = vmax.f32 %v4657_v14, 0.0 }
 0x915   : > { %v3896_v19 = vmax.f32 %v4658_v5, 0.0 }
 0x916   : > { %v3913_v22 = vpack.c.bf16 %v3895_v21, %v3893_v3 }
 0x917   : > { %v3914_v26 = vpack.c.bf16 %v3896_v19, %v3894_v63  ;;  %v3856_v28 = vpop.f32.mrb[112].mxu1 }
 0x918   : > { %v4659_v15 = vadd.f32 %v3856_v28, %v3468_v25  ;;  %v3858_v31 = vpop.f32.mrb[113].mxu1  ;;  %v3964_v28 = vpop.permute.xlu0 %3963 }
 0x919   : > { %v4660_v10 = vadd.f32 %v3858_v31, %v3468_v25  ;;  %v3860_v57 = vpop.f32.mrb[114].mxu1  ;;  %4058 = vmatprep.subr.bf16.mxu0 %v3914_v26 }
 0x91a   : > { %v4661_v39 = vadd.f32 %v3860_v57, %v3473_v60  ;;  %v3862_v38 = vpop.f32.mrb[115].mxu1  ;;  %4059 = vmatpush1.bf16.msra.mxu0 %v3913_v22  ;;  %v3897_v23 = vmax.f32 %v4659_v15, 0.0  ;;  %v3969_v57 = vpop.permute.xlu1 %3968 }
 0x91b   : > { %v4662_v58 = vadd.f32 %v3862_v38, %v3473_v60  ;;  %v3898_v13 = vmax.f32 %v4660_v10, 0.0 }
 0x91c   : > { %v3899_v42 = vmax.f32 %v4661_v39, 0.0 }
 0x91d   : > { %v3900_v44 = vmax.f32 %v4662_v58, 0.0 }
 0x91e   : > { %v3915_v50 = vpack.c.bf16 %v3899_v42, %v3897_v23 }
 0x91f   : > { %v3916_v0 = vpack.c.bf16 %v3900_v44, %v3898_v13  ;;  %v3866_v11 = vpop.f32.mrb[116].mxu1 }
 0x920   : > { %v4663_v20 = vadd.f32 %v3866_v11, %v3478_v51  ;;  %v3868_v32 = vpop.f32.mrb[117].mxu1  ;;  %v3974_v11 = vpop.permute.xlu0 %3973 }
 0x921   : > { %v4664_v41 = vadd.f32 %v3868_v32, %v3478_v51  ;;  %v3870_v43 = vpop.f32.mrb[118].mxu1  ;;  %4060 = vmatprep.subr.bf16.mxu0 %v3916_v0 }
 0x922   : > { %v3901_v45 = vmax.f32 %v4663_v20, 0.0  ;;  %v3871_v30 = vpop.f32.mrb[119].mxu1  ;;  %4061 = vmatpush1.bf16.msra.mxu0 %v3915_v50 }
 0x923   : > { %v3902_v18 = vmax.f32 %v4664_v41, 0.0 }
 0x924   : > { %v3917_v7 = vpack.c.bf16 %v3901_v45, %v3901_v45  ;;  %v3979_v45 = vpop.permute.xlu1 %3978 }
 0x925   : > { %v3918_v33 = vpack.c.bf16 %v3902_v18, %v3902_v18 }
 0x926   : > { %v4043_v12 = vsel %vm619_vm5, %v3917_v7, 0 }
 0x927   : > { %4578 = vmatprep.subr.msk.bf16.mxu0 %vm619_vm5, %v3918_v33 }
 0x928   : > { %4063 = vmatpush1.bf16.msra.mxu0 %v4043_v12 }
 0x92b   : > { %4579 = vmatmul.mubr.msk.bf16.vlgmr.msra.gmra.mrb[84].mxu0 %vm1815_vm11, %v5090_v47 }
 0x92c   : > { %4090 = vmatprep.mubr.bf16.mxu0 %v5125_v17 }
 0x933   : > { %4580 = vmatmul.mubr.msk.bf16.gmra.mrb[88].mxu0 %vm1815_vm11, %v5091_v53 }
 0x934   : > { %4100 = vmatprep.mubr.bf16.mxu0 %v5125_v17 }
 0x93b   : > { %4581 = vmatmul.mubr.msk.bf16.gmra.mrb[92].mxu0 %vm1815_vm11, %v5092_v6 }
 0x93c   : > { %4110 = vmatprep.mubr.bf16.mxu0 %v5125_v17 }
 0x943   : > { %4582 = vmatmul.mubr.msk.bf16.gmra.mrb[96].mxu0 %vm1815_vm11, %v5093_v34 }
 0x944   : > { %4120 = vmatprep.mubr.bf16.mxu0 %v5125_v17 }
 0x94b   : > { %4583 = vmatmul.mubr.msk.bf16.gmra.mrb[100].mxu0 %vm1815_vm11, %v5094_v27 }
 0x94c   : > { %4130 = vmatprep.mubr.bf16.mxu0 %v5125_v17 }
 0x953   : > { %4584 = vmatmul.mubr.msk.bf16.gmra.mrb[104].mxu0 %vm1815_vm11, %v5095_v37  ;;  %v3984_v37 = vpop.permute.xlu0 %3983 }
 0x954   : > { %4234 = vmatprep.mubr.bf16.mxu0 %v5125_v17 }
 0x9fe   : > { %v4082_v24 = vpop.f32.mrb[84].mxu0 }
 0x9ff   : > { %v4083_v46 = vadd.f32 %v4082_v24, %v3944_v52  ;;  %v4084_v54 = vpop.f32.mrb[85].mxu0 }
 0xa00   : > { %v4085_v49 = vadd.f32 %v4084_v54, %v3944_v52  ;;  %v4086_v61 = vpop.f32.mrb[86].mxu0 }
 0xa01   : > { %v4087_v1 = vadd.f32 %v4086_v61, %v3949_v56  ;;  %v4088_v4 = vpop.f32.mrb[87].mxu0  ;;  %v4139_v29 = vmax.f32 %v4083_v46, 0.0 }
 0xa02   : > { %v4089_v9 = vadd.f32 %v4088_v4, %v3949_v56  ;;  %v4140_v36 = vmax.f32 %v4085_v49, 0.0  ;;  %v3989_v56 = vpop.permute.xlu1 %3988 }
 0xa03   : > { %v4141_v62 = vmax.f32 %v4087_v1, 0.0 }
 0xa04   : > { %v4142_v16 = vmax.f32 %v4089_v9, 0.0 }
 0xa05   : > { %v4161_v8 = vpack.c.bf16 %v4141_v62, %v4139_v29 }
 0xa06   : > { %v4162_v40 = vpack.c.bf16 %v4142_v16, %v4140_v36  ;;  %v4092_v55 = vpop.f32.mrb[88].mxu0 }
 0xa07   : > { %v4093_v2 = vadd.f32 %v4092_v55, %v3954_v35  ;;  %v4094_v17 = vpop.f32.mrb[89].mxu0 }
 0xa08   : > { %v4095_v14 = vadd.f32 %v4094_v17, %v3954_v35  ;;  %v4096_v59 = vpop.f32.mrb[90].mxu0  ;;  %4202 = vmatprep.subr.bf16.mxu0 %v4162_v40  ;;  %v3994_v35 = vpop.permute.xlu0 %3993 }
 0xa09   : > { %v4097_v5 = vadd.f32 %v4096_v59, %v3959_v48  ;;  %v4098_v3 = vpop.f32.mrb[91].mxu0  ;;  %4203 = vmatpush1.bf16.msra.mxu0 %v4161_v8  ;;  %v4143_v63 = vmax.f32 %v4093_v2, 0.0 }
 0xa0a   : > { %v4099_v21 = vadd.f32 %v4098_v3, %v3959_v48  ;;  %v4144_v22 = vmax.f32 %v4095_v14, 0.0 }
 0xa0b   : > { %v4145_v19 = vmax.f32 %v4097_v5, 0.0 }
 0xa0c   : > { %v4146_v25 = vmax.f32 %v4099_v21, 0.0 }
 0xa0d   : > { %v4163_v26 = vpack.c.bf16 %v4145_v19, %v4143_v63 }
 0xa0e   : > { %v4164_v15 = vpack.c.bf16 %v4146_v25, %v4144_v22  ;;  %v4102_v31 = vpop.f32.mrb[92].mxu0  ;;  %v5096_v22 = vld [vmem:[%s6710_s11] sm:$0x1f]   ;;  %v4180_v25 = vpop.permute.xlu1 %4179 }
 0xa0f   : > { %v4103_v60 = vadd.f32 %v4102_v31, %v3964_v28  ;;  %v4104_v10 = vpop.f32.mrb[93].mxu0  ;;  %v4185_v31 = vpop.permute.xlu0 %4184 }
 0xa10   : > { %v4105_v39 = vadd.f32 %v4104_v10, %v3964_v28  ;;  %v4106_v38 = vpop.f32.mrb[94].mxu0  ;;  %4204 = vmatprep.subr.bf16.mxu0 %v4164_v15 }
 0xa11   : > { %v4107_v58 = vadd.f32 %v4106_v38, %v3969_v57  ;;  %v4108_v23 = vpop.f32.mrb[95].mxu0  ;;  %4205 = vmatpush1.bf16.msra.mxu0 %v4163_v26  ;;  %v4147_v13 = vmax.f32 %v4103_v60, 0.0 }
 0xa12   : > { %v4109_v42 = vadd.f32 %v4108_v23, %v3969_v57  ;;  %v4148_v50 = vmax.f32 %v4105_v39, 0.0 }
 0xa13   : > { %v4149_v44 = vmax.f32 %v4107_v58, 0.0 }
 0xa14   : > { %v4150_v51 = vmax.f32 %v4109_v42, 0.0 }
 0xa15   : > { %v4165_v0 = vpack.c.bf16 %v4149_v44, %v4147_v13 }
 0xa16   : > { %v4166_v20 = vpack.c.bf16 %v4150_v51, %v4148_v50  ;;  %v4112_v32 = vpop.f32.mrb[96].mxu0 }
 0xa17   : > { %v4113_v41 = vadd.f32 %v4112_v32, %v3974_v11  ;;  %v4114_v43 = vpop.f32.mrb[97].mxu0 }
 0xa18   : > { %v4115_v30 = vadd.f32 %v4114_v43, %v3974_v11  ;;  %v4116_v18 = vpop.f32.mrb[98].mxu0  ;;  %4206 = vmatprep.subr.bf16.mxu0 %v4166_v20 }
 0xa19   : > { %v4117_v7 = vadd.f32 %v4116_v18, %v3979_v45  ;;  %v4118_v33 = vpop.f32.mrb[99].mxu0  ;;  %4207 = vmatpush1.bf16.msra.mxu0 %v4165_v0  ;;  %v4151_v47 = vmax.f32 %v4113_v41, 0.0 }
 0xa1a   : > { %v4119_v12 = vadd.f32 %v4118_v33, %v3979_v45  ;;  %v4152_v6 = vmax.f32 %v4115_v30, 0.0 }
 0xa1b   : > { %v4153_v53 = vmax.f32 %v4117_v7, 0.0 }
 0xa1c   : > { %v4154_v34 = vmax.f32 %v4119_v12, 0.0 }
 0xa1d   : > { %v4167_v27 = vpack.c.bf16 %v4153_v53, %v4151_v47 }
 0xa1e   : > { %v4168_v52 = vpack.c.bf16 %v4154_v34, %v4152_v6  ;;  %v4122_v24 = vpop.f32.mrb[100].mxu0 }
 0xa1f   : > { %v4123_v46 = vadd.f32 %v4122_v24, %v3984_v37  ;;  %v4124_v54 = vpop.f32.mrb[101].mxu0 }
 0xa20   : > { %v4125_v49 = vadd.f32 %v4124_v54, %v3984_v37  ;;  %v4126_v61 = vpop.f32.mrb[102].mxu0  ;;  %4208 = vmatprep.subr.bf16.mxu0 %v4168_v52 }
 0xa21   : > { %v4127_v1 = vadd.f32 %v4126_v61, %v3989_v56  ;;  %v4128_v4 = vpop.f32.mrb[103].mxu0  ;;  %4209 = vmatpush1.bf16.msra.mxu0 %v4167_v27  ;;  %v4155_v29 = vmax.f32 %v4123_v46, 0.0 }
 0xa22   : > { %v4129_v9 = vadd.f32 %v4128_v4, %v3989_v56  ;;  %v4156_v36 = vmax.f32 %v4125_v49, 0.0 }
 0xa23   : > { %v4157_v62 = vmax.f32 %v4127_v1, 0.0 }
 0xa24   : > { %v4158_v16 = vmax.f32 %v4129_v9, 0.0 }
 0xa25   : > { %v4169_v8 = vpack.c.bf16 %v4157_v62, %v4155_v29 }
 0xa26   : > { %v4170_v40 = vpack.c.bf16 %v4158_v16, %v4156_v36  ;;  %v4132_v55 = vpop.f32.mrb[104].mxu0 }
 0xa27   : > { %v4133_v2 = vadd.f32 %v4132_v55, %v3994_v35  ;;  %v4134_v17 = vpop.f32.mrb[105].mxu0 }
 0xa28   : > { %v4135_v48 = vadd.f32 %v4134_v17, %v3994_v35  ;;  %4210 = vmatprep.subr.bf16.mxu0 %v4170_v40  ;;  %v4136_v14 = vpop.f32.mrb[106].mxu0 }
 0xa29   : > { %v4159_v59 = vmax.f32 %v4133_v2, 0.0  ;;  %4211 = vmatpush1.bf16.msra.mxu0 %v4169_v8  ;;  %v4137_v5 = vpop.f32.mrb[107].mxu0 }
 0xa2a   : > { %v4160_v3 = vmax.f32 %v4135_v48, 0.0 }
 0xa2b   : > { %v4171_v21 = vpack.c.bf16 %v4159_v59, %v4159_v59 }
 0xa2c   : > { %v4172_v63 = vpack.c.bf16 %v4160_v3, %v4160_v3 }
 0xa2d   : > { %v4197_v19 = vsel %vm602_vm6, %v4171_v21, 0 }
 0xa2e   : > { %4586 = vmatprep.subr.msk.bf16.mxu0 %vm602_vm6, %v4172_v63 }
 0xa2f   : > { %4213 = vmatpush1.bf16.msra.mxu0 %v4197_v19 }
 0xa32   : > { %4587 = vmatmul.mubr.msk.bf16.vlgmr.msra.gmra.mrb[108].mxu0 %vm4192_vm1, %v5096_v22 }
 0xb05   : > { %v4236_v26 = vpop.f32.mrb[108].mxu0  ;;  %4255 = sbr.rel (!%p5231_p5) target bundleno = 2836 (0xb14), region = 114 }
 0xb06   : > { %v4237_v28 = vadd.f32 %v4236_v26, %v4180_v25  ;;  %v4238_v15 = vpop.f32.mrb[109].mxu0 }
 0xb07   : > { %v4239_v60 = vadd.f32 %v4238_v15, %v4180_v25  ;;  %v4240_v10 = vpop.f32.mrb[110].mxu0 }
 0xb08   : > { %4245 = vst [vmem:[%s481_s20] sm:$0xff] %v4237_v28  ;;  %v4241_v57 = vadd.f32 %v4240_v10, %v4185_v31  ;;  %v4242_v39 = vpop.f32.mrb[111].mxu0 }
 0xb09   : > { %4246 = vst [vmem:[%s481_s20 + $0x8] sm:$0xff] %v4239_v60  ;;  %v4243_v38 = vadd.f32 %v4242_v39, %v4185_v31 }
 0xb0a   : > { %4247 = vst [vmem:[%s481_s20 + $0x10] sm:$0x3] %v4241_v57 }
 0xb0b   : > { %4248 = vst [vmem:[%s481_s20 + $0x18] sm:$0x3] %v4243_v38 }
 0xb0f   : > { %v4271_v58 = vld [vmem:[%s481_s20] sm:$0xff] }
 0xb10   : > { %v4273_v23 = vld [vmem:[%s481_s20 + $0x8] sm:$0xff]  ;;  %4272 = vst [vmem:[%s4258_s30] sm:$0xff] %v4271_v58 }
 0xb11   : > { %v4275_v42 = vld [vmem:[%s481_s20 + $0x10] sm:$0xff]  ;;  %4274 = vst [vmem:[%s4258_s30 + $0x8] sm:$0xff] %v4273_v23 }
 0xb12   : > { %v4277_v13 = vld [vmem:[%s481_s20 + $0x18] sm:$0xff]  ;;  %4276 = vst [vmem:[%s4258_s30 + $0x20] sm:$0xff] %v4275_v42 }
 0xb13   : > { %4278 = vst [vmem:[%s4258_s30 + $0x28] sm:$0xff] %v4277_v13 }
 0xb14 PF: > { %p20_p10 = scmp.ge.s32.totalorder %s5218_s29, 4   ;;  %s6722_s25 = smov %s5115_s26 }
 0xb15   : > { %s6723_s26 = smov %s5229_s15  ;;  %s6724_s27 = smov %s5218_s29 }
 0xb16   :  { %22 = sbr.rel (!%p20_p10) target bundleno = 2 (0x2), region = 170 }

</bundles_post_ra>
